<compile_context>
chip_gen: v5e
topology: v5e:2x2
jax: 0.10.0
libtpu: 0.0.40
codegen_flags: <defaults>
</compile_context>

<pallas_src>
import functools

import jax
import jax.numpy as jnp
from jax import lax
from jax.experimental import pallas as pl
from jax.experimental.pallas import tpu as pltpu


# ----------------------------------------------------------------------------
# chip-generation dispatch
# ----------------------------------------------------------------------------
def _chip_config():
    try:
        kind = jax.devices()[0].device_kind.lower()
    except Exception:  # pragma: no cover
        kind = ""
    is_v5e = ("v5 lite" in kind) or ("v5e" in kind) or ("v5litepod" in kind)
    is_v7 = ("v7" in kind) or ("7x" in kind)
    return {
        # MXU width: 128 on v5e, 256 on v6e/v7x
        "tile_f": 128 if is_v5e else 256,
        # bf16 EUP/VPU only exists on v6e/v7x; keep f32 swish on v5e
        "act_dtype": jnp.float32 if is_v5e else jnp.bfloat16,
        # v7x has 64 MiB physical VMEM per TC; v5e/v6e have 128 MiB
        "vmem_limit": (40 if is_v7 else 64) * 1024 * 1024,
    }


def _round_up(a, m):
    return ((a + m - 1) // m) * m


def _pick_tile_p(P, cap=64):
    """Largest divisor of P that is a multiple of 8 and <= cap (else P)."""
    best = None
    for d in range(8, min(P, cap) + 1, 8):
        if P % d == 0:
            best = d
    return best if best is not None else P


# ----------------------------------------------------------------------------
# im2col glue (pure JAX; fuses with the frame diff that feeds it).  Input is
# already bf16 so the materialized patch tensor is half-size in HBM.
# ----------------------------------------------------------------------------
def im2col(imgs):
    # imgs: (N, C, H, W) -> (N, P, K) with K = C*3*3 (true K, no lane padding in HBM)
    patches = lax.conv_general_dilated_patches(
        imgs, filter_shape=(3, 3), window_strides=(2, 2), padding="SAME")
    N, K, OH, OW = patches.shape
    return patches.transpose(0, 2, 3, 1).reshape(N, OH * OW, K)


# ----------------------------------------------------------------------------
# Kernel 1: encoder stand-in (conv3x3 s2 as im2col matmul + swish) fused with
#           global average pooling  -> (N, FEAT) bf16
#   grid = (N_pad//tile_n ["parallel"], F//tile_f ["parallel"], P//tile_p ["arbitrary"])
#   The P axis is the pooling reduction; acc scratch is init/finalized via pl.when.
#   Inside the kernel a fori_loop over the tile_n rows keeps the live pre-pool
#   activation at (tile_p, tile_f) so vreg pressure stays bounded at any P.
# ----------------------------------------------------------------------------
def _encode_pool_kernel(p_ref, w_ref, b_ref, o_ref, acc_ref, *, inv_p, act_dtype):
    pj = pl.program_id(2)
    tn, tp, K = p_ref.shape

    @pl.when(pj == 0)
    def _():
        acc_ref[...] = jnp.zeros_like(acc_ref)

    w = w_ref[...]          # (K, tile_f) bf16, small -> hoisted out of the loop
    b = b_ref[...]          # (1, tile_f) f32

    def body(n, carry):
        x = p_ref[n]                                              # (tile_p, K) bf16
        z = jnp.dot(x, w, preferred_element_type=jnp.float32) + b  # f32
        za = z.astype(act_dtype)
        act = za * jax.nn.sigmoid(za)                             # swish (bf16 EUP on v6e/v7x)
        s = jnp.sum(act.astype(jnp.float32), axis=0, keepdims=True)  # pool-sum in f32
        acc_ref[pl.ds(n, 1), :] = acc_ref[pl.ds(n, 1), :] + s
        return carry

    lax.fori_loop(0, tn, body, 0)

    @pl.when(pj == pl.num_programs(2) - 1)
    def _():
        o_ref[...] = (acc_ref[...] * inv_p).astype(o_ref.dtype)


def encode_and_pool(diffs_bf16, enc_w, enc_b, cfg, *, tile_n_target=64):
    N = diffs_bf16.shape[0]
    K, F = enc_w.shape
    tile_f = min(cfg["tile_f"], F)
    assert F % tile_f == 0

    patches = im2col(diffs_bf16)                        # (N, P, K) bf16
    P = patches.shape[1]
    tile_p = _pick_tile_p(P)

    # Large row tiles amortize the ~0.35us per-grid-step overhead; adapt down for
    # small N and for VMEM (patch tile lane-pads K=27 -> 128, double-buffered).
    tile_n = min(tile_n_target, _round_up(N, 8))

    def _patch_tile_bytes(tn):
        return 2 * tn * _round_up(tile_p, 16) * 128 * 2   # 2 buffers, bf16, lane-padded

    while tile_n > 8 and _patch_tile_bytes(tile_n) > cfg["vmem_limit"] // 4:
        tile_n -= 8

    N_pad = _round_up(N, tile_n)
    patches = jnp.pad(patches, ((0, N_pad - N), (0, 0), (0, 0)))

    kern = functools.partial(_encode_pool_kernel,
                             inv_p=1.0 / float(P), act_dtype=cfg["act_dtype"])
    out = pl.pallas_call(
        kern,
        out_shape=jax.ShapeDtypeStruct((N_pad, F), jnp.bfloat16),
        grid=(N_pad // tile_n, F // tile_f, P // tile_p),
        in_specs=[
            pl.BlockSpec((tile_n, tile_p, K), lambda n, f, p: (n, p, 0)),
            pl.BlockSpec((K, tile_f), lambda n, f, p: (0, f)),
            pl.BlockSpec((1, tile_f), lambda n, f, p: (0, f)),
        ],
        out_specs=pl.BlockSpec((tile_n, tile_f), lambda n, f, p: (n, f)),
        scratch_shapes=[pltpu.VMEM((tile_n, tile_f), jnp.float32)],
        compiler_params=pltpu.CompilerParams(
            dimension_semantics=("parallel", "parallel", "arbitrary"),
            vmem_limit_bytes=cfg["vmem_limit"]),
    )(patches, enc_w.astype(jnp.bfloat16), enc_b.reshape(1, F).astype(jnp.float32))
    return out[:N]


# ----------------------------------------------------------------------------
# Kernel 2: single-layer LSTM (batch_first, gate order i,f,g,o) with the input
#           projection hoisted out of the recurrence (staged in VMEM scratch),
#           fused with the classifier head Linear -> ReLU -> Linear(->1).
#   grid = (Bp // tile_b,) marked "parallel" (weights resident, index 0).
# ----------------------------------------------------------------------------
def _lstm_head_kernel(seq_ref, wih_ref, whh_ref, bg_ref,
                      w1_ref, b1_ref, w2t_ref, b2_ref, o_ref, gx_ref,
                      *, seq_len, tile_b, hidden):
    H = hidden
    T = seq_len
    F = seq_ref.shape[2]

    # Batched input projection for ALL timesteps in one MXU matmul (M = T*tile_b),
    # bias folded in once; result staged in VMEM scratch so it is not a live value
    # across the recurrence.  (The (T, tile_b, F)->(T*tile_b, F) reshape may copy
    # ~T*tile_b*F bf16 bytes in VMEM; negligible.)
    x2d = seq_ref[...].reshape(T * tile_b, F)
    gx_ref[...] = (jnp.dot(x2d, wih_ref[...], preferred_element_type=jnp.float32)
                   + bg_ref[...])

    def step(t, carry):
        h, c = carry
        row = pl.multiple_of(t * tile_b, tile_b)
        gates = (gx_ref[pl.ds(row, tile_b), :]
                 + jnp.dot(h.astype(jnp.bfloat16), whh_ref[...],
                           preferred_element_type=jnp.float32))
        i = jax.nn.sigmoid(gates[:, 0 * H:1 * H])
        f = jax.nn.sigmoid(gates[:, 1 * H:2 * H])
        g = jnp.tanh(gates[:, 2 * H:3 * H])
        o = jax.nn.sigmoid(gates[:, 3 * H:4 * H])
        c = f * c + i * g
        h = o * jnp.tanh(c)
        return (h, c)

    h0 = jnp.zeros((tile_b, H), jnp.float32)
    c0 = jnp.zeros((tile_b, H), jnp.float32)
    h, _ = lax.fori_loop(0, T, step, (h0, c0))

    # classifier head fused on the last hidden state (dropouts are identity)
    z = jnp.dot(h.astype(jnp.bfloat16), w1_ref[...],
                preferred_element_type=jnp.float32) + b1_ref[...]
    z = jnp.maximum(z, 0.0)
    s = jnp.sum(z * w2t_ref[...], axis=-1, keepdims=True) + b2_ref[...]
    o_ref[...] = s.astype(o_ref.dtype)


def lstm_head(feats_bf16, params, cfg, *, tile_b=8):
    # feats_bf16: (B, T, F) bf16  ->  scores (B,) f32
    B, T, F = feats_bf16.shape
    H4 = params["wih"].shape[1]
    Hd = H4 // 4
    HID = params["w1"].shape[1]

    Bp = _round_up(max(B, tile_b), tile_b)
    seq = jnp.pad(feats_bf16, ((0, Bp - B), (0, 0), (0, 0)))
    seq = seq.transpose(1, 0, 2)                       # (T, Bp, F), time-major

    kern = functools.partial(_lstm_head_kernel, seq_len=T, tile_b=tile_b, hidden=Hd)
    out = pl.pallas_call(
        kern,
        out_shape=jax.ShapeDtypeStruct((Bp, 1), jnp.float32),
        grid=(Bp // tile_b,),
        in_specs=[
            pl.BlockSpec((T, tile_b, F), lambda b: (0, b, 0)),   # per-batch-tile sequence
            pl.BlockSpec((F, H4), lambda b: (0, 0)),             # W_ih (resident)
            pl.BlockSpec((Hd, H4), lambda b: (0, 0)),            # W_hh (resident)
            pl.BlockSpec((1, H4), lambda b: (0, 0)),             # b_ih + b_hh
            pl.BlockSpec((Hd, HID), lambda b: (0, 0)),           # W1
            pl.BlockSpec((1, HID), lambda b: (0, 0)),            # b1
            pl.BlockSpec((1, HID), lambda b: (0, 0)),            # W2^T
            pl.BlockSpec((1, 1), lambda b: (0, 0)),              # b2
        ],
        out_specs=pl.BlockSpec((tile_b, 1), lambda b: (b, 0)),
        scratch_shapes=[pltpu.VMEM((T * tile_b, H4), jnp.float32)],
        compiler_params=pltpu.CompilerParams(
            dimension_semantics=("parallel",),
            vmem_limit_bytes=cfg["vmem_limit"]),
    )(seq,
      params["wih"].astype(jnp.bfloat16),
      params["whh"].astype(jnp.bfloat16),
      params["lstm_b"].reshape(1, H4),
      params["w1"].astype(jnp.bfloat16),
      params["b1"].reshape(1, HID),
      params["w2t"],
      params["b2"])
    return out[:B, 0]


# ----------------------------------------------------------------------------
# Full forward pass
# ----------------------------------------------------------------------------
def off_detector_forward(x, params, cfg=None):
    if cfg is None:
        cfg = _chip_config()
    bs, sb, nc, C, H, W = x.shape
    N = bs * sb * (nc - 1)
    # Frame differences: plain XLA op.  Cast to bf16 BEFORE im2col so the
    # materialized patch tensor in HBM is half-size (patch extraction is pure
    # data movement, so this is bit-identical to casting after).
    diffs = (x[:, :, :-1] - x[:, :, 1:]).reshape(N, C, H, W).astype(jnp.bfloat16)
    feats = encode_and_pool(diffs, params["enc_w"], params["enc_b"], cfg)   # (N, F) bf16
    feats = feats.reshape(bs * sb, nc - 1, -1)                              # (B, T, F)
    scores = lstm_head(feats, params, cfg)                                  # (B,)
    return scores.reshape(bs, sb).mean(axis=1)                              # (bs,)


# ----------------------------------------------------------------------------
# Pure-JAX reference (mirrors the kernel's precision choices, no Pallas)
# ----------------------------------------------------------------------------
def off_detector_reference(x, params, cfg):
    bs, sb, nc, C, H, W = x.shape
    N = bs * sb * (nc - 1)
    diffs = (x[:, :, :-1] - x[:, :, 1:]).reshape(N, C, H, W).astype(jnp.bfloat16)
    patches = im2col(diffs)
    z = jnp.einsum("npk,kf->npf", patches, params["enc_w"].astype(jnp.bfloat16),
                   preferred_element_type=jnp.float32) + params["enc_b"]
    za = z.astype(cfg["act_dtype"])
    act = (za * jax.nn.sigmoid(za)).astype(jnp.float32)
    feats = act.mean(axis=1).astype(jnp.bfloat16).reshape(bs * sb, nc - 1, -1)

    Hd = params["whh"].shape[0]
    wih = params["wih"].astype(jnp.bfloat16)
    whh = params["whh"].astype(jnp.bfloat16)
    h = jnp.zeros((bs * sb, Hd), jnp.float32)
    c = jnp.zeros((bs * sb, Hd), jnp.float32)
    for t in range(nc - 1):
        gates = (jnp.dot(feats[:, t], wih, preferred_element_type=jnp.float32)
                 + jnp.dot(h.astype(jnp.bfloat16), whh, preferred_element_type=jnp.float32)
                 + params["lstm_b"])
        i = jax.nn.sigmoid(gates[:, 0 * Hd:1 * Hd])
        f = jax.nn.sigmoid(gates[:, 1 * Hd:2 * Hd])
        g = jnp.tanh(gates[:, 2 * Hd:3 * Hd])
        o = jax.nn.sigmoid(gates[:, 3 * Hd:4 * Hd])
        c = f * c + i * g
        h = o * jnp.tanh(c)

    z1 = jnp.maximum(jnp.dot(h.astype(jnp.bfloat16), params["w1"].astype(jnp.bfloat16),
                             preferred_element_type=jnp.float32) + params["b1"], 0.0)
    s = jnp.sum(z1 * params["w2t"], axis=-1) + params["b2"][0, 0]
    return s.reshape(bs, sb).mean(axis=1)


# ----------------------------------------------------------------------------
# Deterministic parameter init (synthetic — shapes follow the module's __init__)
# ----------------------------------------------------------------------------
def init_params(key, feat, hidden_size, k):
    ks = jax.random.split(key, 9)
    scale = 0.1
    return {
        # encoder stand-in (im2col conv weight at true K = C*3*3)
        "enc_w": scale * jax.random.normal(ks[0], (k, feat), jnp.float32),
        "enc_b": scale * jax.random.normal(ks[1], (feat,), jnp.float32),
        # LSTM(feat, feat): stored transposed (in, 4H); bias = b_ih + b_hh
        "wih": scale * jax.random.normal(ks[2], (feat, 4 * feat), jnp.float32),
        "whh": scale * jax.random.normal(ks[3], (feat, 4 * feat), jnp.float32),
        "lstm_b": scale * jax.random.normal(ks[4], (4 * feat,), jnp.float32),
        # classifier: Linear(feat, hidden_size) -> ReLU -> Linear(hidden_size, 1)
        "w1": scale * jax.random.normal(ks[5], (feat, hidden_size), jnp.float32),
        "b1": scale * jax.random.normal(ks[6], (hidden_size,), jnp.float32),
        "w2t": scale * jax.random.normal(ks[7], (1, hidden_size), jnp.float32),
        "b2": scale * jax.random.normal(ks[8], (1, 1), jnp.float32),
    }


if __name__ == "__main__":
    key = jax.random.PRNGKey(0)
    k_x, k_p = jax.random.split(key)

    # Small but faithful shapes: x is (bs, sb, nc, C, H, W)
    bs, sb, nc, C, H, W = 2, 2, 4, 3, 16, 16
    FEAT = 256         # stands in for the module's 1280
    HIDDEN_SIZE = 256  # module default hidden_size=1280, scaled down
    K = C * 3 * 3      # true im2col contraction size (27), no HBM-side padding

    x = jax.random.normal(k_x, (bs, sb, nc, C, H, W), jnp.float32)
    params = init_params(k_p, FEAT, HIDDEN_SIZE, K)

    cfg = _chip_config()
    fwd = jax.jit(functools.partial(off_detector_forward, cfg=cfg))
    out = fwd(x, params)
    jax.block_until_ready(out)
    assert out.shape == (bs,), out.shape

    ref = off_detector_reference(x, params, cfg)
    assert jnp.allclose(out, ref, atol=2e-2, rtol=2e-2), (out, ref)

    print("KERNEL_OK")
</pallas_src>

<mosaic_0001>
module attributes {stable_mosaic.version = 11 : i64} {
  func.func @_encode_pool_kernel(%arg0: i32, %arg1: i32, %arg2: i32, %arg3: memref<16x64x27xbf16, #tpu.memory_space<vmem>>, %arg4: memref<27x256xbf16, #tpu.memory_space<vmem>>, %arg5: memref<1x256xf32, #tpu.memory_space<vmem>>, %arg6: memref<16x256xbf16, #tpu.memory_space<vmem>>, %arg7: memref<16x256xf32, #tpu.memory_space<vmem>>) attributes {dimension_semantics = [#tpu.dimension_semantics<parallel>, #tpu.dimension_semantics<parallel>, #tpu.dimension_semantics<arbitrary>], iteration_bounds = array<i64: 1, 1, 1>, scalar_prefetch = 0 : i64, scratch_operands = 1 : i64, tpu.core_type = #tpu.core_type<tc>, window_params = [{transform_indices = @transform_0, window_bounds = array<i64: 16, 64, 27>}, {transform_indices = @transform_1, window_bounds = array<i64: 27, 256>}, {transform_indices = @transform_2, window_bounds = array<i64: 1, 256>}, {transform_indices = @transform_3, window_bounds = array<i64: 16, 256>}]} {
    %c0_i32 = arith.constant 0 : i32
    %0 = arith.cmpi eq, %arg2, %c0_i32 : i32
    %1 = arith.extui %0 : i1 to i32
    %c0_i32_0 = arith.constant 0 : i32
    %2 = arith.cmpi ne, %1, %c0_i32_0 : i32
    scf.if %2 {
      %cst = arith.constant 0.000000e+00 : f32
      %9 = vector.broadcast %cst : f32 to vector<16x256xf32>
      %c0_8 = arith.constant 0 : index
      %c0_9 = arith.constant 0 : index
      %10 = vector.load %arg7[%c0_8, %c0_9] : memref<16x256xf32, #tpu.memory_space<vmem>>, vector<16x256xf32>
      tpu.vector_store %arg7[%c0_8, %c0_9], %9 {strides = array<i32>} : memref<16x256xf32, #tpu.memory_space<vmem>>, vector<16x256xf32>,
    } else {
    }
    %c0 = arith.constant 0 : index
    %c0_1 = arith.constant 0 : index
    %3 = vector.load %arg4[%c0, %c0_1] : memref<27x256xbf16, #tpu.memory_space<vmem>>, vector<27x256xbf16>
    %c0_2 = arith.constant 0 : index
    %c0_3 = arith.constant 0 : index
    %4 = vector.load %arg5[%c0_2, %c0_3] : memref<1x256xf32, #tpu.memory_space<vmem>>, vector<1x256xf32>
    %c0_i32_4 = arith.constant 0 : i32
    %c16_i32 = arith.constant 16 : i32
    %5 = arith.addi %c0_i32_4, %c16_i32 : i32
    %c1_i32 = arith.constant 1 : i32
    scf.for %arg8 = %c0_i32_4 to %5 step %c1_i32  : i32 {
      %9 = arith.index_cast %arg8 : i32 to index
      %c0_8 = arith.constant 0 : index
      %c0_9 = arith.constant 0 : index
      %10 = vector.load %arg3[%9, %c0_8, %c0_9] : memref<16x64x27xbf16, #tpu.memory_space<vmem>>, vector<1x64x27xbf16>
      %11 = vector.shape_cast %10 : vector<1x64x27xbf16> to vector<64x27xbf16>
      %cst = arith.constant dense<0.000000e+00> : vector<64x256xf32>
      %12 = tpu.matmul %11, %3, %cst {dimension_numbers = #tpu.dot_dimension_numbers<[1], [0], [0], [1], [0, 0, 1, 1], [], []>} : vector<64x27xbf16>, vector<27x256xbf16>, vector<64x256xf32> -> vector<64x256xf32>
      %13 = vector.broadcast %4 : vector<1x256xf32> to vector<64x256xf32>
      %14 = arith.addf %12, %13 : vector<64x256xf32>
      %15 = arith.truncf %14 : vector<64x256xf32> to vector<64x256xbf16>
      %16 = arith.negf %15 : vector<64x256xbf16>
      %17 = math.exp %16 : vector<64x256xbf16>
      %cst_10 = arith.constant 1.000000e+00 : bf16
      %18 = vector.broadcast %cst_10 : bf16 to vector<64x256xbf16>
      %19 = arith.addf %18, %17 : vector<64x256xbf16>
      %20 = arith.divf %18, %19 : vector<64x256xbf16>
      %21 = arith.mulf %15, %20 : vector<64x256xbf16>
      %22 = arith.extf %21 : vector<64x256xbf16> to vector<64x256xf32>
      %cst_11 = arith.constant dense<0.000000e+00> : vector<256xf32>
      %23 = vector.multi_reduction <add>, %22, %cst_11 [0] : vector<64x256xf32> to vector<256xf32>
      %24 = vector.shape_cast %23 : vector<256xf32> to vector<1x256xf32>
      %25 = arith.index_cast %arg8 : i32 to index
      %c0_12 = arith.constant 0 : index
      %26 = vector.load %arg7[%25, %c0_12] : memref<16x256xf32, #tpu.memory_space<vmem>>, vector<1x256xf32>
      %27 = arith.addf %26, %24 : vector<1x256xf32>
      %28 = arith.index_cast %arg8 : i32 to index
      %c0_13 = arith.constant 0 : index
      %29 = vector.load %arg7[%28, %c0_13] : memref<16x256xf32, #tpu.memory_space<vmem>>, vector<1x256xf32>
      tpu.vector_store %arg7[%28, %c0_13], %27 {strides = array<i32>} : memref<16x256xf32, #tpu.memory_space<vmem>>, vector<1x256xf32>,
    }
    %c16_i32_5 = arith.constant 16 : i32
    %c0_i32_6 = arith.constant 0 : i32
    %6 = arith.cmpi eq, %arg2, %c0_i32_6 : i32
    %7 = arith.extui %6 : i1 to i32
    %c0_i32_7 = arith.constant 0 : i32
    %8 = arith.cmpi ne, %7, %c0_i32_7 : i32
    scf.if %8 {
      %c0_8 = arith.constant 0 : index
      %c0_9 = arith.constant 0 : index
      %9 = vector.load %arg7[%c0_8, %c0_9] : memref<16x256xf32, #tpu.memory_space<vmem>>, vector<16x256xf32>
      %cst = arith.constant 1.562500e-02 : f32
      %10 = vector.broadcast %cst : f32 to vector<16x256xf32>
      %11 = arith.mulf %9, %10 : vector<16x256xf32>
      %12 = arith.truncf %11 : vector<16x256xf32> to vector<16x256xbf16>
      %c0_10 = arith.constant 0 : index
      %c0_11 = arith.constant 0 : index
      %13 = vector.load %arg6[%c0_10, %c0_11] : memref<16x256xbf16, #tpu.memory_space<vmem>>, vector<16x256xbf16>
      tpu.vector_store %arg6[%c0_10, %c0_11], %12 {strides = array<i32>} : memref<16x256xbf16, #tpu.memory_space<vmem>>, vector<16x256xbf16>,
    } else {
    }
    return
  }
  func.func @transform_0(%arg0: i32, %arg1: i32, %arg2: i32) -> (i32, i32, i32) {
    %c0_i32 = arith.constant 0 : i32
    %c0_i32_0 = arith.constant 0 : i32
    return %arg0, %arg2, %c0_i32 : i32, i32, i32
  }
  func.func @transform_1(%arg0: i32, %arg1: i32, %arg2: i32) -> (i32, i32) {
    %c0_i32 = arith.constant 0 : i32
    %c0_i32_0 = arith.constant 0 : i32
    return %c0_i32, %arg1 : i32, i32
  }
  func.func @transform_2(%arg0: i32, %arg1: i32, %arg2: i32) -> (i32, i32) {
    %c0_i32 = arith.constant 0 : i32
    %c0_i32_0 = arith.constant 0 : i32
    return %c0_i32, %arg1 : i32, i32
  }
  func.func @transform_3(%arg0: i32, %arg1: i32, %arg2: i32) -> (i32, i32) {
    %c0_i32 = arith.constant 0 : i32
    return %arg0, %arg1 : i32, i32
  }
}

module attributes {stable_mosaic.version = 11 : i64} {
  func.func @_lstm_head_kernel(%arg0: i32, %arg1: memref<3x8x256xbf16, #tpu.memory_space<vmem>>, %arg2: memref<256x1024xbf16, #tpu.memory_space<vmem>>, %arg3: memref<256x1024xbf16, #tpu.memory_space<vmem>>, %arg4: memref<1x1024xf32, #tpu.memory_space<vmem>>, %arg5: memref<256x256xbf16, #tpu.memory_space<vmem>>, %arg6: memref<1x256xf32, #tpu.memory_space<vmem>>, %arg7: memref<1x256xf32, #tpu.memory_space<vmem>>, %arg8: memref<1x1xf32, #tpu.memory_space<vmem>>, %arg9: memref<8x1xf32, #tpu.memory_space<vmem>>, %arg10: memref<24x1024xf32, #tpu.memory_space<vmem>>) attributes {dimension_semantics = [#tpu.dimension_semantics<parallel>], iteration_bounds = array<i64: 1>, scalar_prefetch = 0 : i64, scratch_operands = 1 : i64, tpu.core_type = #tpu.core_type<tc>, window_params = [{transform_indices = @transform_0, window_bounds = array<i64: 3, 8, 256>}, {pipeline_mode = #tpu.pipeline_mode<synchronous>, transform_indices = @transform_1, window_bounds = array<i64: 256, 1024>}, {pipeline_mode = #tpu.pipeline_mode<synchronous>, transform_indices = @transform_2, window_bounds = array<i64: 256, 1024>}, {pipeline_mode = #tpu.pipeline_mode<synchronous>, transform_indices = @transform_3, window_bounds = array<i64: 1, 1024>}, {pipeline_mode = #tpu.pipeline_mode<synchronous>, transform_indices = @transform_4, window_bounds = array<i64: 256, 256>}, {pipeline_mode = #tpu.pipeline_mode<synchronous>, transform_indices = @transform_5, window_bounds = array<i64: 1, 256>}, {pipeline_mode = #tpu.pipeline_mode<synchronous>, transform_indices = @transform_6, window_bounds = array<i64: 1, 256>}, {pipeline_mode = #tpu.pipeline_mode<synchronous>, transform_indices = @transform_7, window_bounds = array<i64: 1, 1>}, {transform_indices = @transform_8, window_bounds = array<i64: 8, 1>}]} {
    %c0 = arith.constant 0 : index
    %c0_0 = arith.constant 0 : index
    %c0_1 = arith.constant 0 : index
    %0 = vector.load %arg1[%c0, %c0_0, %c0_1] : memref<3x8x256xbf16, #tpu.memory_space<vmem>>, vector<3x8x256xbf16>
    %1 = vector.shape_cast %0 : vector<3x8x256xbf16> to vector<24x256xbf16>
    %c0_2 = arith.constant 0 : index
    %c0_3 = arith.constant 0 : index
    %2 = vector.load %arg2[%c0_2, %c0_3] : memref<256x1024xbf16, #tpu.memory_space<vmem>>, vector<256x1024xbf16>
    %cst = arith.constant dense<0.000000e+00> : vector<24x1024xf32>
    %3 = tpu.matmul %1, %2, %cst {dimension_numbers = #tpu.dot_dimension_numbers<[1], [0], [0], [1], [0, 0, 1, 1], [], []>} : vector<24x256xbf16>, vector<256x1024xbf16>, vector<24x1024xf32> -> vector<24x1024xf32>
    %c0_4 = arith.constant 0 : index
    %c0_5 = arith.constant 0 : index
    %4 = vector.load %arg4[%c0_4, %c0_5] : memref<1x1024xf32, #tpu.memory_space<vmem>>, vector<1x1024xf32>
    %5 = vector.broadcast %4 : vector<1x1024xf32> to vector<24x1024xf32>
    %6 = arith.addf %3, %5 : vector<24x1024xf32>
    %c0_6 = arith.constant 0 : index
    %c0_7 = arith.constant 0 : index
    %7 = vector.load %arg10[%c0_6, %c0_7] : memref<24x1024xf32, #tpu.memory_space<vmem>>, vector<24x1024xf32>
    tpu.vector_store %arg10[%c0_6, %c0_7], %6 {strides = array<i32>} : memref<24x1024xf32, #tpu.memory_space<vmem>>, vector<24x1024xf32>,
    %cst_8 = arith.constant 0.000000e+00 : f32
    %8 = vector.broadcast %cst_8 : f32 to vector<8x256xf32>
    %cst_9 = arith.constant 0.000000e+00 : f32
    %9 = vector.broadcast %cst_9 : f32 to vector<8x256xf32>
    %c0_i32 = arith.constant 0 : i32
    %c3_i32 = arith.constant 3 : i32
    %10 = arith.addi %c0_i32, %c3_i32 : i32
    %c1_i32 = arith.constant 1 : i32
    %11:2 = scf.for %arg11 = %c0_i32 to %10 step %c1_i32 iter_args(%arg12 = %8, %arg13 = %9) -> (vector<8x256xf32>, vector<8x256xf32>)  : i32 {
      %c8_i32 = arith.constant 8 : i32
      %29 = arith.muli %arg11, %c8_i32 : i32
      %30 = tpu.assume_multiple %29, 8 : i32
      %31 = arith.index_cast %30 : i32 to index
      %c0_24 = arith.constant 0 : index
      %32 = vector.load %arg10[%31, %c0_24] : memref<24x1024xf32, #tpu.memory_space<vmem>>, vector<8x1024xf32>
      %33 = arith.truncf %arg12 : vector<8x256xf32> to vector<8x256xbf16>
      %c0_25 = arith.constant 0 : index
      %c0_26 = arith.constant 0 : index
      %34 = vector.load %arg3[%c0_25, %c0_26] : memref<256x1024xbf16, #tpu.memory_space<vmem>>, vector<256x1024xbf16>
      %cst_27 = arith.constant dense<0.000000e+00> : vector<8x1024xf32>
      %35 = tpu.matmul %33, %34, %cst_27 {dimension_numbers = #tpu.dot_dimension_numbers<[1], [0], [0], [1], [0, 0, 1, 1], [], []>} : vector<8x256xbf16>, vector<256x1024xbf16>, vector<8x1024xf32> -> vector<8x1024xf32>
      %36 = arith.addf %32, %35 : vector<8x1024xf32>
      %37 = vector.extract_strided_slice %36 {offsets = [0, 0], sizes = [8, 256], strides = [1, 1]} : vector<8x1024xf32> to vector<8x256xf32>
      %38 = arith.negf %37 : vector<8x256xf32>
      %39 = math.exp %38 : vector<8x256xf32>
      %cst_28 = arith.constant 1.000000e+00 : f32
      %40 = vector.broadcast %cst_28 : f32 to vector<8x256xf32>
      %41 = arith.addf %40, %39 : vector<8x256xf32>
      %42 = arith.divf %40, %41 : vector<8x256xf32>
      %43 = vector.extract_strided_slice %36 {offsets = [0, 256], sizes = [8, 256], strides = [1, 1]} : vector<8x1024xf32> to vector<8x256xf32>
      %44 = arith.negf %43 : vector<8x256xf32>
      %45 = math.exp %44 : vector<8x256xf32>
      %cst_29 = arith.constant 1.000000e+00 : f32
      %46 = vector.broadcast %cst_29 : f32 to vector<8x256xf32>
      %47 = arith.addf %46, %45 : vector<8x256xf32>
      %48 = arith.divf %46, %47 : vector<8x256xf32>
      %49 = vector.extract_strided_slice %36 {offsets = [0, 512], sizes = [8, 256], strides = [1, 1]} : vector<8x1024xf32> to vector<8x256xf32>
      %50 = math.tanh %49 : vector<8x256xf32>
      %51 = vector.extract_strided_slice %36 {offsets = [0, 768], sizes = [8, 256], strides = [1, 1]} : vector<8x1024xf32> to vector<8x256xf32>
      %52 = arith.negf %51 : vector<8x256xf32>
      %53 = math.exp %52 : vector<8x256xf32>
      %cst_30 = arith.constant 1.000000e+00 : f32
      %54 = vector.broadcast %cst_30 : f32 to vector<8x256xf32>
      %55 = arith.addf %54, %53 : vector<8x256xf32>
      %56 = arith.divf %54, %55 : vector<8x256xf32>
      %57 = arith.mulf %48, %arg13 : vector<8x256xf32>
      %58 = arith.mulf %42, %50 : vector<8x256xf32>
      %59 = arith.addf %57, %58 : vector<8x256xf32>
      %60 = math.tanh %59 : vector<8x256xf32>
      %61 = arith.mulf %56, %60 : vector<8x256xf32>
      scf.yield %61, %59 : vector<8x256xf32>, vector<8x256xf32>
    }
    %c3_i32_10 = arith.constant 3 : i32
    %12 = arith.truncf %11#0 : vector<8x256xf32> to vector<8x256xbf16>
    %c0_11 = arith.constant 0 : index
    %c0_12 = arith.constant 0 : index
    %13 = vector.load %arg5[%c0_11, %c0_12] : memref<256x256xbf16, #tpu.memory_space<vmem>>, vector<256x256xbf16>
    %cst_13 = arith.constant dense<0.000000e+00> : vector<8x256xf32>
    %14 = tpu.matmul %12, %13, %cst_13 {dimension_numbers = #tpu.dot_dimension_numbers<[1], [0], [0], [1], [0, 0, 1, 1], [], []>} : vector<8x256xbf16>, vector<256x256xbf16>, vector<8x256xf32> -> vector<8x256xf32>
    %c0_14 = arith.constant 0 : index
    %c0_15 = arith.constant 0 : index
    %15 = vector.load %arg6[%c0_14, %c0_15] : memref<1x256xf32, #tpu.memory_space<vmem>>, vector<1x256xf32>
    %16 = vector.broadcast %15 : vector<1x256xf32> to vector<8x256xf32>
    %17 = arith.addf %14, %16 : vector<8x256xf32>
    %cst_16 = arith.constant 0.000000e+00 : f32
    %18 = vector.broadcast %cst_16 : f32 to vector<8x256xf32>
    %19 = arith.maximumf %17, %18 : vector<8x256xf32>
    %c0_17 = arith.constant 0 : index
    %c0_18 = arith.constant 0 : index
    %20 = vector.load %arg7[%c0_17, %c0_18] : memref<1x256xf32, #tpu.memory_space<vmem>>, vector<1x256xf32>
    %21 = vector.broadcast %20 : vector<1x256xf32> to vector<8x256xf32>
    %22 = arith.mulf %19, %21 : vector<8x256xf32>
    %cst_19 = arith.constant dense<0.000000e+00> : vector<8xf32>
    %23 = vector.multi_reduction <add>, %22, %cst_19 [1] : vector<8x256xf32> to vector<8xf32>
    %24 = vector.shape_cast %23 : vector<8xf32> to vector<8x1xf32>
    %c0_20 = arith.constant 0 : index
    %c0_21 = arith.constant 0 : index
    %25 = vector.load %arg8[%c0_20, %c0_21] : memref<1x1xf32, #tpu.memory_space<vmem>>, vector<1x1xf32>
    %26 = vector.broadcast %25 : vector<1x1xf32> to vector<8x1xf32>
    %27 = arith.addf %24, %26 : vector<8x1xf32>
    %c0_22 = arith.constant 0 : index
    %c0_23 = arith.constant 0 : index
    %28 = vector.load %arg9[%c0_22, %c0_23] : memref<8x1xf32, #tpu.memory_space<vmem>>, vector<8x1xf32>
    tpu.vector_store %arg9[%c0_22, %c0_23], %27 {strides = array<i32>} : memref<8x1xf32, #tpu.memory_space<vmem>>, vector<8x1xf32>,
    return
  }
  func.func @transform_0(%arg0: i32) -> (i32, i32, i32) {
    %c0_i32 = arith.constant 0 : i32
    %c0_i32_0 = arith.constant 0 : i32
    %c0_i32_1 = arith.constant 0 : i32
    return %c0_i32, %arg0, %c0_i32_0 : i32, i32, i32
  }
  func.func @transform_1(%arg0: i32) -> (i32, i32) {
    %c0_i32 = arith.constant 0 : i32
    %c0_i32_0 = arith.constant 0 : i32
    %c0_i32_1 = arith.constant 0 : i32
    return %c0_i32, %c0_i32_0 : i32, i32
  }
  func.func @transform_2(%arg0: i32) -> (i32, i32) {
    %c0_i32 = arith.constant 0 : i32
    %c0_i32_0 = arith.constant 0 : i32
    %c0_i32_1 = arith.constant 0 : i32
    return %c0_i32, %c0_i32_0 : i32, i32
  }
  func.func @transform_3(%arg0: i32) -> (i32, i32) {
    %c0_i32 = arith.constant 0 : i32
    %c0_i32_0 = arith.constant 0 : i32
    %c0_i32_1 = arith.constant 0 : i32
    return %c0_i32, %c0_i32_0 : i32, i32
  }
  func.func @transform_4(%arg0: i32) -> (i32, i32) {
    %c0_i32 = arith.constant 0 : i32
    %c0_i32_0 = arith.constant 0 : i32
    %c0_i32_1 = arith.constant 0 : i32
    return %c0_i32, %c0_i32_0 : i32, i32
  }
  func.func @transform_5(%arg0: i32) -> (i32, i32) {
    %c0_i32 = arith.constant 0 : i32
    %c0_i32_0 = arith.constant 0 : i32
    %c0_i32_1 = arith.constant 0 : i32
    return %c0_i32, %c0_i32_0 : i32, i32
  }
  func.func @transform_6(%arg0: i32) -> (i32, i32) {
    %c0_i32 = arith.constant 0 : i32
    %c0_i32_0 = arith.constant 0 : i32
    %c0_i32_1 = arith.constant 0 : i32
    return %c0_i32, %c0_i32_0 : i32, i32
  }
  func.func @transform_7(%arg0: i32) -> (i32, i32) {
    %c0_i32 = arith.constant 0 : i32
    %c0_i32_0 = arith.constant 0 : i32
    %c0_i32_1 = arith.constant 0 : i32
    return %c0_i32, %c0_i32_0 : i32, i32
  }
  func.func @transform_8(%arg0: i32) -> (i32, i32) {
    %c0_i32 = arith.constant 0 : i32
    %c0_i32_0 = arith.constant 0 : i32
    return %arg0, %c0_i32 : i32, i32
  }
}

</mosaic_0001>

<bundles_post_ra>
// kernel: off_detector_forward.2
= control target key start
LH: loop header
LB: loop body
LE: loop exit
PB: predicated region body
PF: predicated region fallthrough
CT: control target
= control target key end

     0   :  { %v630_v0 = vmov 0.0   ;;  %s698_s30 = smov 0   ;;  %s810_s0 = inlined_call_operand.vmem [shape: bf16[16,64,27], index: 0, kind: input, shape index: {}]   ;;  %s811_s1 = inlined_call_operand.vmem [shape: bf16[27,256], index: 1, kind: input, shape index: {}]   ;;  %s812_s3 = inlined_call_operand.vmem [shape: bf16[16,256], index: 3, kind: output, shape index: {}]   ;;  %s813_s2 = inlined_call_operand.vmem [shape: f32[1,256], index: 2, kind: input, shape index: {}]  }
   0x1   :  { %20 = vst [vmem:[#allocation2] sm:$0xff] %v630_v0  ;;  %v656_v1 = vld [vmem:[%s811_s1 + $0x4] sm:$0xf]  ;;  %v661_v2 = vld [vmem:[%s811_s1] sm:$0xf] }
   0x2   :  { %21 = vst [vmem:[#allocation2 + $0x8] sm:$0xff] %v630_v0  ;;  %v666_v3 = vld [vmem:[%s811_s1 + $0x8] sm:$0xf0]  ;;  %v671_v4 = vld [vmem:[%s811_s1 + $0x4] sm:$0xf0] }
   0x3   :  { %22 = vst [vmem:[#allocation2 + $0x10] sm:$0xff] %v630_v0  ;;  %v676_v5 = vld [vmem:[%s811_s1 + $0x14] sm:$0xf]  ;;  %v681_v6 = vld [vmem:[%s811_s1 + $0x10] sm:$0xf] }
   0x4   :  { %23 = vst [vmem:[#allocation2 + $0x18] sm:$0xff] %v630_v0  ;;  %v686_v7 = vld [vmem:[%s811_s1 + $0x18] sm:$0x30]  ;;  %v691_v8 = vld [vmem:[%s811_s1 + $0x14] sm:$0x30] }
   0x5   :  { %v696_v9 = vld [vmem:[%s813_s2] sm:$0x3] }
   0x6 LB: > { %v518_v10 = vor.u32 %v691_v8, %v681_v6  ;;  %vm102_vm0 = vcmask 1044480   ;;  %vm103_vm1 = vcmask 1045504   ;;  %v631_v11 = vmov 65535   ;;  %s537_s1 = sshll.u32 %s628_s30, 5  ;;  %s438_s6 = sshra.s32 %s628_s30, 3  ;;  %s628_s30 = sphi %s698_s30, %s34_s30  }
   0x7   : > { %v104_v12 = vsel %vm102_vm0, 4294967295, %v631_v11  ;;  %v522_v13 = vor.u32 %v676_v5, %v686_v7  ;;  %v510_v17 = vor.u32 %v671_v4, %v661_v2  ;;  %s37_s5 = scalar_lea.vmem %s810_s0, %s537_s1  ;;  %v514_v18 = vor.u32 %v656_v1, %v666_v3  ;;  %s441_s7 = sand.u32 7, %s628_s30 }
   0x8   : > { %v105_v14 = vsel %vm103_vm1, %v104_v12, 0  ;;  %v538_v19 = vld [vmem:[%s37_s5] sm:$0xff]  ;;  %v540_v20 = vld [vmem:[%s37_s5 + $0x10] sm:$0xff]  ;;  %vm89_vm2 = vcmask 220160   ;;  %v539_v21 = vld [vmem:[%s37_s5 + $0x8] sm:$0xff]  ;;  %v716_v23 = vperm.slane %v696_v9, 0 }
   0x9   : > { %v107_v15 = vand.u32 %v518_v10, %v105_v14  ;;  %v110_v16 = vand.u32 %v522_v13, %v105_v14  ;;  %v541_v22 = vld [vmem:[%s37_s5 + $0x18] sm:$0xff]  ;;  %v719_v24 = vperm.slane %v696_v9, 1  ;;  %s542_s8 = sshll.u32 %s438_s6, 4  ;;  %vm450_vm3 = vcmask 1040384   ;;  %s34_s30 = sadd.s32 1, %s628_s30  }
   0xa   : > { %s444_s9 = sadd.s32 %s542_s8, %s441_s7  ;;  %p31_p0 = scmp.ge.s32.totalorder %s34_s30, 16  }
   0xb   : > { %118 = vmatpush.bf16.msra.mxu0 %v107_v15  ;;  %543 = vmatpush.bf16.msra.mxu2 %v107_v15  ;;  %s445_s10 = scalar_lea.vmem [#allocation2], %s444_s9 }
   0xc   : > { %147 = vmatpush.bf16.msra.mxu1 %v110_v16  ;;  %545 = vmatpush.bf16.msra.mxu3 %v110_v16 }
   0xf   : > { %119 = vmatpush.bf16.msra.mxu0 %v510_v17  ;;  %544 = vmatpush.bf16.msra.mxu2 %v510_v17 }
  0x10   : > { %148 = vmatpush.bf16.msra.mxu1 %v514_v18  ;;  %546 = vmatpush.bf16.msra.mxu3 %v514_v18 }
  0x12   : > { %523 = vmatmul.msk.bf16.vlgmr.msra.gmra.mxu0 %vm89_vm2, %v538_v19  ;;  %525 = vmatmul.msk.bf16.vlgmr.msra.gmra.mxu2 %vm89_vm2, %v540_v20 }
  0x13   : > { %527 = vmatmul.msk.bf16.vlgmr.msra.gmra.mxu1 %vm89_vm2, %v538_v19  ;;  %529 = vmatmul.msk.bf16.vlgmr.msra.gmra.mxu3 %vm89_vm2, %v540_v20 }
  0x22   : > { %524 = vmatmul.msk.bf16.gmra.mxu0 %vm89_vm2, %v539_v21  ;;  %526 = vmatmul.msk.bf16.gmra.mxu2 %vm89_vm2, %v541_v22 }
  0x23   : > { %528 = vmatmul.msk.bf16.gmra.mxu1 %vm89_vm2, %v539_v21  ;;  %530 = vmatmul.msk.bf16.gmra.mxu3 %vm89_vm2, %v541_v22 }
  0x8f   : > { %v121_v25 = vpop.f32.mrf.mxu0 }
  0x90   : > { %v122_v26 = vadd.f32 %v121_v25, %v716_v23  ;;  %v150_v27 = vpop.f32.mrf.mxu1 }
  0x91   : > { %v151_v28 = vadd.f32 %v150_v27, %v719_v24 }
  0x93   : > { %v723_v29 = vpack.c.bf16 %v151_v28, %v122_v26 }
  0x95   : > { %v178_v30 = vxor.u32 2147516416, %v723_v29  ;;  %v131_v31 = vpop.f32.mrf.mxu2 }
  0x96   : > { %v132_v32 = vadd.f32 %v131_v31, %v716_v23  ;;  %v160_v33 = vpop.f32.mrf.mxu3 }
  0x97   : > { %v186_v34 = vunpack.c.l.bf16 %v178_v30  ;;  %v187_v35 = vunpack.c.h.bf16 %v178_v30  ;;  %v161_v36 = vadd.f32 %v160_v33, %v719_v24  ;;  %v123_v37 = vpop.f32.mrf.mxu0 }
  0x98   : > { %v124_v38 = vadd.f32 %v123_v37, %v716_v23  ;;  %v152_v39 = vpop.f32.mrf.mxu1 }
  0x99   : > { %v202_v40 = vmul.f32 1.442695, %v186_v34  ;;  %v204_v41 = vmul.f32 1.442695, %v187_v35  ;;  %v729_v42 = vpack.c.bf16 %v161_v36, %v132_v32  ;;  %v153_v43 = vadd.f32 %v152_v39, %v719_v24 }
  0x9b   : > { %558 = vpow2.f32 %v202_v40  ;;  %v182_v44 = vxor.u32 2147516416, %v729_v42  ;;  %v733_v45 = vpack.c.bf16 %v153_v43, %v124_v38 }
  0x9c   : > { %560 = vpow2.f32 %v204_v41 }
  0x9d   : > { %v194_v46 = vunpack.c.l.bf16 %v182_v44  ;;  %v133_v47 = vpop.f32.mrf.mxu2  ;;  %v195_v48 = vunpack.c.h.bf16 %v182_v44  ;;  %v179_v49 = vxor.u32 2147516416, %v733_v45 }
  0x9e   : > { %v134_v50 = vadd.f32 %v133_v47, %v716_v23  ;;  %v162_v51 = vpop.f32.mrf.mxu3 }
  0x9f   : > { %v218_v52 = vmul.f32 1.442695, %v194_v46  ;;  %v163_v53 = vadd.f32 %v162_v51, %v719_v24  ;;  %v126_v54 = vpop.f32.mrf.mxu0  ;;  %v188_v55 = vunpack.c.l.bf16 %v179_v49  ;;  %v189_v56 = vunpack.c.h.bf16 %v179_v49 }
  0xa0   : > { %v127_v57 = vadd.f32 %v126_v54, %v716_v23  ;;  %v155_v58 = vpop.f32.mrf.mxu1  ;;  %v220_v63 = vmul.f32 1.442695, %v195_v48 }
  0xa1   : > { %v559_v59 = vpop.eup %558  ;;  %v739_v60 = vpack.c.bf16 %v163_v53, %v134_v50  ;;  %v156_v61 = vadd.f32 %v155_v58, %v719_v24  ;;  %v206_v0 = vmul.f32 1.442695, %v188_v55  ;;  %v208_v10 = vmul.f32 1.442695, %v189_v56 }
  0xa2   : > { %v561_v62 = vpop.eup %560  ;;  %562 = vpow2.f32 %v218_v52 }
  0xa3   : > { %v183_v11 = vxor.u32 2147516416, %v739_v60  ;;  %564 = vpow2.f32 %v206_v0  ;;  %v743_v12 = vpack.c.bf16 %v156_v61, %v127_v57  ;;  %v234_v13 = vpack.c.bf16 %v561_v62, %v559_v59 }
  0xa4   : > { %566 = vpow2.f32 %v208_v10 }
  0xa5   : > { %v196_v14 = vunpack.c.l.bf16 %v183_v11  ;;  %v136_v15 = vpop.f32.mrf.mxu2  ;;  %568 = vpow2.f32 %v220_v63  ;;  %v197_v16 = vunpack.c.h.bf16 %v183_v11  ;;  %v180_v17 = vxor.u32 2147516416, %v743_v12 }
  0xa6   : > { %v165_v18 = vpop.f32.mrf.mxu3  ;;  %v137_v20 = vadd.f32 %v136_v15, %v716_v23  ;;  %v242_v28 = vunpack.c.l.bf16 %v234_v13  ;;  %v243_v30 = vunpack.c.h.bf16 %v234_v13 }
  0xa7   : > { %v222_v19 = vmul.f32 1.442695, %v196_v14  ;;  %v224_v21 = vmul.f32 1.442695, %v197_v16  ;;  %v190_v22 = vunpack.c.l.bf16 %v180_v17  ;;  %v191_v25 = vunpack.c.h.bf16 %v180_v17  ;;  %v128_v36 = vpop.f32.mrf.mxu0 }
  0xa8   : > { %v166_v26 = vadd.f32 %v165_v18, %v719_v24  ;;  %v563_v27 = vpop.eup %562  ;;  %v157_v40 = vpop.f32.mrf.mxu1  ;;  %v258_v41 = vadd.f32 1.0, %v242_v28  ;;  %v259_v43 = vadd.f32 1.0, %v243_v30  ;;  %v129_v48 = vadd.f32 %v128_v36, %v716_v23 }
  0xa9   : > { %570 = vpow2.f32 %v222_v19  ;;  %v565_v31 = vpop.eup %564  ;;  %v210_v32 = vmul.f32 1.442695, %v190_v22  ;;  %v212_v35 = vmul.f32 1.442695, %v191_v25  ;;  %v158_v52 = vadd.f32 %v157_v40, %v719_v24 }
  0xaa   : > { %572 = vpow2.f32 %v224_v21  ;;  %v748_v33 = vpack.c.bf16 %v166_v26, %v137_v20  ;;  %v567_v34 = vpop.eup %566  ;;  %v274_v54 = vpack.c.bf16 %v259_v43, %v258_v41 }
  0xab   : > { %v569_v37 = vpop.eup %568  ;;  %v235_v38 = vpack.c.bf16 %v567_v34, %v565_v31  ;;  %574 = vpow2.f32 %v210_v32  ;;  %v753_v59 = vpack.c.bf16 %v158_v52, %v129_v48 }
  0xac   : > { %v184_v39 = vxor.u32 2147516416, %v748_v33  ;;  %v238_v50 = vpack.c.bf16 %v569_v37, %v563_v27  ;;  %576 = vpow2.f32 %v212_v35  ;;  %v284_v11 = vunpack.c.h.bf16 %v274_v54 }
  0xad   : > { %v244_v44 = vunpack.c.l.bf16 %v235_v38  ;;  %v245_v46 = vunpack.c.h.bf16 %v235_v38  ;;  %v181_v17 = vxor.u32 2147516416, %v753_v59  ;;  %v138_v18 = vpop.f32.mrf.mxu2  ;;  %v285_v20 = vunpack.c.l.bf16 %v274_v54 }
  0xae   : > { %v198_v47 = vunpack.c.l.bf16 %v184_v39  ;;  %v199_v51 = vunpack.c.h.bf16 %v184_v39  ;;  %v250_v62 = vunpack.c.l.bf16 %v238_v50  ;;  %v251_v63 = vunpack.c.h.bf16 %v238_v50  ;;  %v167_v19 = vpop.f32.mrf.mxu3 }
  0xaf   : > { %v571_v49 = vpop.eup %570  ;;  %v260_v55 = vadd.f32 1.0, %v244_v44  ;;  %v261_v56 = vadd.f32 1.0, %v245_v46  ;;  %v192_v27 = vunpack.c.l.bf16 %v181_v17  ;;  %v193_v28 = vunpack.c.h.bf16 %v181_v17 }
  0xb0   : > { %v573_v53 = vpop.eup %572  ;;  %v226_v57 = vmul.f32 1.442695, %v198_v47  ;;  %v228_v0 = vmul.f32 1.442695, %v199_v51  ;;  %v266_v21 = vadd.f32 1.0, %v250_v62  ;;  %v267_v22 = vadd.f32 1.0, %v251_v63 }
  0xb1   : > { %v239_v58 = vpack.c.bf16 %v573_v53, %v571_v49  ;;  %v575_v61 = vpop.eup %574  ;;  %v275_v13 = vpack.c.bf16 %v261_v56, %v260_v55  ;;  %v139_v30 = vadd.f32 %v138_v18, %v716_v23  ;;  %v168_v31 = vadd.f32 %v167_v19, %v719_v24 }
  0xb2   : > { %v577_v10 = vpop.eup %576  ;;  %578 = vpow2.f32 %v226_v57  ;;  %v214_v36 = vmul.f32 1.442695, %v192_v27  ;;  %v278_v38 = vpack.c.bf16 %v267_v22, %v266_v21  ;;  %v216_v43 = vmul.f32 1.442695, %v193_v28 }
  0xb3   : > { %v252_v14 = vunpack.c.l.bf16 %v239_v58  ;;  %v253_v15 = vunpack.c.h.bf16 %v239_v58  ;;  %v236_v16 = vpack.c.bf16 %v577_v10, %v575_v61  ;;  %580 = vpow2.f32 %v228_v0 }
  0xb4   : > { %582 = vrcp.f32 %v284_v11  ;;  %v291_v32 = vunpack.c.h.bf16 %v275_v13  ;;  %v292_v39 = vunpack.c.l.bf16 %v275_v13  ;;  %v758_v46 = vpack.c.bf16 %v168_v31, %v139_v30 }
  0xb5   : > { %v246_v25 = vunpack.c.l.bf16 %v236_v16  ;;  %v247_v26 = vunpack.c.h.bf16 %v236_v16  ;;  %v268_v34 = vadd.f32 1.0, %v252_v14  ;;  %v269_v35 = vadd.f32 1.0, %v253_v15 }
  0xb6   : > { %584 = vrcp.f32 %v285_v20  ;;  %v312_v24 = vunpack.c.h.bf16 %v278_v38  ;;  %v185_v49 = vxor.u32 2147516416, %v758_v46  ;;  %v313_v51 = vunpack.c.l.bf16 %v278_v38 }
  0xb7   : > { %v262_v40 = vadd.f32 1.0, %v246_v25  ;;  %v263_v41 = vadd.f32 1.0, %v247_v26  ;;  %586 = vpow2.f32 %v214_v36  ;;  %v279_v47 = vpack.c.bf16 %v269_v35, %v268_v34 }
  0xb8   : > { %v579_v37 = vpop.eup %578  ;;  %588 = vrcp.f32 %v291_v32  ;;  %v200_v54 = vunpack.c.l.bf16 %v185_v49  ;;  %v201_v57 = vunpack.c.h.bf16 %v185_v49  ;;  %v632_v61 = vmov 1065369472  }
  0xb9   : > { %v581_v44 = vpop.eup %580  ;;  %590 = vpow2.f32 %v216_v43  ;;  %v276_v48 = vpack.c.bf16 %v263_v41, %v262_v40  ;;  %v319_v53 = vunpack.c.h.bf16 %v279_v47  ;;  %v320_v56 = vunpack.c.l.bf16 %v279_v47 }
  0xba   : > { %v583_v23 = vpop.eup %582  ;;  %592 = vrcp.f32 %v292_v39  ;;  %v240_v52 = vpack.c.bf16 %v581_v44, %v579_v37  ;;  %v761_v62 = vunpack.c.h.bf16 %v632_v61  ;;  %v763_v63 = vunpack.c.l.bf16 %v632_v61 }
  0xbb   : > { %594 = vrcp.f32 %v312_v24  ;;  %v298_v0 = vunpack.c.h.bf16 %v276_v48  ;;  %v230_v14 = vmul.f32 1.442695, %v200_v54  ;;  %v299_v16 = vunpack.c.l.bf16 %v276_v48 }
  0xbc   : > { %v585_v50 = vpop.eup %584  ;;  %596 = vrcp.f32 %v313_v51  ;;  %v254_v11 = vunpack.c.l.bf16 %v240_v52  ;;  %v255_v13 = vunpack.c.h.bf16 %v240_v52  ;;  %v232_v18 = vmul.f32 1.442695, %v201_v57 }
  0xbd   : > { %v587_v55 = vpop.eup %586  ;;  %598 = vrcp.f32 %v319_v53  ;;  %v287_v19 = vmul.f32 %v583_v23, %v761_v62  ;;  %v289_v20 = vmul.f32 %v585_v50, %v763_v63  ;;  %v340_v44 = vunpack.c.l.bf16 %v723_v29 }
  0xbe   : > { %v589_v58 = vpop.eup %588  ;;  %600 = vrcp.f32 %v320_v56  ;;  %v270_v25 = vadd.f32 1.0, %v254_v11  ;;  %v271_v26 = vadd.f32 1.0, %v255_v13  ;;  %v341_v47 = vunpack.c.h.bf16 %v723_v29 }
  0xbf   : > { %v591_v10 = vpop.eup %590  ;;  %v294_v21 = vmul.f32 %v589_v58, %v761_v62  ;;  %602 = vrcp.f32 %v298_v0  ;;  %v290_v34 = vpack.c.bf16 %v287_v19, %v289_v20  ;;  %v348_v23 = vunpack.c.l.bf16 %v729_v42 }
  0xc0   : > { %v593_v15 = vpop.eup %592  ;;  %v237_v17 = vpack.c.bf16 %v591_v10, %v587_v55  ;;  %604 = vpow2.f32 %v230_v14  ;;  %v280_v39 = vpack.c.bf16 %v271_v26, %v270_v25  ;;  %v342_v24 = vunpack.c.l.bf16 %v733_v45 }
  0xc1   : > { %v296_v22 = vmul.f32 %v593_v15, %v763_v63  ;;  %v595_v27 = vpop.eup %594  ;;  %606 = vrcp.f32 %v299_v16  ;;  %v356_v49 = vunpack.c.l.bf16 %v290_v34  ;;  %v357_v50 = vunpack.c.h.bf16 %v290_v34 }
  0xc2   : > { %v248_v28 = vunpack.c.l.bf16 %v237_v17  ;;  %v249_v30 = vunpack.c.h.bf16 %v237_v17  ;;  %v597_v31 = vpop.eup %596  ;;  %608 = vpow2.f32 %v232_v18  ;;  %v343_v51 = vunpack.c.h.bf16 %v733_v45 }
  0xc3   : > { %v599_v32 = vpop.eup %598  ;;  %v297_v38 = vpack.c.bf16 %v294_v21, %v296_v22  ;;  %v326_v56 = vunpack.c.h.bf16 %v280_v39  ;;  %v315_v58 = vmul.f32 %v595_v27, %v761_v62  ;;  %v327_v61 = vunpack.c.l.bf16 %v280_v39 }
  0xc4   : > { %v264_v35 = vadd.f32 1.0, %v248_v28  ;;  %v265_v36 = vadd.f32 1.0, %v249_v30  ;;  %v601_v37 = vpop.eup %600  ;;  %v317_v0 = vmul.f32 %v597_v31, %v763_v63  ;;  %v322_v10 = vmul.f32 %v599_v32, %v761_v62 }
  0xc5   : > { %v603_v40 = vpop.eup %602  ;;  %v358_v54 = vunpack.c.l.bf16 %v297_v38  ;;  %v359_v55 = vunpack.c.h.bf16 %v297_v38  ;;  %v324_v11 = vmul.f32 %v601_v37, %v763_v63  ;;  %v349_v16 = vunpack.c.h.bf16 %v729_v42 }
  0xc6   : > { %v277_v41 = vpack.c.bf16 %v265_v36, %v264_v35  ;;  %v605_v43 = vpop.eup %604  ;;  %v301_v45 = vmul.f32 %v603_v40, %v761_v62  ;;  %v350_v19 = vunpack.c.l.bf16 %v739_v60  ;;  %v372_v22 = vmul.f32 %v356_v49, %v340_v44 }
  0xc7   : > { %v607_v48 = vpop.eup %606  ;;  %v374_v17 = vmul.f32 %v358_v54, %v342_v24  ;;  %v375_v18 = vmul.f32 %v359_v55, %v343_v51  ;;  %v373_v25 = vmul.f32 %v357_v50, %v341_v47  ;;  %v318_v26 = vpack.c.bf16 %v315_v58, %v317_v0 }
  0xc8   : > { %v305_v52 = vunpack.c.h.bf16 %v277_v41  ;;  %v609_v53 = vpop.eup %608  ;;  %v306_v57 = vunpack.c.l.bf16 %v277_v41  ;;  %v303_v13 = vmul.f32 %v607_v48, %v763_v63  ;;  %v325_v27 = vpack.c.bf16 %v322_v10, %v324_v11 }
  0xc9   : > { %v241_v29 = vpack.c.bf16 %v609_v53, %v605_v43  ;;  %v351_v30 = vunpack.c.h.bf16 %v739_v60  ;;  %v344_v32 = vunpack.c.l.bf16 %v743_v12  ;;  %v388_v36 = vpack.c.bf16 %v374_v17, %v372_v22 }
  0xca   : > { %610 = vrcp.f32 %v305_v52  ;;  %v304_v31 = vpack.c.bf16 %v301_v45, %v303_v13  ;;  %v389_v37 = vpack.c.bf16 %v375_v18, %v373_v25  ;;  %v345_v38 = vunpack.c.h.bf16 %v743_v12 }
  0xcb   : > { %612 = vrcp.f32 %v306_v57  ;;  %v256_v14 = vunpack.c.l.bf16 %v241_v29  ;;  %v257_v15 = vunpack.c.h.bf16 %v241_v29  ;;  %v346_v41 = vunpack.c.l.bf16 %v753_v59 }
  0xcc   : > { %614 = vrcp.f32 %v326_v56  ;;  %v364_v24 = vunpack.c.l.bf16 %v318_v26  ;;  %v366_v60 = vunpack.c.l.bf16 %v325_v27  ;;  %v367_v48 = vunpack.c.h.bf16 %v325_v27 }
  0xcd   : > { %616 = vrcp.f32 %v327_v61  ;;  %v272_v20 = vadd.f32 1.0, %v256_v14  ;;  %v273_v21 = vadd.f32 1.0, %v257_v15  ;;  %v347_v49 = vunpack.c.h.bf16 %v753_v59 }
  0xce   : > { %v360_v51 = vunpack.c.l.bf16 %v304_v31  ;;  %v361_v52 = vunpack.c.h.bf16 %v304_v31  ;;  %v365_v12 = vunpack.c.h.bf16 %v318_v26  ;;  %v396_v54 = vunpack.c.l.bf16 %v388_v36 }
  0xcf   : > { %v281_v34 = vpack.c.bf16 %v273_v21, %v272_v20  ;;  %v397_v55 = vunpack.c.l.bf16 %v389_v37  ;;  %v398_v56 = vunpack.c.h.bf16 %v388_v36  ;;  %v399_v57 = vunpack.c.h.bf16 %v389_v37 }
  0xd0   : > { %v611_v28 = vpop.eup %610  ;;  %v382_v29 = vmul.f32 %v366_v60, %v350_v19  ;;  %v383_v0 = vmul.f32 %v367_v48, %v351_v30  ;;  %v376_v59 = vmul.f32 %v360_v51, %v344_v32  ;;  %v377_v45 = vmul.f32 %v361_v52, %v345_v38 }
  0xd1   : > { %v613_v35 = vpop.eup %612  ;;  %v308_v39 = vmul.f32 %v611_v28, %v761_v62  ;;  %v333_v43 = vunpack.c.h.bf16 %v281_v34  ;;  %v334_v44 = vunpack.c.l.bf16 %v281_v34  ;;  %v380_v17 = vmul.f32 %v364_v24, %v348_v23 }
  0xd2   : > { %v310_v40 = vmul.f32 %v613_v35, %v763_v63  ;;  %v615_v47 = vpop.eup %614  ;;  %v381_v18 = vmul.f32 %v365_v12, %v349_v16  ;;  %v412_v25 = vadd.f32 %v398_v56, %v396_v54  ;;  %v425_v26 = vadd.f32 %v399_v57, %v397_v55 }
  0xd3   : > { %v617_v50 = vpop.eup %616  ;;  %618 = vrcp.f32 %v333_v43  ;;  %v329_v10 = vmul.f32 %v615_v47, %v761_v62  ;;  %v392_v28 = vpack.c.bf16 %v382_v29, %v380_v17  ;;  %v352_v34 = vunpack.c.l.bf16 %v748_v33 }
  0xd4   : > { %v311_v53 = vpack.c.bf16 %v308_v39, %v310_v40  ;;  %620 = vrcp.f32 %v334_v44  ;;  %v331_v11 = vmul.f32 %v617_v50, %v763_v63  ;;  %v393_v30 = vpack.c.bf16 %v383_v0, %v381_v18 }
  0xd5   : > { %v353_v37 = vunpack.c.h.bf16 %v748_v33  ;;  %v354_v47 = vunpack.c.l.bf16 %v758_v46  ;;  %v355_v24 = vunpack.c.h.bf16 %v758_v46 }
  0xd6   : > { %v362_v58 = vunpack.c.l.bf16 %v311_v53  ;;  %v363_v61 = vunpack.c.h.bf16 %v311_v53  ;;  %v332_v19 = vpack.c.bf16 %v329_v10, %v331_v11  ;;  %v405_v43 = vunpack.c.l.bf16 %v393_v30 }
  0xd8   : > { %v378_v13 = vmul.f32 %v362_v58, %v346_v41  ;;  %v379_v14 = vmul.f32 %v363_v61, %v347_v49  ;;  %v368_v38 = vunpack.c.l.bf16 %v332_v19  ;;  %v369_v39 = vunpack.c.h.bf16 %v332_v19 }
  0xd9   : > { %v619_v15 = vpop.eup %618  ;;  %v404_v41 = vunpack.c.l.bf16 %v392_v28  ;;  %v407_v49 = vunpack.c.h.bf16 %v393_v30  ;;  %v454_v19 = vlaneseq }
  0xda   : > { %v390_v20 = vpack.c.bf16 %v378_v13, %v376_v59  ;;  %v391_v21 = vpack.c.bf16 %v379_v14, %v377_v45  ;;  %v621_v22 = vpop.eup %620  ;;  %v336_v27 = vmul.f32 %v619_v15, %v761_v62  ;;  %v384_v52 = vmul.f32 %v368_v38, %v352_v34 }
  0xdb   : > { %v338_v35 = vmul.f32 %v621_v22, %v763_v63  ;;  %v406_v63 = vunpack.c.h.bf16 %v392_v28  ;;  %v385_v33 = vmul.f32 %v369_v39, %v353_v37  ;;  %v446_v28 = vld [vmem:[%s445_s10] ss:$8 sm:$0x3]  ;;  %vm456_vm4 = vcmp.lt.s32.totalorder %v454_v19, 256 }
  0xdc   : > { %v400_v31 = vunpack.c.l.bf16 %v390_v20  ;;  %v401_v32 = vunpack.c.l.bf16 %v391_v21  ;;  %v402_v36 = vunpack.c.h.bf16 %v390_v20  ;;  %v403_v42 = vunpack.c.h.bf16 %v391_v21 }
  0xdd   : > { %v339_v40 = vpack.c.bf16 %v336_v27, %v338_v35 }
  0xde   : > { %v413_v23 = vadd.f32 %v412_v25, %v400_v31  ;;  %v426_v16 = vadd.f32 %v425_v26, %v401_v32 }
  0xdf   : > { %v370_v60 = vunpack.c.l.bf16 %v339_v40  ;;  %v371_v48 = vunpack.c.h.bf16 %v339_v40 }
  0xe0   : > { %v414_v62 = vadd.f32 %v413_v23, %v402_v36  ;;  %v427_v44 = vadd.f32 %v426_v16, %v403_v42 }
  0xe1   : > { %v386_v53 = vmul.f32 %v370_v60, %v354_v47  ;;  %v387_v12 = vmul.f32 %v371_v48, %v355_v24 }
  0xe2   : > { %v415_v50 = vadd.f32 %v414_v62, %v404_v41  ;;  %v428_v51 = vadd.f32 %v427_v44, %v405_v43 }
  0xe3   : > { %v394_v54 = vpack.c.bf16 %v386_v53, %v384_v52  ;;  %v395_v55 = vpack.c.bf16 %v387_v12, %v385_v33 }
  0xe4   : > { %v416_v56 = vadd.f32 %v415_v50, %v406_v63  ;;  %v429_v57 = vadd.f32 %v428_v51, %v407_v49 }
  0xe5   : > { %v408_v58 = vunpack.c.l.bf16 %v394_v54  ;;  %v409_v61 = vunpack.c.l.bf16 %v395_v55  ;;  %v410_v29 = vunpack.c.h.bf16 %v394_v54  ;;  %v411_v46 = vunpack.c.h.bf16 %v395_v55 }
  0xe7   : > { %v417_v0 = vadd.f32 %v416_v56, %v408_v58  ;;  %v430_v10 = vadd.f32 %v429_v57, %v409_v61 }
  0xe9   : > { %v418_v11 = vadd.f32 %v417_v0, %v410_v29  ;;  %v431_v59 = vadd.f32 %v430_v10, %v411_v46 }
  0xeb   : > { %v419_v45 = vrot.slane %v418_v11, 4  ;;  %v432_v13 = vrot.slane %v431_v59, 4 }
  0xed   : > { %v420_v14 = vadd.f32 %v419_v45, %v418_v11  ;;  %v433_v15 = vadd.f32 %v432_v13, %v431_v59 }
  0xef   : > { %v421_v17 = vrot.slane %v420_v14, 2  ;;  %v434_v18 = vrot.slane %v433_v15, 2 }
  0xf1   : > { %v422_v20 = vadd.f32 %v421_v17, %v420_v14  ;;  %v435_v21 = vadd.f32 %v434_v18, %v433_v15 }
  0xf3   : > { %v423_v22 = vrot.slane %v422_v20, 1  ;;  %v436_v25 = vrot.slane %v435_v21, 1 }
  0xf5   : > { %v437_v26 = vadd.f32 %v436_v25, %v435_v21  ;;  %v424_v27 = vadd.f32 %v423_v22, %v422_v20 }
  0xf7   : > { %v449_v30 = vrot.slane %v437_v26, 7 }
  0xf8   :  { %33 = sbr.rel (!%p31_p0) target bundleno = 6 (0x6), region = 49 }
  0xf9   : > { %v451_v31 = vsel %vm450_vm3, %v424_v27, %v449_v30 }
  0xfa   : > { %v453_v32 = vadd.f32 %v451_v31, %v446_v28 }
  0xfc   : > { %458 = vst.msk [vmem:[%s445_s10] ss:$8 sm:$0x3] %vm456_vm4, %v453_v32 }
 0x103   :  { %v463_v34 = vld [vmem:[#allocation2] sm:$0xff]  ;;  %v464_v35 = vld [vmem:[#allocation2 + $0x8] sm:$0xff]  ;;  %v465_v36 = vld [vmem:[#allocation2 + $0x10] sm:$0xff] }
 0x104   :  { %v467_v42 = vmul.f32 0.015625, %v463_v34  ;;  %v468_v23 = vmul.f32 0.015625, %v464_v35  ;;  %v466_v16 = vld [vmem:[#allocation2 + $0x18] sm:$0xff]  ;;  %v469_v37 = vmul.f32 0.015625, %v465_v36 }
 0x105   :  { %v470_v38 = vmul.f32 0.015625, %v466_v16 }
 0x106   :  { %v471_v39 = vpack.c.bf16 %v468_v23, %v467_v42 }
 0x107   :  { %v472_v40 = vpack.c.bf16 %v470_v38, %v469_v37 }
 0x108   :  { %473 = vst [vmem:[%s812_s3] sm:$0xff] %v471_v39 }
 0x109   :  { %474 = vst [vmem:[%s812_s3 + $0x8] sm:$0xff] %v472_v40 }

// kernel: squeeze.1
= control target key start
LH: loop header
LB: loop body
LE: loop exit
PB: predicated region body
PF: predicated region fallthrough
CT: control target
= control target key end

     0   :  { %vm7_vm0 = vcmask 15360   ;;  %s39_s0 = inlined_call_operand.vmem [shape: f32[4], index: 0, kind: input, shape index: {}]   ;;  %s40_s1 = inlined_call_operand.vmem [shape: f32[2,2], index: 1, kind: output, shape index: {}]  }
   0x1   :  { %v4_v0 = vld [vmem:[%s39_s0] sm:$0x1]  ;;  %s22_s0 = smov 126  }
   0x2   :  { %5 = vst [vmem:[#allocation1] sm:$0x1] %v4_v0 }
   0x9   :  { %v9_v1 = vld [vmem:[#allocation1] sm:$0x1]  }
   0xa   :  { %v6_v2 = vld [vmem:[#allocation1] sm:$0x1]   ;;  %10 = vrot.lane.b32.xlu0 %v9_v1, %s22_s0 }
   0xb   :  { %8 = vst.msk [vmem:[#allocation0] sm:$0x1] %vm7_vm0, %v6_v2  }
  0x7c   :  { %v11_v3 = vpop.permute.xlu0 %10  }
  0x7d   :  { %14 = vst.msk [vmem:[#allocation0 + $0x1] sm:$0x1] %vm7_vm0, %v11_v3  }
  0x84   :  { %v17_v4 = vld [vmem:[#allocation0] sm:$0x3] }
  0x85   :  { %20 = vst [vmem:[%s40_s1] sm:$0x3] %v17_v4 }

// kernel: off_detector_forward.3
= control target key start
LH: loop header
LB: loop body
LE: loop exit
PB: predicated region body
PF: predicated region fallthrough
CT: control target
= control target key end

     0   :  { %s6173_s1 = inlined_call_operand.vmem [shape: bf16[256,1024], index: 1, kind: input, shape index: {}]   ;;  %s6174_s2 = inlined_call_operand.vmem [shape: bf16[256,1024], index: 2, kind: input, shape index: {}]   ;;  %s6175_s4 = inlined_call_operand.vmem [shape: bf16[256,256], index: 4, kind: input, shape index: {}]   ;;  %s6176_s5 = inlined_call_operand.vmem [shape: f32[1,256], index: 5, kind: input, shape index: {}]   ;;  %s6177_s6 = inlined_call_operand.vmem [shape: f32[1,256], index: 6, kind: input, shape index: {}]   ;;  %s6178_s7 = inlined_call_operand.<no memory space> [shape: f32[1,1], index: 7, kind: input, shape index: {}]   ;;  %s6179_s8 = inlined_call_operand.vmem [shape: f32[8,1], index: 8, kind: output, shape index: {}]   ;;  %s6180_s0 = inlined_call_operand.vmem [shape: bf16[3,8,256], index: 0, kind: input, shape index: {}]   ;;  %s6181_s3 = inlined_call_operand.vmem [shape: f32[1,1024], index: 3, kind: input, shape index: {}]  }
   0x1   :  { %v13_v0 = vstv %s6178_s7  ;;  %v2814_v1 = vld [vmem:[%s6173_s1 + $0x1c0] sm:$0xf]  ;;  %v3807_v6 = vld [vmem:[%s6173_s1 + $0x1c4] sm:$0xf] }
   0x2   :  { %v3811_v2 = vld [vmem:[%s6173_s1 + $0x1dc] sm:$0xf0]  ;;  %14 = vst [vmem:[#allocation3] sm:$0x1] %v13_v0  ;;  %v2816_v8 = vld [vmem:[%s6173_s1 + $0x1e0] sm:$0xf0] }
   0x3   :  { %v3070_v3 = vld [vmem:[%s6173_s1 + $0x3c0] sm:$0xf]  ;;  %v2815_v4 = vor.u32 %v3811_v2, %v2814_v1  ;;  %v3871_v9 = vld [vmem:[%s6173_s1 + $0x3c4] sm:$0xf]  ;;  %v2819_v11 = vor.u32 %v3807_v6, %v2816_v8 }
   0x4   :  { %v3875_v5 = vld [vmem:[%s6173_s1 + $0x3dc] sm:$0xf0]  ;;  %v3072_v10 = vld [vmem:[%s6173_s1 + $0x3e0] sm:$0xf0] }
   0x5   :  { %v3071_v7 = vor.u32 %v3875_v5, %v3070_v3  ;;  %837 = vmatpush.bf16.msra.mxu0 %v2815_v4  ;;  %v3075_v12 = vor.u32 %v3871_v9, %v3072_v10  ;;  %v2782_v13 = vld [vmem:[%s6173_s1 + $0x180] sm:$0xf]  ;;  %v3799_v18 = vld [vmem:[%s6173_s1 + $0x184] sm:$0xf]  ;;  %873 = vmatpush.bf16.msra.mxu2 %v2819_v11 }
   0x6   :  { %v3803_v14 = vld [vmem:[%s6173_s1 + $0x19c] sm:$0xf0]  ;;  %v2784_v19 = vld [vmem:[%s6173_s1 + $0x1a0] sm:$0xf0] }
   0x7   :  { %v3038_v15 = vld [vmem:[%s6173_s1 + $0x380] sm:$0xf]  ;;  %855 = vmatpush.bf16.msra.mxu1 %v3071_v7  ;;  %v2783_v16 = vor.u32 %v3803_v14, %v2782_v13  ;;  %891 = vmatpush.bf16.msra.mxu3 %v3075_v12  ;;  %v2787_v21 = vor.u32 %v3799_v18, %v2784_v19  ;;  %v3863_v22 = vld [vmem:[%s6173_s1 + $0x384] sm:$0xf] }
   0x8   :  { %v3867_v17 = vld [vmem:[%s6173_s1 + $0x39c] sm:$0xf0]  ;;  %v3040_v23 = vld [vmem:[%s6173_s1 + $0x3a0] sm:$0xf0] }
   0x9   :  { %v3039_v20 = vor.u32 %v3867_v17, %v3038_v15  ;;  %v2750_v24 = vld [vmem:[%s6173_s1 + $0x140] sm:$0xf]  ;;  %v3043_v25 = vor.u32 %v3863_v22, %v3040_v23  ;;  %838 = vmatpush.bf16.msra.mxu0 %v2783_v16  ;;  %v3791_v30 = vld [vmem:[%s6173_s1 + $0x144] sm:$0xf]  ;;  %874 = vmatpush.bf16.msra.mxu2 %v2787_v21 }
   0xa   :  { %v3795_v26 = vld [vmem:[%s6173_s1 + $0x15c] sm:$0xf0]  ;;  %v2752_v31 = vld [vmem:[%s6173_s1 + $0x160] sm:$0xf0] }
   0xb   :  { %v3006_v27 = vld [vmem:[%s6173_s1 + $0x340] sm:$0xf]  ;;  %v2751_v29 = vor.u32 %v3795_v26, %v2750_v24  ;;  %v3855_v32 = vld [vmem:[%s6173_s1 + $0x344] sm:$0xf]  ;;  %856 = vmatpush.bf16.msra.mxu1 %v3039_v20  ;;  %892 = vmatpush.bf16.msra.mxu3 %v3043_v25  ;;  %v2755_v37 = vor.u32 %v3791_v30, %v2752_v31 }
   0xc   :  { %v3859_v28 = vld [vmem:[%s6173_s1 + $0x35c] sm:$0xf0]  ;;  %v3008_v34 = vld [vmem:[%s6173_s1 + $0x360] sm:$0xf0] }
   0xd   :  { %v3007_v33 = vor.u32 %v3859_v28, %v3006_v27  ;;  %v2718_v35 = vld [vmem:[%s6173_s1 + $0x100] sm:$0xf]  ;;  %v3011_v38 = vor.u32 %v3855_v32, %v3008_v34  ;;  %v3783_v41 = vld [vmem:[%s6173_s1 + $0x104] sm:$0xf]  ;;  %839 = vmatpush.bf16.msra.mxu0 %v2751_v29  ;;  %875 = vmatpush.bf16.msra.mxu2 %v2755_v37  ;;  %v2822_v28 = vld [vmem:[%s6173_s1 + $0x1c8] sm:$0xf] }
   0xe   :  { %v3787_v36 = vld [vmem:[%s6173_s1 + $0x11c] sm:$0xf0]  ;;  %v2720_v42 = vld [vmem:[%s6173_s1 + $0x120] sm:$0xf0]  ;;  %v3812_v29 = vld [vmem:[%s6173_s1 + $0x1e4] sm:$0xf0] }
   0xf   :  { %v2974_v39 = vld [vmem:[%s6173_s1 + $0x300] sm:$0xf]  ;;  %v3847_v43 = vld [vmem:[%s6173_s1 + $0x304] sm:$0xf]  ;;  %v2719_v45 = vor.u32 %v3787_v36, %v2718_v35  ;;  %857 = vmatpush.bf16.msra.mxu1 %v3007_v33  ;;  %893 = vmatpush.bf16.msra.mxu3 %v3011_v38  ;;  %v2723_v49 = vor.u32 %v3783_v41, %v2720_v42  ;;  %v3750_v32 = vld [vmem:[%s6180_s0 + $0x4] sm:$0xf0]  ;;  %v2823_v41 = vor.u32 %v3812_v29, %v2822_v28 }
  0x10   :  { %v3851_v40 = vld [vmem:[%s6173_s1 + $0x31c] sm:$0xf0]  ;;  %v2976_v44 = vld [vmem:[%s6173_s1 + $0x320] sm:$0xf0]  ;;  %v3808_v35 = vld [vmem:[%s6173_s1 + $0x1cc] sm:$0xf] }
  0x11   :  { %v2975_v46 = vor.u32 %v3851_v40, %v2974_v39  ;;  %v2686_v47 = vld [vmem:[%s6173_s1 + $0xc0] sm:$0xf]  ;;  %v2979_v50 = vor.u32 %v3847_v43, %v2976_v44  ;;  %v3775_v53 = vld [vmem:[%s6173_s1 + $0xc4] sm:$0xf]  ;;  %840 = vmatpush.bf16.msra.mxu0 %v2719_v45  ;;  %876 = vmatpush.bf16.msra.mxu2 %v2723_v49  ;;  %v2824_v36 = vld [vmem:[%s6173_s1 + $0x1e8] sm:$0xf0] }
  0x12   :  { %v3779_v48 = vld [vmem:[%s6173_s1 + $0xdc] sm:$0xf0]  ;;  %v2688_v54 = vld [vmem:[%s6173_s1 + $0xe0] sm:$0xf0]  ;;  %v2584_v38 = vld [vmem:[%s6180_s0 + $0x8] sm:$0xf0] }
  0x13   :  { %v2942_v51 = vld [vmem:[%s6173_s1 + $0x2c0] sm:$0xf]  ;;  %v3839_v55 = vld [vmem:[%s6173_s1 + $0x2c4] sm:$0xf]  ;;  %v2687_v57 = vor.u32 %v3779_v48, %v2686_v47  ;;  %858 = vmatpush.bf16.msra.mxu1 %v2975_v46  ;;  %894 = vmatpush.bf16.msra.mxu3 %v2979_v50  ;;  %v2691_v61 = vor.u32 %v3775_v53, %v2688_v54  ;;  %v3872_v39 = vld [vmem:[%s6173_s1 + $0x3cc] sm:$0xf]  ;;  %v2827_v46 = vor.u32 %v3808_v35, %v2824_v36 }
  0x14   :  { %v3843_v52 = vld [vmem:[%s6173_s1 + $0x2dc] sm:$0xf0]  ;;  %v2944_v56 = vld [vmem:[%s6173_s1 + $0x2e0] sm:$0xf0]  ;;  %v3080_v40 = vld [vmem:[%s6173_s1 + $0x3e8] sm:$0xf0] }
  0x15   :  { %v2943_v58 = vor.u32 %v3843_v52, %v2942_v51  ;;  %v2654_v59 = vld [vmem:[%s6173_s1 + $0x80] sm:$0xf]  ;;  %v2947_v62 = vor.u32 %v3839_v55, %v2944_v56  ;;  %v3767_v1 = vld [vmem:[%s6173_s1 + $0x84] sm:$0xf]  ;;  %841 = vmatpush.bf16.msra.mxu0 %v2687_v57  ;;  %877 = vmatpush.bf16.msra.mxu2 %v2691_v61  ;;  %v3078_v44 = vld [vmem:[%s6173_s1 + $0x3c8] sm:$0xf]  ;;  %v3083_v51 = vor.u32 %v3872_v39, %v3080_v40 }
  0x16   :  { %v3771_v60 = vld [vmem:[%s6173_s1 + $0x9c] sm:$0xf0]  ;;  %v2656_v2 = vld [vmem:[%s6173_s1 + $0xa0] sm:$0xf0]  ;;  %v3876_v47 = vld [vmem:[%s6173_s1 + $0x3e4] sm:$0xf0] }
  0x17   :  { %v2910_v63 = vld [vmem:[%s6173_s1 + $0x280] sm:$0xf]  ;;  %v3831_v3 = vld [vmem:[%s6173_s1 + $0x284] sm:$0xf]  ;;  %v2655_v5 = vor.u32 %v3771_v60, %v2654_v59  ;;  %859 = vmatpush.bf16.msra.mxu1 %v2943_v58  ;;  %895 = vmatpush.bf16.msra.mxu3 %v2947_v62  ;;  %v2659_v9 = vor.u32 %v3767_v1, %v2656_v2  ;;  %v2790_v48 = vld [vmem:[%s6173_s1 + $0x188] sm:$0xf]  ;;  %v3079_v56 = vor.u32 %v3876_v47, %v3078_v44 }
  0x18   :  { %v3835_v0 = vld [vmem:[%s6173_s1 + $0x29c] sm:$0xf0]  ;;  %v2912_v4 = vld [vmem:[%s6173_s1 + $0x2a0] sm:$0xf0]  ;;  %v3804_v49 = vld [vmem:[%s6173_s1 + $0x1a4] sm:$0xf0] }
  0x19   :  { %v2911_v6 = vor.u32 %v3835_v0, %v2910_v63  ;;  %v2622_v7 = vld [vmem:[%s6173_s1 + $0x40] sm:$0xf]  ;;  %v2915_v10 = vor.u32 %v3831_v3, %v2912_v4  ;;  %v3759_v13 = vld [vmem:[%s6173_s1 + $0x44] sm:$0xf]  ;;  %842 = vmatpush.bf16.msra.mxu0 %v2655_v5  ;;  %878 = vmatpush.bf16.msra.mxu2 %v2659_v9  ;;  %v3800_v52 = vld [vmem:[%s6173_s1 + $0x18c] sm:$0xf]  ;;  %v2791_v57 = vor.u32 %v3804_v49, %v2790_v48 }
  0x1a   :  { %v3763_v8 = vld [vmem:[%s6173_s1 + $0x5c] sm:$0xf0]  ;;  %v2624_v14 = vld [vmem:[%s6173_s1 + $0x60] sm:$0xf0]  ;;  %v2792_v53 = vld [vmem:[%s6173_s1 + $0x1a8] sm:$0xf0] }
  0x1b   :  { %v2878_v11 = vld [vmem:[%s6173_s1 + $0x240] sm:$0xf]  ;;  %v3823_v15 = vld [vmem:[%s6173_s1 + $0x244] sm:$0xf]  ;;  %v2623_v17 = vor.u32 %v3763_v8, %v2622_v7  ;;  %860 = vmatpush.bf16.msra.mxu1 %v2911_v6  ;;  %896 = vmatpush.bf16.msra.mxu3 %v2915_v10  ;;  %v2627_v25 = vor.u32 %v3759_v13, %v2624_v14  ;;  %v3864_v54 = vld [vmem:[%s6173_s1 + $0x38c] sm:$0xf]  ;;  %v2795_v59 = vor.u32 %v3800_v52, %v2792_v53 }
  0x1c   :  { %v3827_v12 = vld [vmem:[%s6173_s1 + $0x25c] sm:$0xf0]  ;;  %v2880_v16 = vld [vmem:[%s6173_s1 + $0x260] sm:$0xf0]  ;;  %v3048_v55 = vld [vmem:[%s6173_s1 + $0x3a8] sm:$0xf0] }
  0x1d   :  { %v2590_v18 = vld [vmem:[%s6173_s1] sm:$0xf]  ;;  %v2879_v21 = vor.u32 %v3827_v12, %v2878_v11  ;;  %v3751_v23 = vld [vmem:[%s6173_s1 + $0x4] sm:$0xf]  ;;  %v2883_v26 = vor.u32 %v3823_v15, %v2880_v16  ;;  %843 = vmatpush.bf16.msra.mxu0 %v2623_v17  ;;  %879 = vmatpush.bf16.msra.mxu2 %v2627_v25  ;;  %v3046_v58 = vld [vmem:[%s6173_s1 + $0x388] sm:$0xf]  ;;  %v3051_v63 = vor.u32 %v3864_v54, %v3048_v55 }
  0x1e   :  { %v3755_v19 = vld [vmem:[%s6173_s1 + $0x1c] sm:$0xf0]  ;;  %v2592_v24 = vld [vmem:[%s6173_s1 + $0x20] sm:$0xf0]  ;;  %v3868_v60 = vld [vmem:[%s6173_s1 + $0x3a4] sm:$0xf0] }
  0x1f   :  { %v2846_v20 = vld [vmem:[%s6173_s1 + $0x200] sm:$0xf]  ;;  %v3815_v27 = vld [vmem:[%s6173_s1 + $0x204] sm:$0xf]  ;;  %v2591_v33 = vor.u32 %v3755_v19, %v2590_v18  ;;  %861 = vmatpush.bf16.msra.mxu1 %v2879_v21  ;;  %897 = vmatpush.bf16.msra.mxu3 %v2883_v26  ;;  %v2595_v42 = vor.u32 %v3751_v23, %v2592_v24  ;;  %v2758_v61 = vld [vmem:[%s6173_s1 + $0x148] sm:$0xf]  ;;  %v3047_v4 = vor.u32 %v3868_v60, %v3046_v58 }
  0x20   :  { %v3819_v22 = vld [vmem:[%s6173_s1 + $0x21c] sm:$0xf0]  ;;  %v2848_v30 = vld [vmem:[%s6173_s1 + $0x220] sm:$0xf0]  ;;  %v3796_v62 = vld [vmem:[%s6173_s1 + $0x164] sm:$0xf0] }
  0x21   :  { %v2582_v31 = vld [vmem:[%s6180_s0] sm:$0xf]  ;;  %v3749_v34 = vld [vmem:[%s6180_s0 + $0x4] sm:$0xf]  ;;  %v2847_v37 = vor.u32 %v3819_v22, %v2846_v20  ;;  %v2851_v43 = vor.u32 %v3815_v27, %v2848_v30  ;;  %844 = vmatpush.bf16.msra.mxu0 %v2591_v33  ;;  %880 = vmatpush.bf16.msra.mxu2 %v2595_v42  ;;  %v3792_v0 = vld [vmem:[%s6173_s1 + $0x14c] sm:$0xf]  ;;  %v2759_v5 = vor.u32 %v3796_v62, %v2758_v61 }
  0x22   :  { %v4426_v45 = vor.u32 %v3750_v32, %v2582_v31  ;;  %v4437_v50 = vor.u32 %v3749_v34, %v2584_v38  ;;  %v2760_v1 = vld [vmem:[%s6173_s1 + $0x168] sm:$0xf0]  ;;  %v3014_v6 = vld [vmem:[%s6173_s1 + $0x348] sm:$0xf]  ;;  %v33_v14 = vld [vmem:[%s6180_s0 + $0x10] sm:$0xff] }
  0x23   :  { %862 = vmatpush.bf16.msra.mxu1 %v2847_v37  ;;  %898 = vmatpush.bf16.msra.mxu3 %v2851_v43  ;;  %v3856_v2 = vld [vmem:[%s6173_s1 + $0x34c] sm:$0xf]  ;;  %v2763_v7 = vor.u32 %v3792_v0, %v2760_v1  ;;  %v3860_v8 = vld [vmem:[%s6173_s1 + $0x364] sm:$0xf0]  ;;  %v187_v22 = vunpack.c.l.b16 %v33_v14  ;;  %v188_v26 = vunpack.c.h.b16 %v33_v14  ;;  %v3088_v14 = vld [vmem:[%s6173_s1 + $0x3f0] sm:$0xf0] }
  0x24   :  { %845 = vmatmul.bf16.vlgmr.msra.gmra.mxu0 %v4426_v45  ;;  %881 = vmatmul.bf16.vlgmr.msra.gmra.mxu2 %v4426_v45  ;;  %v3016_v3 = vld [vmem:[%s6173_s1 + $0x368] sm:$0xf0]  ;;  %v2726_v9 = vld [vmem:[%s6173_s1 + $0x108] sm:$0xf]  ;;  %v3015_v17 = vor.u32 %v3860_v8, %v3014_v6  ;;  %v2830_v6 = vld [vmem:[%s6173_s1 + $0x1d0] sm:$0xf] }
  0x25   :  { %909 = vmatpush.bf16.msrb.mxu0 %v2823_v41  ;;  %945 = vmatpush.bf16.msrb.mxu2 %v2827_v46  ;;  %v3788_v10 = vld [vmem:[%s6173_s1 + $0x124] sm:$0xf0]  ;;  %v3019_v11 = vor.u32 %v3856_v2, %v3016_v3  ;;  %v3784_v12 = vld [vmem:[%s6173_s1 + $0x10c] sm:$0xf]  ;;  %v4533_v34 = vpack.c.b16 %v187_v22, %v187_v22  ;;  %v4544_v39 = vpack.c.b16 %v188_v26, %v188_v26  ;;  %v3877_v22 = vld [vmem:[%s6173_s1 + $0x3ec] sm:$0xf0] }
  0x26   :  { %863 = vmatmul.bf16.vlgmr.msra.gmra.mxu1 %v4437_v50  ;;  %899 = vmatmul.bf16.vlgmr.msra.gmra.mxu3 %v4437_v50  ;;  %v2728_v13 = vld [vmem:[%s6173_s1 + $0x128] sm:$0xf0]  ;;  %v2727_v18 = vor.u32 %v3788_v10, %v2726_v9  ;;  %v2982_v19 = vld [vmem:[%s6173_s1 + $0x308] sm:$0xf]  ;;  %v3809_v9 = vld [vmem:[%s6173_s1 + $0x1d4] sm:$0xf] }
  0x27   :  { %963 = vmatpush.bf16.msrb.mxu3 %v3083_v51  ;;  %927 = vmatpush.bf16.msrb.mxu1 %v3079_v56  ;;  %v3848_v15 = vld [vmem:[%s6173_s1 + $0x30c] sm:$0xf]  ;;  %v2731_v20 = vor.u32 %v3784_v12, %v2728_v13  ;;  %v3852_v21 = vld [vmem:[%s6173_s1 + $0x324] sm:$0xf0]  ;;  %v2832_v10 = vld [vmem:[%s6173_s1 + $0x1f0] sm:$0xf0] }
  0x28   :  { %v2984_v16 = vld [vmem:[%s6173_s1 + $0x328] sm:$0xf0]  ;;  %v2694_v23 = vld [vmem:[%s6173_s1 + $0xc8] sm:$0xf]  ;;  %v2983_v31 = vor.u32 %v3852_v21, %v2982_v19  ;;  %v3873_v13 = vld [vmem:[%s6173_s1 + $0x3d4] sm:$0xf] }
  0x29   :  { %910 = vmatpush.bf16.msrb.mxu0 %v2791_v57  ;;  %946 = vmatpush.bf16.msrb.mxu2 %v2795_v59  ;;  %v3780_v24 = vld [vmem:[%s6173_s1 + $0xe4] sm:$0xf0]  ;;  %v2987_v25 = vor.u32 %v3848_v15, %v2984_v16  ;;  %v3776_v27 = vld [vmem:[%s6173_s1 + $0xcc] sm:$0xf]  ;;  %v3086_v21 = vld [vmem:[%s6173_s1 + $0x3d0] sm:$0xf] }
  0x2a   :  { %v2696_v28 = vld [vmem:[%s6173_s1 + $0xe8] sm:$0xf0]  ;;  %v2695_v32 = vor.u32 %v3780_v24, %v2694_v23  ;;  %v2950_v33 = vld [vmem:[%s6173_s1 + $0x2c8] sm:$0xf]  ;;  %v3801_v23 = vld [vmem:[%s6173_s1 + $0x194] sm:$0xf]  ;;  %v3091_v24 = vor.u32 %v3873_v13, %v3088_v14 }
  0x2b   :  { %964 = vmatpush.bf16.msrb.mxu3 %v3051_v63  ;;  %928 = vmatpush.bf16.msrb.mxu1 %v3047_v4  ;;  %v3840_v29 = vld [vmem:[%s6173_s1 + $0x2cc] sm:$0xf]  ;;  %v2699_v35 = vor.u32 %v3776_v27, %v2696_v28  ;;  %v3844_v36 = vld [vmem:[%s6173_s1 + $0x2e4] sm:$0xf0]  ;;  %v2798_v26 = vld [vmem:[%s6173_s1 + $0x190] sm:$0xf] }
  0x2c   :  { %v2952_v30 = vld [vmem:[%s6173_s1 + $0x2e8] sm:$0xf0]  ;;  %v2662_v37 = vld [vmem:[%s6173_s1 + $0x88] sm:$0xf]  ;;  %v2951_v46 = vor.u32 %v3844_v36, %v2950_v33  ;;  %v3805_v27 = vld [vmem:[%s6173_s1 + $0x1ac] sm:$0xf0] }
  0x2d   :  { %911 = vmatpush.bf16.msrb.mxu0 %v2759_v5  ;;  %947 = vmatpush.bf16.msrb.mxu2 %v2763_v7  ;;  %v3772_v38 = vld [vmem:[%s6173_s1 + $0xa4] sm:$0xf0]  ;;  %v2955_v40 = vor.u32 %v3840_v29, %v2952_v30  ;;  %v3768_v41 = vld [vmem:[%s6173_s1 + $0x8c] sm:$0xf]  ;;  %v3813_v7 = vld [vmem:[%s6173_s1 + $0x1ec] sm:$0xf0]  ;;  %v3087_v29 = vor.u32 %v3877_v22, %v3086_v21  ;;  %v2799_v33 = vor.u32 %v3805_v27, %v2798_v26 }
  0x2e   :  { %v2664_v42 = vld [vmem:[%s6173_s1 + $0xa8] sm:$0xf0]  ;;  %v2663_v47 = vor.u32 %v3772_v38, %v2662_v37  ;;  %v2918_v48 = vld [vmem:[%s6173_s1 + $0x288] sm:$0xf]  ;;  %v3865_v30 = vld [vmem:[%s6173_s1 + $0x394] sm:$0xf] }
  0x2f   :  { %965 = vmatpush.bf16.msrb.mxu3 %v3019_v11  ;;  %929 = vmatpush.bf16.msrb.mxu1 %v3015_v17  ;;  %v3832_v43 = vld [vmem:[%s6173_s1 + $0x28c] sm:$0xf]  ;;  %v2667_v49 = vor.u32 %v3768_v41, %v2664_v42  ;;  %v3836_v51 = vld [vmem:[%s6173_s1 + $0x2a4] sm:$0xf0]  ;;  %v3869_v36 = vld [vmem:[%s6173_s1 + $0x3ac] sm:$0xf0] }
  0x30   :  { %v2920_v44 = vld [vmem:[%s6173_s1 + $0x2a8] sm:$0xf0]  ;;  %v2630_v52 = vld [vmem:[%s6173_s1 + $0x48] sm:$0xf]  ;;  %v2919_v59 = vor.u32 %v3836_v51, %v2918_v48  ;;  %v3793_v37 = vld [vmem:[%s6173_s1 + $0x154] sm:$0xf] }
  0x31   :  { %912 = vmatpush.bf16.msrb.mxu0 %v2727_v18  ;;  %948 = vmatpush.bf16.msrb.mxu2 %v2731_v20  ;;  %v3764_v53 = vld [vmem:[%s6173_s1 + $0x64] sm:$0xf0]  ;;  %v2923_v54 = vor.u32 %v3832_v43, %v2920_v44  ;;  %v3760_v55 = vld [vmem:[%s6173_s1 + $0x4c] sm:$0xf]  ;;  %v2831_v18 = vor.u32 %v3813_v7, %v2830_v6  ;;  %v2835_v20 = vor.u32 %v3809_v9, %v2832_v10  ;;  %v2768_v38 = vld [vmem:[%s6173_s1 + $0x170] sm:$0xf0] }
  0x32   :  { %v2632_v56 = vld [vmem:[%s6173_s1 + $0x68] sm:$0xf0]  ;;  %v2631_v60 = vor.u32 %v3764_v53, %v2630_v52  ;;  %v2886_v61 = vld [vmem:[%s6173_s1 + $0x248] sm:$0xf]  ;;  %v3797_v41 = vld [vmem:[%s6173_s1 + $0x16c] sm:$0xf0] }
  0x33   :  { %966 = vmatpush.bf16.msrb.mxu3 %v2987_v25  ;;  %930 = vmatpush.bf16.msrb.mxu1 %v2983_v31  ;;  %v3824_v57 = vld [vmem:[%s6173_s1 + $0x24c] sm:$0xf]  ;;  %v3828_v62 = vld [vmem:[%s6173_s1 + $0x264] sm:$0xf0]  ;;  %v2635_v0 = vor.u32 %v3760_v55, %v2632_v56  ;;  %v2800_v25 = vld [vmem:[%s6173_s1 + $0x1b0] sm:$0xf0] }
  0x34   :  { %850 = vmatmul.bf16.gmra.mxu0 %v4533_v34  ;;  %886 = vmatmul.bf16.gmra.mxu2 %v4533_v34  ;;  %v2888_v58 = vld [vmem:[%s6173_s1 + $0x268] sm:$0xf0]  ;;  %v2598_v2 = vld [vmem:[%s6173_s1 + $0x8] sm:$0xf]  ;;  %v2887_v11 = vor.u32 %v3828_v62, %v2886_v61  ;;  %v3056_v31 = vld [vmem:[%s6173_s1 + $0x3b0] sm:$0xf0] }
  0x35   :  { %913 = vmatpush.bf16.msrb.mxu0 %v2695_v32  ;;  %949 = vmatpush.bf16.msrb.mxu2 %v2699_v35  ;;  %v3752_v63 = vld [vmem:[%s6173_s1 + $0xc] sm:$0xf]  ;;  %v3756_v3 = vld [vmem:[%s6173_s1 + $0x24] sm:$0xf0]  ;;  %v2891_v4 = vor.u32 %v3824_v57, %v2888_v58  ;;  %v2803_v32 = vor.u32 %v3801_v23, %v2800_v25  ;;  %v3054_v35 = vld [vmem:[%s6173_s1 + $0x390] sm:$0xf]  ;;  %v3059_v42 = vor.u32 %v3865_v30, %v3056_v31 }
  0x36   :  { %868 = vmatmul.bf16.gmra.mxu1 %v4544_v39  ;;  %904 = vmatmul.bf16.gmra.mxu3 %v4544_v39  ;;  %v2600_v1 = vld [vmem:[%s6173_s1 + $0x28] sm:$0xf0]  ;;  %v2599_v12 = vor.u32 %v3756_v3, %v2598_v2  ;;  %v2854_v16 = vld [vmem:[%s6173_s1 + $0x208] sm:$0xf]  ;;  %v3055_v43 = vor.u32 %v3869_v36, %v3054_v35  ;;  %v3857_v44 = vld [vmem:[%s6173_s1 + $0x354] sm:$0xf] }
  0x37   :  { %967 = vmatpush.bf16.msrb.mxu3 %v2955_v40  ;;  %931 = vmatpush.bf16.msrb.mxu1 %v2951_v46  ;;  %v3816_v5 = vld [vmem:[%s6173_s1 + $0x20c] sm:$0xf]  ;;  %v2603_v15 = vor.u32 %v3752_v63, %v2600_v1  ;;  %v3820_v17 = vld [vmem:[%s6173_s1 + $0x224] sm:$0xf0]  ;;  %v2766_v40 = vld [vmem:[%s6173_s1 + $0x150] sm:$0xf] }
  0x38   :  { %v2856_v8 = vld [vmem:[%s6173_s1 + $0x228] sm:$0xf0]  ;;  %v2855_v28 = vor.u32 %v3820_v17, %v2854_v16  ;;  %v3024_v46 = vld [vmem:[%s6173_s1 + $0x370] sm:$0xf0]  ;;  %v2767_v48 = vor.u32 %v3797_v41, %v2766_v40  ;;  %v3861_v51 = vld [vmem:[%s6173_s1 + $0x36c] sm:$0xf0] }
  0x39   :  { %914 = vmatpush.bf16.msrb.mxu0 %v2663_v47  ;;  %950 = vmatpush.bf16.msrb.mxu2 %v2667_v49  ;;  %v2859_v19 = vor.u32 %v3816_v5, %v2856_v8  ;;  %v2771_v47 = vor.u32 %v3793_v37, %v2768_v38  ;;  %v3022_v49 = vld [vmem:[%s6173_s1 + $0x350] sm:$0xf]  ;;  %v3785_v52 = vld [vmem:[%s6173_s1 + $0x114] sm:$0xf]  ;;  %v3027_v56 = vor.u32 %v3857_v44, %v3024_v46 }
  0x3a   :  { %v2736_v53 = vld [vmem:[%s6173_s1 + $0x130] sm:$0xf0]  ;;  %v3789_v55 = vld [vmem:[%s6173_s1 + $0x12c] sm:$0xf0]  ;;  %v3023_v57 = vor.u32 %v3861_v51, %v3022_v49 }
  0x3b   :  { %968 = vmatpush.bf16.msrb.mxu3 %v2923_v54  ;;  %932 = vmatpush.bf16.msrb.mxu1 %v2919_v59  ;;  %v2734_v54 = vld [vmem:[%s6173_s1 + $0x110] sm:$0xf]  ;;  %v3849_v58 = vld [vmem:[%s6173_s1 + $0x314] sm:$0xf] }
  0x3c   :  { %v2992_v59 = vld [vmem:[%s6173_s1 + $0x330] sm:$0xf0]  ;;  %v2735_v61 = vor.u32 %v3789_v55, %v2734_v54  ;;  %v2990_v62 = vld [vmem:[%s6173_s1 + $0x310] sm:$0xf]  ;;  %v3814_v54 = vld [vmem:[%s6173_s1 + $0x1f4] sm:$0xf0] }
  0x3d   :  { %915 = vmatpush.bf16.msrb.mxu0 %v2631_v60  ;;  %951 = vmatpush.bf16.msrb.mxu2 %v2635_v0  ;;  %v2739_v60 = vor.u32 %v3785_v52, %v2736_v53  ;;  %v3853_v63 = vld [vmem:[%s6173_s1 + $0x32c] sm:$0xf0]  ;;  %v3777_v0 = vld [vmem:[%s6173_s1 + $0xd4] sm:$0xf]  ;;  %v2838_v53 = vld [vmem:[%s6173_s1 + $0x1d8] sm:$0xf] }
  0x3e   :  { %v2704_v1 = vld [vmem:[%s6173_s1 + $0xf0] sm:$0xf0]  ;;  %v2702_v2 = vld [vmem:[%s6173_s1 + $0xd0] sm:$0xf]  ;;  %v2991_v5 = vor.u32 %v3853_v63, %v2990_v62  ;;  %v2808_v62 = vld [vmem:[%s6173_s1 + $0x1b8] sm:$0xf0] }
  0x3f   :  { %969 = vmatpush.bf16.msrb.mxu3 %v2891_v4  ;;  %933 = vmatpush.bf16.msrb.mxu1 %v2887_v11  ;;  %v3781_v3 = vld [vmem:[%s6173_s1 + $0xec] sm:$0xf0]  ;;  %v2995_v4 = vor.u32 %v3849_v58, %v2992_v59  ;;  %v2707_v6 = vor.u32 %v3777_v0, %v2704_v1  ;;  %v3841_v7 = vld [vmem:[%s6173_s1 + $0x2d4] sm:$0xf]  ;;  %v3094_v58 = vld [vmem:[%s6173_s1 + $0x3d8] sm:$0xf]  ;;  %v2839_v0 = vor.u32 %v3814_v54, %v2838_v53 }
  0x40   :  { %v2960_v8 = vld [vmem:[%s6173_s1 + $0x2f0] sm:$0xf0]  ;;  %v2703_v9 = vor.u32 %v3781_v3, %v2702_v2  ;;  %v2958_v10 = vld [vmem:[%s6173_s1 + $0x2d0] sm:$0xf]  ;;  %v3866_v3 = vld [vmem:[%s6173_s1 + $0x39c] sm:$0xf] }
  0x41   :  { %916 = vmatpush.bf16.msrb.mxu0 %v2599_v12  ;;  %952 = vmatpush.bf16.msrb.mxu2 %v2603_v15  ;;  %v3845_v11 = vld [vmem:[%s6173_s1 + $0x2ec] sm:$0xf0]  ;;  %v3769_v12 = vld [vmem:[%s6173_s1 + $0x94] sm:$0xf]  ;;  %v2963_v14 = vor.u32 %v3841_v7, %v2960_v8  ;;  %v2806_v7 = vld [vmem:[%s6173_s1 + $0x198] sm:$0xf] }
  0x42   :  { %v2672_v13 = vld [vmem:[%s6173_s1 + $0xb0] sm:$0xf0]  ;;  %v2670_v15 = vld [vmem:[%s6173_s1 + $0x90] sm:$0xf]  ;;  %v2959_v17 = vor.u32 %v3845_v11, %v2958_v10  ;;  %v3806_v8 = vld [vmem:[%s6173_s1 + $0x1b4] sm:$0xf0] }
  0x43   :  { %970 = vmatpush.bf16.msrb.mxu3 %v2859_v19  ;;  %934 = vmatpush.bf16.msrb.mxu1 %v2855_v28  ;;  %v3773_v16 = vld [vmem:[%s6173_s1 + $0xac] sm:$0xf0]  ;;  %v3833_v19 = vld [vmem:[%s6173_s1 + $0x294] sm:$0xf]  ;;  %v3870_v10 = vld [vmem:[%s6173_s1 + $0x3b4] sm:$0xf0] }
  0x44   :  { %917 = vmatmul.bf16.vlgmr.msrb.gmra.mxu0 %v4426_v45  ;;  %953 = vmatmul.bf16.vlgmr.msrb.gmra.mxu2 %v4426_v45  ;;  %v2926_v21 = vld [vmem:[%s6173_s1 + $0x290] sm:$0xf]  ;;  %v3761_v23 = vld [vmem:[%s6173_s1 + $0x54] sm:$0xf]  ;;  %v2671_v25 = vor.u32 %v3773_v16, %v2670_v15  ;;  %v3858_v15 = vld [vmem:[%s6173_s1 + $0x35c] sm:$0xf] }
  0x45   :  { %981 = vmatpush.bf16.msra.mxu0 %v2831_v18  ;;  %1017 = vmatpush.bf16.msra.mxu2 %v2835_v20  ;;  %v2675_v18 = vor.u32 %v3769_v12, %v2672_v13  ;;  %v2928_v20 = vld [vmem:[%s6173_s1 + $0x2b0] sm:$0xf0]  ;;  %v3837_v22 = vld [vmem:[%s6173_s1 + $0x2ac] sm:$0xf0]  ;;  %v2807_v12 = vor.u32 %v3806_v8, %v2806_v7  ;;  %v3794_v13 = vld [vmem:[%s6173_s1 + $0x15c] sm:$0xf] }
  0x46   :  { %935 = vmatmul.bf16.vlgmr.msrb.gmra.mxu1 %v4437_v50  ;;  %971 = vmatmul.bf16.vlgmr.msrb.gmra.mxu3 %v4437_v50  ;;  %v2931_v26 = vor.u32 %v3833_v19, %v2928_v20  ;;  %v2638_v27 = vld [vmem:[%s6173_s1 + $0x50] sm:$0xf]  ;;  %v3825_v31 = vld [vmem:[%s6173_s1 + $0x254] sm:$0xf]  ;;  %v3032_v16 = vld [vmem:[%s6173_s1 + $0x378] sm:$0xf0] }
  0x47   :  { %1035 = vmatpush.bf16.msra.mxu3 %v3091_v24  ;;  %999 = vmatpush.bf16.msra.mxu1 %v3087_v29  ;;  %v2640_v24 = vld [vmem:[%s6173_s1 + $0x70] sm:$0xf0]  ;;  %v3765_v28 = vld [vmem:[%s6173_s1 + $0x6c] sm:$0xf0]  ;;  %v2927_v29 = vor.u32 %v3837_v22, %v2926_v21  ;;  %v3030_v21 = vld [vmem:[%s6173_s1 + $0x358] sm:$0xf] }
  0x48   :  { %v2643_v30 = vor.u32 %v3761_v23, %v2640_v24  ;;  %v3829_v35 = vld [vmem:[%s6173_s1 + $0x26c] sm:$0xf0]  ;;  %v3753_v36 = vld [vmem:[%s6173_s1 + $0x14] sm:$0xf]  ;;  %v2639_v38 = vor.u32 %v3765_v28, %v2638_v27  ;;  %v3862_v22 = vld [vmem:[%s6173_s1 + $0x374] sm:$0xf0]  ;;  %v3035_v23 = vor.u32 %v3858_v15, %v3032_v16 }
  0x49   :  { %1018 = vmatpush.bf16.msra.mxu2 %v2803_v32  ;;  %982 = vmatpush.bf16.msra.mxu0 %v2799_v33  ;;  %v2896_v32 = vld [vmem:[%s6173_s1 + $0x270] sm:$0xf0]  ;;  %v2894_v33 = vld [vmem:[%s6173_s1 + $0x250] sm:$0xf]  ;;  %v3850_v27 = vld [vmem:[%s6173_s1 + $0x31c] sm:$0xf] }
  0x4a   :  { %v2608_v37 = vld [vmem:[%s6173_s1 + $0x30] sm:$0xf0]  ;;  %v2899_v44 = vor.u32 %v3825_v31, %v2896_v32  ;;  %v2606_v46 = vld [vmem:[%s6173_s1 + $0x10] sm:$0xf]  ;;  %v2895_v49 = vor.u32 %v3829_v35, %v2894_v33  ;;  %v3000_v28 = vld [vmem:[%s6173_s1 + $0x338] sm:$0xf0]  ;;  %v3031_v31 = vor.u32 %v3862_v22, %v3030_v21 }
  0x4b   :  { %1036 = vmatpush.bf16.msra.mxu3 %v3059_v42  ;;  %1000 = vmatpush.bf16.msra.mxu1 %v3055_v43  ;;  %v3817_v40 = vld [vmem:[%s6173_s1 + $0x214] sm:$0xf]  ;;  %v3810_v42 = vld [vmem:[%s6173_s1 + $0x1dc] sm:$0xf]  ;;  %v2611_v51 = vor.u32 %v3753_v36, %v2608_v37  ;;  %v3821_v52 = vld [vmem:[%s6173_s1 + $0x22c] sm:$0xf0]  ;;  %v3003_v36 = vor.u32 %v3850_v27, %v3000_v28 }
  0x4c   :  { %v2864_v41 = vld [vmem:[%s6173_s1 + $0x230] sm:$0xf0]  ;;  %v2840_v43 = vld [vmem:[%s6173_s1 + $0x1f8] sm:$0xf0]  ;;  %v2998_v33 = vld [vmem:[%s6173_s1 + $0x318] sm:$0xf] }
  0x4d   :  { %1019 = vmatpush.bf16.msra.mxu2 %v2771_v47  ;;  %983 = vmatpush.bf16.msra.mxu0 %v2767_v48  ;;  %v3757_v47 = vld [vmem:[%s6173_s1 + $0x2c] sm:$0xf0]  ;;  %v2843_v55 = vor.u32 %v3810_v42, %v2840_v43  ;;  %v2867_v63 = vor.u32 %v3817_v40, %v2864_v41  ;;  %v3854_v35 = vld [vmem:[%s6173_s1 + $0x334] sm:$0xf0]  ;;  %v2712_v40 = vld [vmem:[%s6173_s1 + $0xf8] sm:$0xf0] }
  0x4e   :  { %v2862_v48 = vld [vmem:[%s6173_s1 + $0x210] sm:$0xf]  ;;  %v2607_v59 = vor.u32 %v3757_v47, %v2606_v46  ;;  %v3842_v41 = vld [vmem:[%s6173_s1 + $0x2dc] sm:$0xf]  ;;  %v2710_v43 = vld [vmem:[%s6173_s1 + $0xd8] sm:$0xf]  ;;  %v2999_v46 = vor.u32 %v3854_v35, %v2998_v33 }
  0x4f   :  { %1037 = vmatpush.bf16.msra.mxu3 %v3027_v56  ;;  %1001 = vmatpush.bf16.msra.mxu1 %v3023_v57  ;;  %v3874_v56 = vld [vmem:[%s6173_s1 + $0x3dc] sm:$0xf]  ;;  %v2863_v1 = vor.u32 %v3821_v52, %v2862_v48  ;;  %v2966_v48 = vld [vmem:[%s6173_s1 + $0x2d8] sm:$0xf] }
  0x50   :  { %v3096_v57 = vld [vmem:[%s6173_s1 + $0x3f8] sm:$0xf0]  ;;  %v2870_v21 = vld [vmem:[%s6173_s1 + $0x218] sm:$0xf] }
  0x51   :  { %1020 = vmatpush.bf16.msra.mxu2 %v2739_v60  ;;  %984 = vmatpush.bf16.msra.mxu0 %v2735_v61  ;;  %v3878_v60 = vld [vmem:[%s6173_s1 + $0x3f4] sm:$0xf0]  ;;  %v3802_v61 = vld [vmem:[%s6173_s1 + $0x19c] sm:$0xf]  ;;  %v3099_v2 = vor.u32 %v3874_v56, %v3096_v57 }
  0x52   :  { %v2968_v42 = vld [vmem:[%s6173_s1 + $0x2f8] sm:$0xf0]  ;;  %v2678_v57 = vld [vmem:[%s6173_s1 + $0x98] sm:$0xf] }
  0x53   :  { %1038 = vmatpush.bf16.msra.mxu3 %v2995_v4  ;;  %1002 = vmatpush.bf16.msra.mxu1 %v2991_v5  ;;  %v3095_v4 = vor.u32 %v3878_v60, %v3094_v58  ;;  %v2811_v5 = vor.u32 %v3802_v61, %v2808_v62  ;;  %v3770_v53 = vld [vmem:[%s6173_s1 + $0x9c] sm:$0xf]  ;;  %v3774_v58 = vld [vmem:[%s6173_s1 + $0xb4] sm:$0xf0] }
  0x54   :  { %922 = vmatmul.bf16.gmra.mxu0 %v4533_v34  ;;  %958 = vmatmul.bf16.gmra.mxu2 %v4533_v34  ;;  %v2680_v54 = vld [vmem:[%s6173_s1 + $0xb8] sm:$0xf0]  ;;  %v2934_v61 = vld [vmem:[%s6173_s1 + $0x298] sm:$0xf] }
  0x55   :  { %1021 = vmatpush.bf16.msra.mxu2 %v2707_v6  ;;  %985 = vmatpush.bf16.msra.mxu0 %v2703_v9  ;;  %v3064_v6 = vld [vmem:[%s6173_s1 + $0x3b8] sm:$0xf0]  ;;  %v3062_v9 = vld [vmem:[%s6173_s1 + $0x398] sm:$0xf]  ;;  %v2683_v60 = vor.u32 %v3770_v53, %v2680_v54 }
  0x56   :  { %940 = vmatmul.bf16.gmra.mxu1 %v4544_v39  ;;  %976 = vmatmul.bf16.gmra.mxu3 %v4544_v39  ;;  %v3067_v11 = vor.u32 %v3866_v3, %v3064_v6  ;;  %v3063_v19 = vor.u32 %v3870_v10, %v3062_v9  ;;  %v2936_v56 = vld [vmem:[%s6173_s1 + $0x2b8] sm:$0xf0]  ;;  %v3838_v62 = vld [vmem:[%s6173_s1 + $0x2b4] sm:$0xf0] }
  0x57   :  { %1039 = vmatpush.bf16.msra.mxu3 %v2963_v14  ;;  %1003 = vmatpush.bf16.msra.mxu1 %v2959_v17  ;;  %v2776_v14 = vld [vmem:[%s6173_s1 + $0x178] sm:$0xf0]  ;;  %v2774_v17 = vld [vmem:[%s6173_s1 + $0x158] sm:$0xf]  ;;  %v2935_v7 = vor.u32 %v3838_v62, %v2934_v61 }
  0x58   :  { %v2779_v20 = vor.u32 %v3794_v13, %v2776_v14  ;;  %v3826_v3 = vld [vmem:[%s6173_s1 + $0x25c] sm:$0xf]  ;;  %v3766_v6 = vld [vmem:[%s6173_s1 + $0x74] sm:$0xf0] }
  0x59   :  { %1022 = vmatpush.bf16.msra.mxu2 %v2675_v18  ;;  %986 = vmatpush.bf16.msra.mxu0 %v2671_v25  ;;  %v3798_v18 = vld [vmem:[%s6173_s1 + $0x174] sm:$0xf0]  ;;  %v3786_v25 = vld [vmem:[%s6173_s1 + $0x11c] sm:$0xf] }
  0x5a   :  { %v2775_v24 = vor.u32 %v3798_v18, %v2774_v17  ;;  %v2902_v9 = vld [vmem:[%s6173_s1 + $0x258] sm:$0xf]  ;;  %v3754_v13 = vld [vmem:[%s6173_s1 + $0x1c] sm:$0xf] }
  0x5b   :  { %1040 = vmatpush.bf16.msra.mxu3 %v2931_v26  ;;  %1004 = vmatpush.bf16.msra.mxu1 %v2927_v29  ;;  %v2744_v26 = vld [vmem:[%s6173_s1 + $0x138] sm:$0xf0]  ;;  %v2742_v29 = vld [vmem:[%s6173_s1 + $0x118] sm:$0xf] }
  0x5c   :  { %v2747_v32 = vor.u32 %v3786_v25, %v2744_v26  ;;  %v3830_v10 = vld [vmem:[%s6173_s1 + $0x274] sm:$0xf0]  ;;  %v2616_v14 = vld [vmem:[%s6173_s1 + $0x38] sm:$0xf0]  ;;  %v5027_v26 = vld [vmem:[%s6181_s3] sm:$0xff]  ;;  %s5045_s3 = smov 0  }
  0x5d   :  { %1023 = vmatpush.bf16.msra.mxu2 %v2643_v30  ;;  %987 = vmatpush.bf16.msra.mxu0 %v2639_v38  ;;  %v3790_v30 = vld [vmem:[%s6173_s1 + $0x134] sm:$0xf0]  ;;  %v3778_v38 = vld [vmem:[%s6173_s1 + $0xdc] sm:$0xf]  ;;  %v164_v27 = vperm.slane %v5027_v26, 0  ;;  %v167_v62 = vperm.slane %v5027_v26, 3 }
  0x5e   :  { %v2743_v37 = vor.u32 %v3790_v30, %v2742_v29  ;;  %v2715_v47 = vor.u32 %v3778_v38, %v2712_v40  ;;  %v3818_v15 = vld [vmem:[%s6173_s1 + $0x21c] sm:$0xf]  ;;  %v2614_v17 = vld [vmem:[%s6173_s1 + $0x18] sm:$0xf] }
  0x5f   :  { %1041 = vmatpush.bf16.msra.mxu3 %v2899_v44  ;;  %1005 = vmatpush.bf16.msra.mxu1 %v2895_v49  ;;  %v3782_v44 = vld [vmem:[%s6173_s1 + $0xf4] sm:$0xf0]  ;;  %v2872_v16 = vld [vmem:[%s6173_s1 + $0x238] sm:$0xf0] }
  0x60   :  { %v3846_v49 = vld [vmem:[%s6173_s1 + $0x2f4] sm:$0xf0]  ;;  %v2711_v52 = vor.u32 %v3782_v44, %v2710_v43 }
  0x61   :  { %1024 = vmatpush.bf16.msra.mxu2 %v2611_v51  ;;  %988 = vmatpush.bf16.msra.mxu0 %v2607_v59  ;;  %v2971_v51 = vor.u32 %v3842_v41, %v2968_v42  ;;  %v2967_v59 = vor.u32 %v3846_v49, %v2966_v48  ;;  %v3758_v18 = vld [vmem:[%s6173_s1 + $0x34] sm:$0xf0] }
  0x62   :  { %v3822_v22 = vld [vmem:[%s6173_s1 + $0x234] sm:$0xf0] }
  0x63   :  { %1042 = vmatpush.bf16.msra.mxu3 %v2867_v63  ;;  %1006 = vmatpush.bf16.msra.mxu1 %v2863_v1  ;;  %v3762_v1 = vld [vmem:[%s6173_s1 + $0x5c] sm:$0xf]  ;;  %v2871_v25 = vor.u32 %v3822_v22, %v2870_v21  ;;  %v168_v21 = vperm.slane %v5027_v26, 4 }
  0x64   :  { %989 = vmatmul.bf16.vlgmr.msra.gmra.mxu0 %v4426_v45  ;;  %1025 = vmatmul.bf16.vlgmr.msra.gmra.mxu2 %v4426_v45 }
  0x65   :  { %1089 = vmatpush.bf16.msrb.mxu2 %v2843_v55  ;;  %1053 = vmatpush.bf16.msrb.mxu0 %v2839_v0  ;;  %v3834_v55 = vld [vmem:[%s6173_s1 + $0x29c] sm:$0xf]  ;;  %v2679_v0 = vor.u32 %v3774_v58, %v2678_v57 }
  0x66   :  { %1007 = vmatmul.bf16.vlgmr.msra.gmra.mxu1 %v4437_v50  ;;  %1043 = vmatmul.bf16.vlgmr.msra.gmra.mxu3 %v4437_v50  ;;  %v2939_v63 = vor.u32 %v3834_v55, %v2936_v56  ;;  %v166_v55 = vperm.slane %v5027_v26, 2 }
  0x67   :  { %1107 = vmatpush.bf16.msrb.mxu3 %v3099_v2  ;;  %1071 = vmatpush.bf16.msrb.mxu1 %v3095_v4  ;;  %v2648_v2 = vld [vmem:[%s6173_s1 + $0x78] sm:$0xf0] }
  0x68   :  { %v2904_v4 = vld [vmem:[%s6173_s1 + $0x278] sm:$0xf0]  ;;  %v2651_v8 = vor.u32 %v3762_v1, %v2648_v2 }
  0x69   :  { %1090 = vmatpush.bf16.msrb.mxu2 %v2811_v5  ;;  %1054 = vmatpush.bf16.msrb.mxu0 %v2807_v12  ;;  %v2646_v5 = vld [vmem:[%s6173_s1 + $0x58] sm:$0xf] }
  0x6a   :  { %v2647_v12 = vor.u32 %v3766_v6, %v2646_v5 }
  0x6b   :  { %1108 = vmatpush.bf16.msrb.mxu3 %v3067_v11  ;;  %1072 = vmatpush.bf16.msrb.mxu1 %v3063_v19  ;;  %v2907_v11 = vor.u32 %v3826_v3, %v2904_v4  ;;  %v2903_v19 = vor.u32 %v3830_v10, %v2902_v9 }
  0x6d   :  { %1091 = vmatpush.bf16.msrb.mxu2 %v2779_v20  ;;  %1055 = vmatpush.bf16.msrb.mxu0 %v2775_v24  ;;  %v2619_v20 = vor.u32 %v3754_v13, %v2616_v14  ;;  %v2615_v24 = vor.u32 %v3758_v18, %v2614_v17 }
  0x6f   :  { %1109 = vmatpush.bf16.msrb.mxu3 %v3035_v23  ;;  %1073 = vmatpush.bf16.msrb.mxu1 %v3031_v31  ;;  %v2875_v23 = vor.u32 %v3818_v15, %v2872_v16 }
  0x71   :  { %1092 = vmatpush.bf16.msrb.mxu2 %v2747_v32  ;;  %1056 = vmatpush.bf16.msrb.mxu0 %v2743_v37 }
  0x73   :  { %1110 = vmatpush.bf16.msrb.mxu3 %v3003_v36  ;;  %1074 = vmatpush.bf16.msrb.mxu1 %v2999_v46 }
  0x74   :  { %994 = vmatmul.bf16.gmra.mxu0 %v4533_v34  ;;  %1030 = vmatmul.bf16.gmra.mxu2 %v4533_v34 }
  0x75   :  { %1093 = vmatpush.bf16.msrb.mxu2 %v2715_v47  ;;  %1057 = vmatpush.bf16.msrb.mxu0 %v2711_v52 }
  0x76   :  { %1012 = vmatmul.bf16.gmra.mxu1 %v4544_v39  ;;  %1048 = vmatmul.bf16.gmra.mxu3 %v4544_v39 }
  0x77   :  { %1111 = vmatpush.bf16.msrb.mxu3 %v2971_v51  ;;  %1075 = vmatpush.bf16.msrb.mxu1 %v2967_v59 }
  0x79   :  { %1094 = vmatpush.bf16.msrb.mxu2 %v2683_v60  ;;  %1058 = vmatpush.bf16.msrb.mxu0 %v2679_v0 }
  0x7b   :  { %1112 = vmatpush.bf16.msrb.mxu3 %v2939_v63  ;;  %1076 = vmatpush.bf16.msrb.mxu1 %v2935_v7 }
  0x7d   :  { %1095 = vmatpush.bf16.msrb.mxu2 %v2651_v8  ;;  %1059 = vmatpush.bf16.msrb.mxu0 %v2647_v12 }
  0x7f   :  { %1113 = vmatpush.bf16.msrb.mxu3 %v2907_v11  ;;  %1077 = vmatpush.bf16.msrb.mxu1 %v2903_v19 }
  0x81   :  { %1096 = vmatpush.bf16.msrb.mxu2 %v2619_v20  ;;  %1060 = vmatpush.bf16.msrb.mxu0 %v2615_v24 }
  0x83   :  { %1114 = vmatpush.bf16.msrb.mxu3 %v2875_v23  ;;  %1078 = vmatpush.bf16.msrb.mxu1 %v2871_v25 }
  0x84   :  { %1061 = vmatmul.bf16.vlgmr.msrb.gmra.mxu0 %v4426_v45  ;;  %1097 = vmatmul.bf16.vlgmr.msrb.gmra.mxu2 %v4426_v45 }
  0x86   :  { %1079 = vmatmul.bf16.vlgmr.msrb.gmra.mxu1 %v4437_v50  ;;  %1115 = vmatmul.bf16.vlgmr.msrb.gmra.mxu3 %v4437_v50  ;;  %v165_v50 = vperm.slane %v5027_v26, 1 }
  0x94   :  { %1066 = vmatmul.bf16.gmra.mxu0 %v4533_v34  ;;  %1102 = vmatmul.bf16.gmra.mxu2 %v4533_v34 }
  0x96   :  { %1084 = vmatmul.bf16.gmra.mxu1 %v4544_v39  ;;  %1120 = vmatmul.bf16.gmra.mxu3 %v4544_v39 }
  0xa1   :  { %v846_v28 = vpop.f32.mrf.mxu0 }
  0xa2   :  { %v847_v29 = vadd.f32 %v846_v28, %v164_v27 }
  0xa3   :  { %v864_v45 = vpop.f32.mrf.mxu1 }
  0xa4   :  { %v865_v30 = vadd.f32 %v864_v45, %v847_v29  ;;  %v169_v29 = vperm.slane %v5027_v26, 5 }
  0xa6   :  { %1125 = vst [vmem:[#allocation2] sm:$0xff] %v865_v30 }
  0xa7   :  { %v882_v31 = vpop.f32.mrf.mxu2 }
  0xa8   :  { %v883_v33 = vadd.f32 %v882_v31, %v165_v50 }
  0xa9   :  { %v900_v32 = vpop.f32.mrf.mxu3  ;;  %v848_v34 = vpop.f32.mrf.mxu0 }
  0xaa   :  { %v849_v39 = vadd.f32 %v848_v34, %v164_v27  ;;  %v901_v36 = vadd.f32 %v900_v32, %v883_v33 }
  0xab   :  { %v866_v35 = vpop.f32.mrf.mxu1 }
  0xac   :  { %v867_v37 = vadd.f32 %v866_v35, %v849_v39  ;;  %1126 = vst [vmem:[#allocation2 + $0x8] sm:$0xff] %v901_v36 }
  0xae   :  { %1133 = vst [vmem:[#allocation2 + $0x40] sm:$0xff] %v867_v37 }
  0xaf   :  { %v884_v38 = vpop.f32.mrf.mxu2 }
  0xb0   :  { %v885_v41 = vadd.f32 %v884_v38, %v165_v50 }
  0xb1   :  { %v902_v40 = vpop.f32.mrf.mxu3  ;;  %v851_v42 = vpop.f32.mrf.mxu0 }
  0xb2   :  { %v852_v44 = vadd.f32 %v851_v42, %v164_v27  ;;  %v903_v46 = vadd.f32 %v902_v40, %v885_v41 }
  0xb3   :  { %v869_v43 = vpop.f32.mrf.mxu1 }
  0xb4   :  { %v870_v47 = vadd.f32 %v869_v43, %v852_v44  ;;  %1134 = vst [vmem:[#allocation2 + $0x48] sm:$0xff] %v903_v46 }
  0xb6   :  { %1141 = vst [vmem:[#allocation2 + $0x80] sm:$0xff] %v870_v47 }
  0xb7   :  { %v887_v48 = vpop.f32.mrf.mxu2 }
  0xb8   :  { %v888_v51 = vadd.f32 %v887_v48, %v165_v50 }
  0xb9   :  { %v905_v49 = vpop.f32.mrf.mxu3  ;;  %v853_v52 = vpop.f32.mrf.mxu0 }
  0xba   :  { %v906_v54 = vadd.f32 %v905_v49, %v888_v51  ;;  %v170_v52 = vperm.slane %v5027_v26, 6 }
  0xbb   :  { %v871_v53 = vpop.f32.mrf.mxu1 }
  0xbc   :  { %1142 = vst [vmem:[#allocation2 + $0x88] sm:$0xff] %v906_v54 }
  0xbf   :  { %v889_v56 = vpop.f32.mrf.mxu2 }
  0xc1   :  { %v907_v57 = vpop.f32.mrf.mxu3  ;;  %v918_v58 = vpop.f32.mrf.mxu0 }
  0xc2   :  { %v919_v59 = vadd.f32 %v918_v58, %v166_v55 }
  0xc3   :  { %v936_v60 = vpop.f32.mrf.mxu1 }
  0xc4   :  { %v937_v61 = vadd.f32 %v936_v60, %v919_v59  ;;  %v171_v59 = vperm.slane %v5027_v26, 7 }
  0xc6   :  { %1127 = vst [vmem:[#allocation2 + $0x10] sm:$0xff] %v937_v61 }
  0xc7   :  { %v954_v63 = vpop.f32.mrf.mxu2 }
  0xc8   :  { %v955_v0 = vadd.f32 %v954_v63, %v167_v62 }
  0xc9   :  { %v972_v1 = vpop.f32.mrf.mxu3  ;;  %v920_v2 = vpop.f32.mrf.mxu0 }
  0xca   :  { %v921_v3 = vadd.f32 %v920_v2, %v166_v55  ;;  %v973_v5 = vadd.f32 %v972_v1, %v955_v0 }
  0xcb   :  { %v938_v4 = vpop.f32.mrf.mxu1 }
  0xcc   :  { %v939_v6 = vadd.f32 %v938_v4, %v921_v3  ;;  %1128 = vst [vmem:[#allocation2 + $0x18] sm:$0xff] %v973_v5 }
  0xce   :  { %1135 = vst [vmem:[#allocation2 + $0x50] sm:$0xff] %v939_v6 }
  0xcf   :  { %v956_v7 = vpop.f32.mrf.mxu2 }
  0xd0   :  { %v957_v8 = vadd.f32 %v956_v7, %v167_v62 }
  0xd1   :  { %v974_v9 = vpop.f32.mrf.mxu3  ;;  %v923_v10 = vpop.f32.mrf.mxu0 }
  0xd2   :  { %v924_v11 = vadd.f32 %v923_v10, %v166_v55  ;;  %v975_v13 = vadd.f32 %v974_v9, %v957_v8 }
  0xd3   :  { %v941_v12 = vpop.f32.mrf.mxu1 }
  0xd4   :  { %v942_v14 = vadd.f32 %v941_v12, %v924_v11  ;;  %1136 = vst [vmem:[#allocation2 + $0x58] sm:$0xff] %v975_v13 }
  0xd6   :  { %1143 = vst [vmem:[#allocation2 + $0x90] sm:$0xff] %v942_v14 }
  0xd7   :  { %v959_v15 = vpop.f32.mrf.mxu2 }
  0xd8   :  { %v960_v16 = vadd.f32 %v959_v15, %v167_v62 }
  0xd9   :  { %v977_v17 = vpop.f32.mrf.mxu3  ;;  %v925_v18 = vpop.f32.mrf.mxu0 }
  0xda   :  { %v978_v20 = vadd.f32 %v977_v17, %v960_v16 }
  0xdb   :  { %v943_v19 = vpop.f32.mrf.mxu1 }
  0xdc   :  { %1144 = vst [vmem:[#allocation2 + $0x98] sm:$0xff] %v978_v20  ;;  %v5037_v19 = vmov 0.0   ;;  %v5039_v20 = vmov 0.0  }
  0xdf   :  { %v961_v22 = vpop.f32.mrf.mxu2 }
  0xe0   :  { %v5043_v22 = vmov 0.0  }
  0xe1   :  { %v979_v23 = vpop.f32.mrf.mxu3  ;;  %v990_v24 = vpop.f32.mrf.mxu0 }
  0xe2   :  { %v991_v25 = vadd.f32 %v990_v24, %v168_v21 }
  0xe3   :  { %v1008_v27 = vpop.f32.mrf.mxu1 }
  0xe4   :  { %v1009_v28 = vadd.f32 %v1008_v27, %v991_v25 }
  0xe6   :  { %1129 = vst [vmem:[#allocation2 + $0x20] sm:$0xff] %v1009_v28 }
  0xe7   :  { %v1026_v45 = vpop.f32.mrf.mxu2 }
  0xe8   :  { %v1027_v30 = vadd.f32 %v1026_v45, %v169_v29 }
  0xe9   :  { %v1044_v50 = vpop.f32.mrf.mxu3  ;;  %v992_v31 = vpop.f32.mrf.mxu0 }
  0xea   :  { %v993_v32 = vadd.f32 %v992_v31, %v168_v21  ;;  %v1045_v34 = vadd.f32 %v1044_v50, %v1027_v30 }
  0xeb   :  { %v1010_v33 = vpop.f32.mrf.mxu1 }
  0xec   :  { %v1011_v35 = vadd.f32 %v1010_v33, %v993_v32  ;;  %1130 = vst [vmem:[#allocation2 + $0x28] sm:$0xff] %v1045_v34 }
  0xee   :  { %1137 = vst [vmem:[#allocation2 + $0x60] sm:$0xff] %v1011_v35 }
  0xef   :  { %v1028_v39 = vpop.f32.mrf.mxu2 }
  0xf0   :  { %v1029_v36 = vadd.f32 %v1028_v39, %v169_v29 }
  0xf1   :  { %v1046_v37 = vpop.f32.mrf.mxu3  ;;  %v995_v38 = vpop.f32.mrf.mxu0 }
  0xf2   :  { %v996_v40 = vadd.f32 %v995_v38, %v168_v21  ;;  %v1047_v42 = vadd.f32 %v1046_v37, %v1029_v36  ;;  %v5041_v21 = vmov 0.0  }
  0xf3   :  { %v1013_v41 = vpop.f32.mrf.mxu1 }
  0xf4   :  { %v1014_v43 = vadd.f32 %v1013_v41, %v996_v40  ;;  %1138 = vst [vmem:[#allocation2 + $0x68] sm:$0xff] %v1047_v42 }
  0xf6   :  { %1145 = vst [vmem:[#allocation2 + $0xa0] sm:$0xff] %v1014_v43 }
  0xf7   :  { %v1031_v44 = vpop.f32.mrf.mxu2 }
  0xf8   :  { %v1032_v46 = vadd.f32 %v1031_v44, %v169_v29 }
  0xf9   :  { %v1049_v47 = vpop.f32.mrf.mxu3  ;;  %v997_v48 = vpop.f32.mrf.mxu0 }
  0xfa   :  { %v1050_v51 = vadd.f32 %v1049_v47, %v1032_v46 }
  0xfb   :  { %v1015_v49 = vpop.f32.mrf.mxu1 }
  0xfc   :  { %1146 = vst [vmem:[#allocation2 + $0xa8] sm:$0xff] %v1050_v51 }
  0xff   :  { %v1033_v53 = vpop.f32.mrf.mxu2 }
 0x101   :  { %v1051_v54 = vpop.f32.mrf.mxu3  ;;  %v1062_v55 = vpop.f32.mrf.mxu0 }
 0x102   :  { %v1063_v56 = vadd.f32 %v1062_v55, %v170_v52 }
 0x103   :  { %v1080_v57 = vpop.f32.mrf.mxu1 }
 0x104   :  { %v1081_v58 = vadd.f32 %v1080_v57, %v1063_v56 }
 0x106   :  { %1131 = vst [vmem:[#allocation2 + $0x30] sm:$0xff] %v1081_v58 }
 0x107   :  { %v1098_v60 = vpop.f32.mrf.mxu2 }
 0x108   :  { %v1099_v61 = vadd.f32 %v1098_v60, %v171_v59 }
 0x109   :  { %v1116_v62 = vpop.f32.mrf.mxu3  ;;  %v1064_v63 = vpop.f32.mrf.mxu0 }
 0x10a   :  { %v1065_v0 = vadd.f32 %v1064_v63, %v170_v52  ;;  %v1117_v2 = vadd.f32 %v1116_v62, %v1099_v61 }
 0x10b   :  { %v1082_v1 = vpop.f32.mrf.mxu1 }
 0x10c   :  { %v1083_v3 = vadd.f32 %v1082_v1, %v1065_v0  ;;  %1132 = vst [vmem:[#allocation2 + $0x38] sm:$0xff] %v1117_v2 }
 0x10e   :  { %1139 = vst [vmem:[#allocation2 + $0x70] sm:$0xff] %v1083_v3 }
 0x10f   :  { %v1100_v4 = vpop.f32.mrf.mxu2 }
 0x110   :  { %v1101_v5 = vadd.f32 %v1100_v4, %v171_v59 }
 0x111   :  { %v1118_v6 = vpop.f32.mrf.mxu3  ;;  %v1067_v7 = vpop.f32.mrf.mxu0 }
 0x112   :  { %v1068_v8 = vadd.f32 %v1067_v7, %v170_v52  ;;  %v1119_v10 = vadd.f32 %v1118_v6, %v1101_v5 }
 0x113   :  { %v1085_v9 = vpop.f32.mrf.mxu1 }
 0x114   :  { %v1086_v11 = vadd.f32 %v1085_v9, %v1068_v8  ;;  %1140 = vst [vmem:[#allocation2 + $0x78] sm:$0xff] %v1119_v10 }
 0x116   :  { %1147 = vst [vmem:[#allocation2 + $0xb0] sm:$0xff] %v1086_v11 }
 0x117   :  { %v1103_v26 = vpop.f32.mrf.mxu2 }
 0x118   :  { %v1104_v12 = vadd.f32 %v1103_v26, %v171_v59 }
 0x119   :  { %v1121_v13 = vpop.f32.mrf.mxu3  ;;  %v1069_v14 = vpop.f32.mrf.mxu0 }
 0x11a   :  { %v1122_v16 = vadd.f32 %v1121_v13, %v1104_v12 }
 0x11b   :  { %v1087_v15 = vpop.f32.mrf.mxu1 }
 0x11c   :  { %1148 = vst [vmem:[#allocation2 + $0xb8] sm:$0xff] %v1122_v16 }
 0x11f   :  { %v1105_v17 = vpop.f32.mrf.mxu2 }
 0x121   :  { %v1123_v18 = vpop.f32.mrf.mxu3 }
 0x122 LB: > { %v3329_v23 = vld [vmem:[%s6174_s2 + $0x1c0] sm:$0xf]  ;;  %v3936_v29 = vld [vmem:[%s6174_s2 + $0x1c4] sm:$0xf]  ;;  %s3100_s21 = sshll.u32 %s4151_s3, 3  ;;  %s1154_s3 = sadd.s32 1, %s4151_s3   ;;  %s4151_s3 = sphi %s5045_s3, %s1154_s3   ;;  %v4147_v22 = vphi %v5043_v22, %v6193_v22   ;;  %v4143_v21 = vphi %v5041_v21, %v6192_v21   ;;  %v4139_v20 = vphi %v5039_v20, %v2279_v20   ;;  %v4135_v19 = vphi %v5037_v19, %v2280_v19  }
 0x123   : > { %v3940_v24 = vld [vmem:[%s6174_s2 + $0x1dc] sm:$0xf0]  ;;  %v3331_v45 = vld [vmem:[%s6174_s2 + $0x1e0] sm:$0xf0]  ;;  %s1160_s22 = sshra.s32 %s3100_s21, 3  ;;  %p1151_p0 = scmp.ge.s32.totalorder %s1154_s3, 3  }
 0x124   : > { %v3585_v25 = vld [vmem:[%s6174_s2 + $0x3c0] sm:$0xf]  ;;  %v3330_v27 = vor.u32 %v3940_v24, %v3329_v23  ;;  %v3334_v50 = vor.u32 %v3936_v29, %v3331_v45  ;;  %v4000_v31 = vld [vmem:[%s6174_s2 + $0x3c4] sm:$0xf]  ;;  %s3879_s0 = sshll.u32 %s1160_s22, 6 }
 0x125   : > { %v4004_v28 = vld [vmem:[%s6174_s2 + $0x3dc] sm:$0xf0]  ;;  %v3587_v32 = vld [vmem:[%s6174_s2 + $0x3e0] sm:$0xf0]  ;;  %s5855_s23 = scalar_lea.vmem [#allocation2], %s3879_s0 }
 0x126   : > { %v3586_v30 = vor.u32 %v4004_v28, %v3585_v25  ;;  %v3297_v33 = vld [vmem:[%s6174_s2 + $0x180] sm:$0xf]  ;;  %1943 = vmatpush.bf16.msra.mxu0 %v3330_v27  ;;  %v3590_v34 = vor.u32 %v4000_v31, %v3587_v32  ;;  %1969 = vmatpush.bf16.msra.mxu2 %v3334_v50  ;;  %v3928_v40 = vld [vmem:[%s6174_s2 + $0x184] sm:$0xf] }
 0x127   : > { %v3932_v35 = vld [vmem:[%s6174_s2 + $0x19c] sm:$0xf0]  ;;  %v3299_v41 = vld [vmem:[%s6174_s2 + $0x1a0] sm:$0xf0] }
 0x128   : > { %v3553_v39 = vld [vmem:[%s6174_s2 + $0x380] sm:$0xf]  ;;  %1956 = vmatpush.bf16.msra.mxu1 %v3586_v30  ;;  %v3298_v37 = vor.u32 %v3932_v35, %v3297_v33  ;;  %v3992_v42 = vld [vmem:[%s6174_s2 + $0x384] sm:$0xf]  ;;  %1982 = vmatpush.bf16.msra.mxu3 %v3590_v34  ;;  %v3302_v43 = vor.u32 %v3928_v40, %v3299_v41 }
 0x129   : > { %v3996_v36 = vld [vmem:[%s6174_s2 + $0x39c] sm:$0xf0]  ;;  %v3555_v44 = vld [vmem:[%s6174_s2 + $0x3a0] sm:$0xf0] }
 0x12a   : > { %v3554_v38 = vor.u32 %v3996_v36, %v3553_v39  ;;  %v3265_v46 = vld [vmem:[%s6174_s2 + $0x140] sm:$0xf]  ;;  %v3558_v48 = vor.u32 %v3992_v42, %v3555_v44  ;;  %v3920_v52 = vld [vmem:[%s6174_s2 + $0x144] sm:$0xf]  ;;  %1944 = vmatpush.bf16.msra.mxu0 %v3298_v37  ;;  %1970 = vmatpush.bf16.msra.mxu2 %v3302_v43 }
 0x12b   : > { %v3924_v47 = vld [vmem:[%s6174_s2 + $0x15c] sm:$0xf0]  ;;  %v3267_v54 = vld [vmem:[%s6174_s2 + $0x160] sm:$0xf0] }
 0x12c   : > { %v3521_v49 = vld [vmem:[%s6174_s2 + $0x340] sm:$0xf]  ;;  %v3266_v53 = vor.u32 %v3924_v47, %v3265_v46  ;;  %v3984_v55 = vld [vmem:[%s6174_s2 + $0x344] sm:$0xf]  ;;  %1957 = vmatpush.bf16.msra.mxu1 %v3554_v38  ;;  %v3270_v58 = vor.u32 %v3920_v52, %v3267_v54  ;;  %1983 = vmatpush.bf16.msra.mxu3 %v3558_v48 }
 0x12d   : > { %v3988_v51 = vld [vmem:[%s6174_s2 + $0x35c] sm:$0xf0]  ;;  %v3523_v56 = vld [vmem:[%s6174_s2 + $0x360] sm:$0xf0] }
 0x12e   : > { %v3522_v57 = vor.u32 %v3988_v51, %v3521_v49  ;;  %v3233_v59 = vld [vmem:[%s6174_s2 + $0x100] sm:$0xf]  ;;  %v3526_v62 = vor.u32 %v3984_v55, %v3523_v56  ;;  %v3912_v0 = vld [vmem:[%s6174_s2 + $0x104] sm:$0xf]  ;;  %1945 = vmatpush.bf16.msra.mxu0 %v3266_v53  ;;  %1971 = vmatpush.bf16.msra.mxu2 %v3270_v58  ;;  %v3337_v56 = vld [vmem:[%s6174_s2 + $0x1c8] sm:$0xf] }
 0x12f   : > { %v3916_v60 = vld [vmem:[%s6174_s2 + $0x11c] sm:$0xf0]  ;;  %v3235_v1 = vld [vmem:[%s6174_s2 + $0x120] sm:$0xf0]  ;;  %v3593_v58 = vld [vmem:[%s6174_s2 + $0x3c8] sm:$0xf] }
 0x130   : > { %v3489_v61 = vld [vmem:[%s6174_s2 + $0x300] sm:$0xf]  ;;  %v3976_v2 = vld [vmem:[%s6174_s2 + $0x304] sm:$0xf]  ;;  %v3234_v4 = vor.u32 %v3916_v60, %v3233_v59  ;;  %1958 = vmatpush.bf16.msra.mxu1 %v3522_v57  ;;  %v3238_v6 = vor.u32 %v3912_v0, %v3235_v1  ;;  %1984 = vmatpush.bf16.msra.mxu3 %v3526_v62  ;;  %v3941_v57 = vld [vmem:[%s6174_s2 + $0x1e4] sm:$0xf0] }
 0x131   : > { %v3980_v63 = vld [vmem:[%s6174_s2 + $0x31c] sm:$0xf0]  ;;  %v3491_v3 = vld [vmem:[%s6174_s2 + $0x320] sm:$0xf0]  ;;  %v4005_v60 = vld [vmem:[%s6174_s2 + $0x3e4] sm:$0xf0] }
 0x132   : > { %v3490_v5 = vor.u32 %v3980_v63, %v3489_v61  ;;  %v3201_v7 = vld [vmem:[%s6174_s2 + $0xc0] sm:$0xf]  ;;  %v3494_v10 = vor.u32 %v3976_v2, %v3491_v3  ;;  %v3904_v26 = vld [vmem:[%s6174_s2 + $0xc4] sm:$0xf]  ;;  %1946 = vmatpush.bf16.msra.mxu0 %v3234_v4  ;;  %1972 = vmatpush.bf16.msra.mxu2 %v3238_v6  ;;  %v3937_v61 = vld [vmem:[%s6174_s2 + $0x1cc] sm:$0xf]  ;;  %v3338_v4 = vor.u32 %v3941_v57, %v3337_v56 }
 0x133   : > { %v3908_v8 = vld [vmem:[%s6174_s2 + $0xdc] sm:$0xf0]  ;;  %v3203_v12 = vld [vmem:[%s6174_s2 + $0xe0] sm:$0xf0]  ;;  %v3339_v62 = vld [vmem:[%s6174_s2 + $0x1e8] sm:$0xf0] }
 0x134   : > { %v3457_v9 = vld [vmem:[%s6174_s2 + $0x2c0] sm:$0xf]  ;;  %v3968_v13 = vld [vmem:[%s6174_s2 + $0x2c4] sm:$0xf]  ;;  %v3202_v15 = vor.u32 %v3908_v8, %v3201_v7  ;;  %1959 = vmatpush.bf16.msra.mxu1 %v3490_v5  ;;  %v3206_v17 = vor.u32 %v3904_v26, %v3203_v12  ;;  %1985 = vmatpush.bf16.msra.mxu3 %v3494_v10  ;;  %v4001_v1 = vld [vmem:[%s6174_s2 + $0x3cc] sm:$0xf]  ;;  %v3594_v5 = vor.u32 %v4005_v60, %v3593_v58 }
 0x135   : > { %v3972_v11 = vld [vmem:[%s6174_s2 + $0x2dc] sm:$0xf0]  ;;  %v3459_v14 = vld [vmem:[%s6174_s2 + $0x2e0] sm:$0xf0]  ;;  %v3595_v2 = vld [vmem:[%s6174_s2 + $0x3e8] sm:$0xf0]  ;;  %v3342_v6 = vor.u32 %v3937_v61, %v3339_v62 }
 0x136   : > { %v3458_v16 = vor.u32 %v3972_v11, %v3457_v9  ;;  %v3169_v18 = vld [vmem:[%s6174_s2 + $0x80] sm:$0xf]  ;;  %v3462_v25 = vor.u32 %v3968_v13, %v3459_v14  ;;  %v3896_v28 = vld [vmem:[%s6174_s2 + $0x84] sm:$0xf]  ;;  %1947 = vmatpush.bf16.msra.mxu0 %v3202_v15  ;;  %1973 = vmatpush.bf16.msra.mxu2 %v3206_v17  ;;  %v3305_v7 = vld [vmem:[%s6174_s2 + $0x188] sm:$0xf]  ;;  %v3598_v10 = vor.u32 %v4001_v1, %v3595_v2 }
 0x137   : > { %v3900_v23 = vld [vmem:[%s6174_s2 + $0x9c] sm:$0xf0]  ;;  %v3171_v29 = vld [vmem:[%s6174_s2 + $0xa0] sm:$0xf0]  ;;  %v3933_v8 = vld [vmem:[%s6174_s2 + $0x1a4] sm:$0xf0]  ;;  %v5298_v13 = vpack.c.bf16 %v4147_v22, %v4147_v22 }
 0x138   : > { %v3425_v24 = vld [vmem:[%s6174_s2 + $0x280] sm:$0xf]  ;;  %v3960_v45 = vld [vmem:[%s6174_s2 + $0x284] sm:$0xf]  ;;  %v3170_v50 = vor.u32 %v3900_v23, %v3169_v18  ;;  %1960 = vmatpush.bf16.msra.mxu1 %v3458_v16  ;;  %v3174_v32 = vor.u32 %v3896_v28, %v3171_v29  ;;  %1986 = vmatpush.bf16.msra.mxu3 %v3462_v25  ;;  %v3561_v9 = vld [vmem:[%s6174_s2 + $0x388] sm:$0xf]  ;;  %v5308_v16 = vpack.c.bf16 %v4143_v21, %v4143_v21 }
 0x139   : > { %v3964_v27 = vld [vmem:[%s6174_s2 + $0x29c] sm:$0xf0]  ;;  %v3427_v30 = vld [vmem:[%s6174_s2 + $0x2a0] sm:$0xf0]  ;;  %v3997_v11 = vld [vmem:[%s6174_s2 + $0x3a4] sm:$0xf0]  ;;  %v3306_v17 = vor.u32 %v3933_v8, %v3305_v7 }
 0x13a   : > { %v3426_v31 = vor.u32 %v3964_v27, %v3425_v24  ;;  %v3137_v33 = vld [vmem:[%s6174_s2 + $0x40] sm:$0xf]  ;;  %v3430_v39 = vor.u32 %v3960_v45, %v3427_v30  ;;  %v3888_v37 = vld [vmem:[%s6174_s2 + $0x44] sm:$0xf]  ;;  %1948 = vmatpush.bf16.msra.mxu0 %v3170_v50  ;;  %1974 = vmatpush.bf16.msra.mxu2 %v3174_v32  ;;  %v3929_v26 = vld [vmem:[%s6174_s2 + $0x18c] sm:$0xf]  ;;  %v3562_v22 = vor.u32 %v3997_v11, %v3561_v9 }
 0x13b   : > { %v3892_v34 = vld [vmem:[%s6174_s2 + $0x5c] sm:$0xf0]  ;;  %v3139_v38 = vld [vmem:[%s6174_s2 + $0x60] sm:$0xf0]  ;;  %v3307_v12 = vld [vmem:[%s6174_s2 + $0x1a8] sm:$0xf0] }
 0x13c   : > { %v3393_v35 = vld [vmem:[%s6174_s2 + $0x240] sm:$0xf]  ;;  %v3952_v40 = vld [vmem:[%s6174_s2 + $0x244] sm:$0xf]  ;;  %v3138_v42 = vor.u32 %v3892_v34, %v3137_v33  ;;  %1961 = vmatpush.bf16.msra.mxu1 %v3426_v31  ;;  %v3142_v47 = vor.u32 %v3888_v37, %v3139_v38  ;;  %1987 = vmatpush.bf16.msra.mxu3 %v3430_v39  ;;  %v3993_v14 = vld [vmem:[%s6174_s2 + $0x38c] sm:$0xf]  ;;  %v3310_v18 = vor.u32 %v3929_v26, %v3307_v12 }
 0x13d   : > { %v3956_v36 = vld [vmem:[%s6174_s2 + $0x25c] sm:$0xf0]  ;;  %v3395_v41 = vld [vmem:[%s6174_s2 + $0x260] sm:$0xf0]  ;;  %v3563_v15 = vld [vmem:[%s6174_s2 + $0x3a8] sm:$0xf0] }
 0x13e   : > { %v3105_v43 = vld [vmem:[%s6174_s2] sm:$0xf]  ;;  %v3394_v46 = vor.u32 %v3956_v36, %v3393_v35  ;;  %v3880_v51 = vld [vmem:[%s6174_s2 + $0x4] sm:$0xf]  ;;  %v3398_v52 = vor.u32 %v3952_v40, %v3395_v41  ;;  %1949 = vmatpush.bf16.msra.mxu0 %v3138_v42  ;;  %1975 = vmatpush.bf16.msra.mxu2 %v3142_v47  ;;  %v3273_v23 = vld [vmem:[%s6174_s2 + $0x148] sm:$0xf]  ;;  %v3566_v25 = vor.u32 %v3993_v14, %v3563_v15 }
 0x13f   : > { %v3884_v44 = vld [vmem:[%s6174_s2 + $0x1c] sm:$0xf0]  ;;  %v3107_v53 = vld [vmem:[%s6174_s2 + $0x20] sm:$0xf0]  ;;  %v3925_v24 = vld [vmem:[%s6174_s2 + $0x164] sm:$0xf0] }
 0x140   : > { %v3361_v48 = vld [vmem:[%s6174_s2 + $0x200] sm:$0xf]  ;;  %v3944_v54 = vld [vmem:[%s6174_s2 + $0x204] sm:$0xf]  ;;  %v3106_v59 = vor.u32 %v3884_v44, %v3105_v43  ;;  %1962 = vmatpush.bf16.msra.mxu1 %v3394_v46  ;;  %v3110_v0 = vor.u32 %v3880_v51, %v3107_v53  ;;  %1988 = vmatpush.bf16.msra.mxu3 %v3398_v52  ;;  %v3529_v21 = vld [vmem:[%s6174_s2 + $0x348] sm:$0xf]  ;;  %v3274_v50 = vor.u32 %v3925_v24, %v3273_v23 }
 0x141   : > { %v3948_v49 = vld [vmem:[%s6174_s2 + $0x21c] sm:$0xf0]  ;;  %v3363_v55 = vld [vmem:[%s6174_s2 + $0x220] sm:$0xf0]  ;;  %v3989_v27 = vld [vmem:[%s6174_s2 + $0x364] sm:$0xf0] }
 0x142   : > { %v3362_v63 = vor.u32 %v3948_v49, %v3361_v48  ;;  %v3366_v3 = vor.u32 %v3944_v54, %v3363_v55  ;;  %1950 = vmatpush.bf16.msra.mxu0 %v3106_v59  ;;  %1976 = vmatpush.bf16.msra.mxu2 %v3110_v0  ;;  %v3921_v28 = vld [vmem:[%s6174_s2 + $0x14c] sm:$0xf]  ;;  %v3530_v31 = vor.u32 %v3989_v27, %v3529_v21  ;;  %v3241_v33 = vld [vmem:[%s6174_s2 + $0x108] sm:$0xf] }
 0x143   : > { %v3275_v29 = vld [vmem:[%s6174_s2 + $0x168] sm:$0xf0]  ;;  %v3917_v34 = vld [vmem:[%s6174_s2 + $0x124] sm:$0xf0] }
 0x144   : > { %1963 = vmatpush.bf16.msra.mxu1 %v3362_v63  ;;  %1989 = vmatpush.bf16.msra.mxu3 %v3366_v3  ;;  %v3985_v45 = vld [vmem:[%s6174_s2 + $0x34c] sm:$0xf]  ;;  %v3278_v32 = vor.u32 %v3921_v28, %v3275_v29  ;;  %v3497_v35 = vld [vmem:[%s6174_s2 + $0x308] sm:$0xf]  ;;  %v3242_v42 = vor.u32 %v3917_v34, %v3241_v33  ;;  %v4006_v34 = vld [vmem:[%s6174_s2 + $0x3ec] sm:$0xf0] }
 0x145   : > { %1977 = vmatmul.bf16.vlgmr.msra.gmra.mxu2 %v5298_v13  ;;  %v3531_v30 = vld [vmem:[%s6174_s2 + $0x368] sm:$0xf0]  ;;  %1951 = vmatmul.bf16.vlgmr.msra.gmra.mxu0 %v5298_v13  ;;  %v3981_v36 = vld [vmem:[%s6174_s2 + $0x324] sm:$0xf0] }
 0x146   : > { %1995 = vmatpush.bf16.msrb.mxu0 %v3338_v4  ;;  %2021 = vmatpush.bf16.msrb.mxu2 %v3342_v6  ;;  %v3534_v39 = vor.u32 %v3985_v45, %v3531_v30  ;;  %v3913_v37 = vld [vmem:[%s6174_s2 + $0x10c] sm:$0xf]  ;;  %v3498_v43 = vor.u32 %v3981_v36, %v3497_v35  ;;  %v3209_v46 = vld [vmem:[%s6174_s2 + $0xc8] sm:$0xf]  ;;  %v3938_v35 = vld [vmem:[%s6174_s2 + $0x1d4] sm:$0xf] }
 0x147   : > { %1990 = vmatmul.bf16.vlgmr.msra.gmra.mxu3 %v5308_v16  ;;  %1964 = vmatmul.bf16.vlgmr.msra.gmra.mxu1 %v5308_v16  ;;  %v3243_v38 = vld [vmem:[%s6174_s2 + $0x128] sm:$0xf0]  ;;  %v3909_v47 = vld [vmem:[%s6174_s2 + $0xe4] sm:$0xf0] }
 0x148   : > { %2008 = vmatpush.bf16.msrb.mxu1 %v3594_v5  ;;  %2034 = vmatpush.bf16.msrb.mxu3 %v3598_v10  ;;  %v3977_v40 = vld [vmem:[%s6174_s2 + $0x30c] sm:$0xf]  ;;  %v3246_v44 = vor.u32 %v3913_v37, %v3243_v38  ;;  %v3465_v48 = vld [vmem:[%s6174_s2 + $0x2c8] sm:$0xf]  ;;  %v3210_v56 = vor.u32 %v3909_v47, %v3209_v46  ;;  %v4002_v38 = vld [vmem:[%s6174_s2 + $0x3d4] sm:$0xf] }
 0x149   : > { %v3499_v41 = vld [vmem:[%s6174_s2 + $0x328] sm:$0xf0]  ;;  %v3973_v51 = vld [vmem:[%s6174_s2 + $0x2e4] sm:$0xf0]  ;;  %v3313_v46 = vld [vmem:[%s6174_s2 + $0x190] sm:$0xf] }
 0x14a   : > { %1996 = vmatpush.bf16.msrb.mxu0 %v3306_v17  ;;  %2022 = vmatpush.bf16.msrb.mxu2 %v3310_v18  ;;  %v3502_v49 = vor.u32 %v3977_v40, %v3499_v41  ;;  %v3905_v52 = vld [vmem:[%s6174_s2 + $0xcc] sm:$0xf]  ;;  %v3466_v57 = vor.u32 %v3973_v51, %v3465_v48  ;;  %v3177_v59 = vld [vmem:[%s6174_s2 + $0x88] sm:$0xf]  ;;  %v3603_v40 = vld [vmem:[%s6174_s2 + $0x3f0] sm:$0xf0] }
 0x14b   : > { %v3211_v53 = vld [vmem:[%s6174_s2 + $0xe8] sm:$0xf0]  ;;  %v3901_v60 = vld [vmem:[%s6174_s2 + $0xa4] sm:$0xf0]  ;;  %v3934_v47 = vld [vmem:[%s6174_s2 + $0x1ac] sm:$0xf0] }
 0x14c   : > { %2009 = vmatpush.bf16.msrb.mxu1 %v3562_v22  ;;  %2035 = vmatpush.bf16.msrb.mxu3 %v3566_v25  ;;  %v3969_v54 = vld [vmem:[%s6174_s2 + $0x2cc] sm:$0xf]  ;;  %v3214_v58 = vor.u32 %v3905_v52, %v3211_v53  ;;  %v3433_v61 = vld [vmem:[%s6174_s2 + $0x288] sm:$0xf]  ;;  %v3178_v4 = vor.u32 %v3901_v60, %v3177_v59  ;;  %v3569_v48 = vld [vmem:[%s6174_s2 + $0x390] sm:$0xf] }
 0x14d   : > { %v3467_v55 = vld [vmem:[%s6174_s2 + $0x2e8] sm:$0xf0]  ;;  %v3965_v63 = vld [vmem:[%s6174_s2 + $0x2a4] sm:$0xf0]  ;;  %v3998_v51 = vld [vmem:[%s6174_s2 + $0x3ac] sm:$0xf0] }
 0x14e   : > { %1997 = vmatpush.bf16.msrb.mxu0 %v3274_v50  ;;  %2023 = vmatpush.bf16.msrb.mxu2 %v3278_v32  ;;  %v3470_v62 = vor.u32 %v3969_v54, %v3467_v55  ;;  %v3897_v0 = vld [vmem:[%s6174_s2 + $0x8c] sm:$0xf]  ;;  %v3434_v5 = vor.u32 %v3965_v63, %v3433_v61  ;;  %v3145_v7 = vld [vmem:[%s6174_s2 + $0x48] sm:$0xf]  ;;  %v3345_v50 = vld [vmem:[%s6174_s2 + $0x1d0] sm:$0xf] }
 0x14f   : > { %v3179_v1 = vld [vmem:[%s6174_s2 + $0xa8] sm:$0xf0]  ;;  %v3893_v8 = vld [vmem:[%s6174_s2 + $0x64] sm:$0xf0]  ;;  %v3601_v32 = vld [vmem:[%s6174_s2 + $0x3d0] sm:$0xf] }
 0x150   : > { %2010 = vmatpush.bf16.msrb.mxu1 %v3530_v31  ;;  %2036 = vmatpush.bf16.msrb.mxu3 %v3534_v39  ;;  %v3961_v2 = vld [vmem:[%s6174_s2 + $0x28c] sm:$0xf]  ;;  %v3182_v6 = vor.u32 %v3897_v0, %v3179_v1  ;;  %v3401_v9 = vld [vmem:[%s6174_s2 + $0x248] sm:$0xf]  ;;  %v3146_v17 = vor.u32 %v3893_v8, %v3145_v7  ;;  %v3942_v31 = vld [vmem:[%s6174_s2 + $0x1ec] sm:$0xf0] }
 0x151   : > { %v3435_v3 = vld [vmem:[%s6174_s2 + $0x2a8] sm:$0xf0]  ;;  %v3957_v11 = vld [vmem:[%s6174_s2 + $0x264] sm:$0xf0]  ;;  %v3347_v39 = vld [vmem:[%s6174_s2 + $0x1f0] sm:$0xf0] }
 0x152   : > { %1998 = vmatpush.bf16.msrb.mxu0 %v3242_v42  ;;  %2024 = vmatpush.bf16.msrb.mxu2 %v3246_v44  ;;  %v3438_v10 = vor.u32 %v3961_v2, %v3435_v3  ;;  %v3889_v26 = vld [vmem:[%s6174_s2 + $0x4c] sm:$0xf]  ;;  %v3113_v22 = vld [vmem:[%s6174_s2 + $0x8] sm:$0xf]  ;;  %v3402_v23 = vor.u32 %v3957_v11, %v3401_v9  ;;  %v3346_v42 = vor.u32 %v3942_v31, %v3345_v50  ;;  %v3930_v52 = vld [vmem:[%s6174_s2 + $0x194] sm:$0xf] }
 0x153   : > { %v3147_v12 = vld [vmem:[%s6174_s2 + $0x68] sm:$0xf0]  ;;  %v3885_v18 = vld [vmem:[%s6174_s2 + $0x24] sm:$0xf0]  ;;  %v3350_v44 = vor.u32 %v3938_v35, %v3347_v39  ;;  %v3315_v53 = vld [vmem:[%s6174_s2 + $0x1b0] sm:$0xf0] }
 0x154   : > { %2011 = vmatpush.bf16.msrb.mxu1 %v3498_v43  ;;  %2037 = vmatpush.bf16.msrb.mxu3 %v3502_v49  ;;  %v3953_v14 = vld [vmem:[%s6174_s2 + $0x24c] sm:$0xf]  ;;  %v3150_v24 = vor.u32 %v3889_v26, %v3147_v12  ;;  %v3369_v21 = vld [vmem:[%s6174_s2 + $0x208] sm:$0xf]  ;;  %v3114_v33 = vor.u32 %v3885_v18, %v3113_v22  ;;  %v3602_v43 = vor.u32 %v4006_v34, %v3601_v32  ;;  %v3994_v54 = vld [vmem:[%s6174_s2 + $0x394] sm:$0xf] }
 0x155   : > { %v3403_v15 = vld [vmem:[%s6174_s2 + $0x268] sm:$0xf0]  ;;  %v3949_v25 = vld [vmem:[%s6174_s2 + $0x224] sm:$0xf0]  ;;  %v3606_v49 = vor.u32 %v4002_v38, %v3603_v40  ;;  %v3571_v55 = vld [vmem:[%s6174_s2 + $0x3b0] sm:$0xf0] }
 0x156   : > { %1999 = vmatpush.bf16.msrb.mxu0 %v3210_v56  ;;  %2025 = vmatpush.bf16.msrb.mxu2 %v3214_v58  ;;  %v3881_v27 = vld [vmem:[%s6174_s2 + $0xc] sm:$0xf]  ;;  %v3406_v28 = vor.u32 %v3953_v14, %v3403_v15  ;;  %v3370_v36 = vor.u32 %v3949_v25, %v3369_v21  ;;  %v3314_v56 = vor.u32 %v3934_v47, %v3313_v46  ;;  %v3281_v59 = vld [vmem:[%s6174_s2 + $0x150] sm:$0xf]  ;;  %v3922_v0 = vld [vmem:[%s6174_s2 + $0x154] sm:$0xf] }
 0x157   : > { %v3115_v29 = vld [vmem:[%s6174_s2 + $0x28] sm:$0xf0]  ;;  %v3318_v58 = vor.u32 %v3930_v52, %v3315_v53  ;;  %v3926_v60 = vld [vmem:[%s6174_s2 + $0x16c] sm:$0xf0]  ;;  %v3283_v1 = vld [vmem:[%s6174_s2 + $0x170] sm:$0xf0] }
 0x158   : > { %2012 = vmatpush.bf16.msrb.mxu1 %v3466_v57  ;;  %2038 = vmatpush.bf16.msrb.mxu3 %v3470_v62  ;;  %v3945_v45 = vld [vmem:[%s6174_s2 + $0x20c] sm:$0xf]  ;;  %v3118_v37 = vor.u32 %v3881_v27, %v3115_v29  ;;  %v3570_v57 = vor.u32 %v3998_v51, %v3569_v48  ;;  %v3537_v61 = vld [vmem:[%s6174_s2 + $0x350] sm:$0xf]  ;;  %v3574_v62 = vor.u32 %v3994_v54, %v3571_v55  ;;  %v3986_v2 = vld [vmem:[%s6174_s2 + $0x354] sm:$0xf] }
 0x159   : > { %v3371_v30 = vld [vmem:[%s6174_s2 + $0x228] sm:$0xf0]  ;;  %v3990_v63 = vld [vmem:[%s6174_s2 + $0x36c] sm:$0xf0]  ;;  %v3539_v3 = vld [vmem:[%s6174_s2 + $0x370] sm:$0xf0] }
 0x15a   : > { %2000 = vmatpush.bf16.msrb.mxu0 %v3178_v4  ;;  %2026 = vmatpush.bf16.msrb.mxu2 %v3182_v6  ;;  %v3374_v41 = vor.u32 %v3945_v45, %v3371_v30  ;;  %v3282_v4 = vor.u32 %v3926_v60, %v3281_v59  ;;  %v3286_v6 = vor.u32 %v3922_v0, %v3283_v1  ;;  %v3249_v7 = vld [vmem:[%s6174_s2 + $0x110] sm:$0xf]  ;;  %v3914_v26 = vld [vmem:[%s6174_s2 + $0x114] sm:$0xf] }
 0x15b   : > { %v3918_v8 = vld [vmem:[%s6174_s2 + $0x12c] sm:$0xf0]  ;;  %v3251_v12 = vld [vmem:[%s6174_s2 + $0x130] sm:$0xf0] }
 0x15c   : > { %2013 = vmatpush.bf16.msrb.mxu1 %v3434_v5  ;;  %2039 = vmatpush.bf16.msrb.mxu3 %v3438_v10  ;;  %v3538_v5 = vor.u32 %v3990_v63, %v3537_v61  ;;  %v3505_v9 = vld [vmem:[%s6174_s2 + $0x310] sm:$0xf]  ;;  %v3542_v10 = vor.u32 %v3986_v2, %v3539_v3  ;;  %v3978_v14 = vld [vmem:[%s6174_s2 + $0x314] sm:$0xf]  ;;  %v3254_v18 = vor.u32 %v3914_v26, %v3251_v12  ;;  %v4003_v12 = vld [vmem:[%s6174_s2 + $0x3dc] sm:$0xf] }
 0x15d   : > { %v3982_v11 = vld [vmem:[%s6174_s2 + $0x32c] sm:$0xf0]  ;;  %v3507_v15 = vld [vmem:[%s6174_s2 + $0x330] sm:$0xf0] }
 0x15e   : > { %2001 = vmatpush.bf16.msrb.mxu0 %v3146_v17  ;;  %2027 = vmatpush.bf16.msrb.mxu2 %v3150_v24  ;;  %v3250_v17 = vor.u32 %v3918_v8, %v3249_v7  ;;  %v3506_v22 = vor.u32 %v3982_v11, %v3505_v9  ;;  %v3910_v24 = vld [vmem:[%s6174_s2 + $0xec] sm:$0xf0]  ;;  %v3510_v25 = vor.u32 %v3978_v14, %v3507_v15  ;;  %v3219_v29 = vld [vmem:[%s6174_s2 + $0xf0] sm:$0xf0]  ;;  %v4007_v8 = vld [vmem:[%s6174_s2 + $0x3f4] sm:$0xf0] }
 0x15f   : > { %v3473_v21 = vld [vmem:[%s6174_s2 + $0x2d0] sm:$0xf]  ;;  %v3970_v45 = vld [vmem:[%s6174_s2 + $0x2d4] sm:$0xf]  ;;  %v3939_v9 = vld [vmem:[%s6174_s2 + $0x1dc] sm:$0xf] }
 0x160   : > { %2014 = vmatpush.bf16.msrb.mxu1 %v3402_v23  ;;  %2040 = vmatpush.bf16.msrb.mxu3 %v3406_v28  ;;  %v3217_v23 = vld [vmem:[%s6174_s2 + $0xd0] sm:$0xf]  ;;  %v3906_v28 = vld [vmem:[%s6174_s2 + $0xd4] sm:$0xf]  ;;  %v3611_v14 = vld [vmem:[%s6174_s2 + $0x3f8] sm:$0xf0] }
 0x161   : > { %v3974_v27 = vld [vmem:[%s6174_s2 + $0x2ec] sm:$0xf0]  ;;  %v3475_v30 = vld [vmem:[%s6174_s2 + $0x2f0] sm:$0xf0]  ;;  %v3218_v50 = vor.u32 %v3910_v24, %v3217_v23  ;;  %v3222_v32 = vor.u32 %v3906_v28, %v3219_v29  ;;  %v3321_v23 = vld [vmem:[%s6174_s2 + $0x198] sm:$0xf] }
 0x162   : > { %2002 = vmatpush.bf16.msrb.mxu0 %v3114_v33  ;;  %2028 = vmatpush.bf16.msrb.mxu2 %v3118_v37  ;;  %v3474_v31 = vor.u32 %v3974_v27, %v3473_v21  ;;  %v3185_v33 = vld [vmem:[%s6174_s2 + $0x90] sm:$0xf]  ;;  %v3478_v39 = vor.u32 %v3970_v45, %v3475_v30  ;;  %v3898_v37 = vld [vmem:[%s6174_s2 + $0x94] sm:$0xf]  ;;  %v3935_v24 = vld [vmem:[%s6174_s2 + $0x1b4] sm:$0xf0] }
 0x163   : > { %v3902_v34 = vld [vmem:[%s6174_s2 + $0xac] sm:$0xf0]  ;;  %v3187_v38 = vld [vmem:[%s6174_s2 + $0xb0] sm:$0xf0]  ;;  %v3577_v21 = vld [vmem:[%s6174_s2 + $0x398] sm:$0xf] }
 0x164   : > { %2015 = vmatpush.bf16.msrb.mxu1 %v3370_v36  ;;  %2041 = vmatpush.bf16.msrb.mxu3 %v3374_v41  ;;  %v3441_v35 = vld [vmem:[%s6174_s2 + $0x290] sm:$0xf]  ;;  %v3962_v40 = vld [vmem:[%s6174_s2 + $0x294] sm:$0xf]  ;;  %v3999_v27 = vld [vmem:[%s6174_s2 + $0x3b4] sm:$0xf0] }
 0x165   : > { %2003 = vmatmul.bf16.vlgmr.msrb.gmra.mxu0 %v5298_v13  ;;  %2029 = vmatmul.bf16.vlgmr.msrb.gmra.mxu2 %v5298_v13  ;;  %v3966_v36 = vld [vmem:[%s6174_s2 + $0x2ac] sm:$0xf0]  ;;  %v3443_v41 = vld [vmem:[%s6174_s2 + $0x2b0] sm:$0xf0]  ;;  %v3931_v28 = vld [vmem:[%s6174_s2 + $0x19c] sm:$0xf] }
 0x166   : > { %2047 = vmatpush.bf16.msra.mxu0 %v3346_v42  ;;  %2073 = vmatpush.bf16.msra.mxu2 %v3350_v44  ;;  %v3186_v42 = vor.u32 %v3902_v34, %v3185_v33  ;;  %v3190_v44 = vor.u32 %v3898_v37, %v3187_v38  ;;  %v3153_v46 = vld [vmem:[%s6174_s2 + $0x50] sm:$0xf]  ;;  %v3890_v52 = vld [vmem:[%s6174_s2 + $0x54] sm:$0xf]  ;;  %v3323_v29 = vld [vmem:[%s6174_s2 + $0x1b8] sm:$0xf0] }
 0x167   : > { %2016 = vmatmul.bf16.vlgmr.msrb.gmra.mxu1 %v5308_v16  ;;  %2042 = vmatmul.bf16.vlgmr.msrb.gmra.mxu3 %v5308_v16  ;;  %v3894_v47 = vld [vmem:[%s6174_s2 + $0x6c] sm:$0xf0]  ;;  %v3155_v53 = vld [vmem:[%s6174_s2 + $0x70] sm:$0xf0]  ;;  %v3995_v45 = vld [vmem:[%s6174_s2 + $0x39c] sm:$0xf] }
 0x168   : > { %2060 = vmatpush.bf16.msra.mxu1 %v3602_v43  ;;  %2086 = vmatpush.bf16.msra.mxu3 %v3606_v49  ;;  %v3442_v43 = vor.u32 %v3966_v36, %v3441_v35  ;;  %v3409_v48 = vld [vmem:[%s6174_s2 + $0x250] sm:$0xf]  ;;  %v3446_v49 = vor.u32 %v3962_v40, %v3443_v41  ;;  %v3954_v54 = vld [vmem:[%s6174_s2 + $0x254] sm:$0xf]  ;;  %v3158_v60 = vor.u32 %v3890_v52, %v3155_v53  ;;  %v3579_v30 = vld [vmem:[%s6174_s2 + $0x3b8] sm:$0xf0] }
 0x169   : > { %v3958_v51 = vld [vmem:[%s6174_s2 + $0x26c] sm:$0xf0]  ;;  %v3411_v55 = vld [vmem:[%s6174_s2 + $0x270] sm:$0xf0]  ;;  %v3289_v33 = vld [vmem:[%s6174_s2 + $0x158] sm:$0xf] }
 0x16a   : > { %2048 = vmatpush.bf16.msra.mxu0 %v3314_v56  ;;  %2074 = vmatpush.bf16.msra.mxu2 %v3318_v58  ;;  %v3154_v56 = vor.u32 %v3894_v47, %v3153_v46  ;;  %v3886_v58 = vld [vmem:[%s6174_s2 + $0x2c] sm:$0xf0]  ;;  %v3410_v59 = vor.u32 %v3958_v51, %v3409_v48  ;;  %v3882_v63 = vld [vmem:[%s6174_s2 + $0x14] sm:$0xf]  ;;  %v3414_v0 = vor.u32 %v3954_v54, %v3411_v55  ;;  %v3927_v34 = vld [vmem:[%s6174_s2 + $0x174] sm:$0xf0] }
 0x16b   : > { %v3377_v61 = vld [vmem:[%s6174_s2 + $0x210] sm:$0xf]  ;;  %v3123_v1 = vld [vmem:[%s6174_s2 + $0x30] sm:$0xf0]  ;;  %v3545_v35 = vld [vmem:[%s6174_s2 + $0x358] sm:$0xf] }
 0x16c   : > { %2061 = vmatpush.bf16.msra.mxu1 %v3570_v57  ;;  %2087 = vmatpush.bf16.msra.mxu3 %v3574_v62  ;;  %v3121_v57 = vld [vmem:[%s6174_s2 + $0x10] sm:$0xf]  ;;  %v3946_v2 = vld [vmem:[%s6174_s2 + $0x214] sm:$0xf]  ;;  %v3126_v26 = vor.u32 %v3882_v63, %v3123_v1  ;;  %v3991_v36 = vld [vmem:[%s6174_s2 + $0x374] sm:$0xf0] }
 0x16d   : > { %v3950_v62 = vld [vmem:[%s6174_s2 + $0x22c] sm:$0xf0]  ;;  %v3379_v3 = vld [vmem:[%s6174_s2 + $0x230] sm:$0xf0]  ;;  %v3122_v7 = vor.u32 %v3886_v58, %v3121_v57  ;;  %v3923_v37 = vld [vmem:[%s6174_s2 + $0x15c] sm:$0xf] }
 0x16e   : > { %2049 = vmatpush.bf16.msra.mxu0 %v3282_v4  ;;  %2075 = vmatpush.bf16.msra.mxu2 %v3286_v6  ;;  %v3353_v4 = vld [vmem:[%s6174_s2 + $0x1d8] sm:$0xf]  ;;  %v3378_v11 = vor.u32 %v3950_v62, %v3377_v61  ;;  %v3382_v15 = vor.u32 %v3946_v2, %v3379_v3  ;;  %v3291_v38 = vld [vmem:[%s6174_s2 + $0x178] sm:$0xf0] }
 0x16f   : > { %v3609_v6 = vld [vmem:[%s6174_s2 + $0x3d8] sm:$0xf]  ;;  %v3987_v40 = vld [vmem:[%s6174_s2 + $0x35c] sm:$0xf] }
 0x170   : > { %2062 = vmatpush.bf16.msra.mxu1 %v3538_v5  ;;  %2088 = vmatpush.bf16.msra.mxu3 %v3542_v10  ;;  %v3943_v5 = vld [vmem:[%s6174_s2 + $0x1f4] sm:$0xf0]  ;;  %v3355_v10 = vld [vmem:[%s6174_s2 + $0x1f8] sm:$0xf0] }
 0x171   : > { %v3547_v41 = vld [vmem:[%s6174_s2 + $0x378] sm:$0xf0]  ;;  %v3257_v46 = vld [vmem:[%s6174_s2 + $0x118] sm:$0xf] }
 0x172   : > { %2050 = vmatpush.bf16.msra.mxu0 %v3250_v17  ;;  %2076 = vmatpush.bf16.msra.mxu2 %v3254_v18  ;;  %v3354_v17 = vor.u32 %v3943_v5, %v3353_v4  ;;  %v3358_v18 = vor.u32 %v3939_v9, %v3355_v10  ;;  %v3919_v47 = vld [vmem:[%s6174_s2 + $0x134] sm:$0xf0]  ;;  %v3915_v52 = vld [vmem:[%s6174_s2 + $0x11c] sm:$0xf] }
 0x173   : > { %v3513_v48 = vld [vmem:[%s6174_s2 + $0x318] sm:$0xf]  ;;  %v3259_v53 = vld [vmem:[%s6174_s2 + $0x138] sm:$0xf0] }
 0x174   : > { %2063 = vmatpush.bf16.msra.mxu1 %v3506_v22  ;;  %2089 = vmatpush.bf16.msra.mxu3 %v3510_v25  ;;  %v3610_v22 = vor.u32 %v4007_v8, %v3609_v6  ;;  %v3614_v25 = vor.u32 %v4003_v12, %v3611_v14  ;;  %v3983_v51 = vld [vmem:[%s6174_s2 + $0x334] sm:$0xf0]  ;;  %v3979_v54 = vld [vmem:[%s6174_s2 + $0x31c] sm:$0xf]  ;;  %v3262_v58 = vor.u32 %v3915_v52, %v3259_v53 }
 0x175   : > { %v3515_v55 = vld [vmem:[%s6174_s2 + $0x338] sm:$0xf0]  ;;  %v3514_v57 = vor.u32 %v3983_v51, %v3513_v48  ;;  %v3481_v61 = vld [vmem:[%s6174_s2 + $0x2d8] sm:$0xf] }
 0x176   : > { %2051 = vmatpush.bf16.msra.mxu0 %v3218_v50  ;;  %2077 = vmatpush.bf16.msra.mxu2 %v3222_v32  ;;  %v3322_v50 = vor.u32 %v3935_v24, %v3321_v23  ;;  %v3326_v32 = vor.u32 %v3931_v28, %v3323_v29  ;;  %v3518_v62 = vor.u32 %v3979_v54, %v3515_v55  ;;  %v3975_v63 = vld [vmem:[%s6174_s2 + $0x2f4] sm:$0xf0]  ;;  %v3227_v1 = vld [vmem:[%s6174_s2 + $0xf8] sm:$0xf0] }
 0x177   : > { %v3971_v2 = vld [vmem:[%s6174_s2 + $0x2dc] sm:$0xf]  ;;  %v3482_v5 = vor.u32 %v3975_v63, %v3481_v61  ;;  %v3903_v8 = vld [vmem:[%s6174_s2 + $0xb4] sm:$0xf0] }
 0x178   : > { %2064 = vmatpush.bf16.msra.mxu1 %v3474_v31  ;;  %2090 = vmatpush.bf16.msra.mxu3 %v3478_v39  ;;  %v3578_v31 = vor.u32 %v3999_v27, %v3577_v21  ;;  %v3582_v39 = vor.u32 %v3995_v45, %v3579_v30  ;;  %v3483_v3 = vld [vmem:[%s6174_s2 + $0x2f8] sm:$0xf0]  ;;  %v3449_v9 = vld [vmem:[%s6174_s2 + $0x298] sm:$0xf] }
 0x179   : > { %v3486_v10 = vor.u32 %v3971_v2, %v3483_v3  ;;  %v3195_v12 = vld [vmem:[%s6174_s2 + $0xb8] sm:$0xf0]  ;;  %v3161_v23 = vld [vmem:[%s6174_s2 + $0x58] sm:$0xf]  ;;  %v1165_v2 = vld [vmem:[%s5855_s23] sm:$0xff] }
 0x17a   : > { %2052 = vmatpush.bf16.msra.mxu0 %v3186_v42  ;;  %2078 = vmatpush.bf16.msra.mxu2 %v3190_v44  ;;  %v3290_v42 = vor.u32 %v3927_v34, %v3289_v33  ;;  %v3294_v44 = vor.u32 %v3923_v37, %v3291_v38  ;;  %v3963_v14 = vld [vmem:[%s6174_s2 + $0x29c] sm:$0xf]  ;;  %v3895_v24 = vld [vmem:[%s6174_s2 + $0x74] sm:$0xf0] }
 0x17b   : > { %v3417_v21 = vld [vmem:[%s6174_s2 + $0x258] sm:$0xf]  ;;  %v3891_v28 = vld [vmem:[%s6174_s2 + $0x5c] sm:$0xf] }
 0x17c   : > { %2065 = vmatpush.bf16.msra.mxu1 %v3442_v43  ;;  %2091 = vmatpush.bf16.msra.mxu3 %v3446_v49  ;;  %v3546_v43 = vor.u32 %v3991_v36, %v3545_v35  ;;  %v3550_v49 = vor.u32 %v3987_v40, %v3547_v41  ;;  %v3959_v27 = vld [vmem:[%s6174_s2 + $0x274] sm:$0xf0]  ;;  %v3163_v29 = vld [vmem:[%s6174_s2 + $0x78] sm:$0xf0] }
 0x17d   : > { %v3955_v45 = vld [vmem:[%s6174_s2 + $0x25c] sm:$0xf]  ;;  %v3129_v33 = vld [vmem:[%s6174_s2 + $0x18] sm:$0xf] }
 0x17e   : > { %2053 = vmatpush.bf16.msra.mxu0 %v3154_v56  ;;  %2079 = vmatpush.bf16.msra.mxu2 %v3158_v60  ;;  %v3258_v56 = vor.u32 %v3919_v47, %v3257_v46  ;;  %v3911_v60 = vld [vmem:[%s6174_s2 + $0xf4] sm:$0xf0]  ;;  %v3419_v30 = vld [vmem:[%s6174_s2 + $0x278] sm:$0xf0] }
 0x17f   : > { %v3887_v34 = vld [vmem:[%s6174_s2 + $0x34] sm:$0xf0]  ;;  %v3883_v37 = vld [vmem:[%s6174_s2 + $0x1c] sm:$0xf] }
 0x180   : > { %2066 = vmatpush.bf16.msra.mxu1 %v3410_v59  ;;  %2092 = vmatpush.bf16.msra.mxu3 %v3414_v0  ;;  %v3225_v59 = vld [vmem:[%s6174_s2 + $0xd8] sm:$0xf]  ;;  %v3907_v0 = vld [vmem:[%s6174_s2 + $0xdc] sm:$0xf] }
 0x181   : > { %v3226_v4 = vor.u32 %v3911_v60, %v3225_v59  ;;  %v3230_v6 = vor.u32 %v3907_v0, %v3227_v1  ;;  %v3385_v35 = vld [vmem:[%s6174_s2 + $0x218] sm:$0xf]  ;;  %v3131_v38 = vld [vmem:[%s6174_s2 + $0x38] sm:$0xf0]  ;;  %v1167_v1 = vld [vmem:[%s5855_s23 + $0x10] sm:$0xff] }
 0x182   : > { %2054 = vmatpush.bf16.msra.mxu0 %v3122_v7  ;;  %2080 = vmatpush.bf16.msra.mxu2 %v3126_v26  ;;  %v3193_v7 = vld [vmem:[%s6174_s2 + $0x98] sm:$0xf]  ;;  %v3899_v26 = vld [vmem:[%s6174_s2 + $0x9c] sm:$0xf] }
 0x183   : > { %v3951_v36 = vld [vmem:[%s6174_s2 + $0x234] sm:$0xf0]  ;;  %v3947_v40 = vld [vmem:[%s6174_s2 + $0x21c] sm:$0xf] }
 0x184   : > { %2067 = vmatpush.bf16.msra.mxu1 %v3378_v11  ;;  %2093 = vmatpush.bf16.msra.mxu3 %v3382_v15  ;;  %v3967_v11 = vld [vmem:[%s6174_s2 + $0x2b4] sm:$0xf0]  ;;  %v3451_v15 = vld [vmem:[%s6174_s2 + $0x2b8] sm:$0xf0] }
 0x185   : > { %2055 = vmatmul.bf16.vlgmr.msra.gmra.mxu0 %v5298_v13  ;;  %2081 = vmatmul.bf16.vlgmr.msra.gmra.mxu2 %v5298_v13  ;;  %v3387_v41 = vld [vmem:[%s6174_s2 + $0x238] sm:$0xf0] }
 0x186   : > { %2099 = vmatpush.bf16.msrb.mxu0 %v3354_v17  ;;  %2125 = vmatpush.bf16.msrb.mxu2 %v3358_v18  ;;  %v3194_v17 = vor.u32 %v3903_v8, %v3193_v7  ;;  %v3198_v18 = vor.u32 %v3899_v26, %v3195_v12  ;;  %v3390_v46 = vor.u32 %v3947_v40, %v3387_v41  ;;  %v1168_v7 = vld [vmem:[%s5855_s23 + $0x18] sm:$0xff] }
 0x187   : > { %2068 = vmatmul.bf16.vlgmr.msra.gmra.mxu1 %v5308_v16  ;;  %2094 = vmatmul.bf16.vlgmr.msra.gmra.mxu3 %v5308_v16 }
 0x188   : > { %2112 = vmatpush.bf16.msrb.mxu1 %v3610_v22  ;;  %2138 = vmatpush.bf16.msrb.mxu3 %v3614_v25  ;;  %v3450_v22 = vor.u32 %v3967_v11, %v3449_v9  ;;  %v3454_v25 = vor.u32 %v3963_v14, %v3451_v15  ;;  %v1166_v11 = vld [vmem:[%s5855_s23 + $0x8] sm:$0xff] }
 0x18a   : > { %2100 = vmatpush.bf16.msrb.mxu0 %v3322_v50  ;;  %2126 = vmatpush.bf16.msrb.mxu2 %v3326_v32  ;;  %v3162_v50 = vor.u32 %v3895_v24, %v3161_v23  ;;  %v3166_v32 = vor.u32 %v3891_v28, %v3163_v29 }
 0x18c   : > { %2113 = vmatpush.bf16.msrb.mxu1 %v3578_v31  ;;  %2139 = vmatpush.bf16.msrb.mxu3 %v3582_v39  ;;  %v3418_v31 = vor.u32 %v3959_v27, %v3417_v21  ;;  %v3422_v39 = vor.u32 %v3955_v45, %v3419_v30 }
 0x18e   : > { %2101 = vmatpush.bf16.msrb.mxu0 %v3290_v42  ;;  %2127 = vmatpush.bf16.msrb.mxu2 %v3294_v44  ;;  %v3130_v42 = vor.u32 %v3887_v34, %v3129_v33  ;;  %v3134_v44 = vor.u32 %v3883_v37, %v3131_v38  ;;  %v1171_v38 = vld [vmem:[%s5855_s23 + $0x30] sm:$0xff] }
 0x190   : > { %2114 = vmatpush.bf16.msrb.mxu1 %v3546_v43  ;;  %2140 = vmatpush.bf16.msrb.mxu3 %v3550_v49  ;;  %v3386_v43 = vor.u32 %v3951_v36, %v3385_v35 }
 0x192   : > { %2102 = vmatpush.bf16.msrb.mxu0 %v3258_v56  ;;  %2128 = vmatpush.bf16.msrb.mxu2 %v3262_v58 }
 0x194   : > { %2115 = vmatpush.bf16.msrb.mxu1 %v3514_v57  ;;  %2141 = vmatpush.bf16.msrb.mxu3 %v3518_v62 }
 0x196   : > { %2103 = vmatpush.bf16.msrb.mxu0 %v3226_v4  ;;  %2129 = vmatpush.bf16.msrb.mxu2 %v3230_v6 }
 0x198   : > { %2116 = vmatpush.bf16.msrb.mxu1 %v3482_v5  ;;  %2142 = vmatpush.bf16.msrb.mxu3 %v3486_v10 }
 0x19a   : > { %2104 = vmatpush.bf16.msrb.mxu0 %v3194_v17  ;;  %2130 = vmatpush.bf16.msrb.mxu2 %v3198_v18 }
 0x19c   : > { %2117 = vmatpush.bf16.msrb.mxu1 %v3450_v22  ;;  %2143 = vmatpush.bf16.msrb.mxu3 %v3454_v25 }
 0x19e   : > { %2105 = vmatpush.bf16.msrb.mxu0 %v3162_v50  ;;  %2131 = vmatpush.bf16.msrb.mxu2 %v3166_v32 }
 0x1a0   : > { %2118 = vmatpush.bf16.msrb.mxu1 %v3418_v31  ;;  %2144 = vmatpush.bf16.msrb.mxu3 %v3422_v39 }
 0x1a2   : > { %2106 = vmatpush.bf16.msrb.mxu0 %v3130_v42  ;;  %2132 = vmatpush.bf16.msrb.mxu2 %v3134_v44 }
 0x1a4   : > { %2119 = vmatpush.bf16.msrb.mxu1 %v3386_v43  ;;  %2145 = vmatpush.bf16.msrb.mxu3 %v3390_v46  ;;  %v1169_v46 = vld [vmem:[%s5855_s23 + $0x20] sm:$0xff] }
 0x1a5   : > { %2107 = vmatmul.bf16.vlgmr.msrb.gmra.mxu0 %v5298_v13  ;;  %2133 = vmatmul.bf16.vlgmr.msrb.gmra.mxu2 %v5298_v13 }
 0x1a7   : > { %2120 = vmatmul.bf16.vlgmr.msrb.gmra.mxu1 %v5308_v16  ;;  %2146 = vmatmul.bf16.vlgmr.msrb.gmra.mxu3 %v5308_v16 }
 0x1c2   : > { %v1952_v47 = vpop.f32.mrf.mxu0 }
 0x1c4   : > { %v1965_v48 = vpop.f32.mrf.mxu1 }
 0x1c5   : > { %v1966_v49 = vadd.f32 %v1965_v48, %v1952_v47 }
 0x1c7   : > { %v2151_v4 = vadd.f32 %v1966_v49, %v1165_v2 }
 0x1c8   : > { %v1978_v51 = vpop.f32.mrf.mxu2 }
 0x1c9   : > { %v3615_v9 = vmul.f32 -1.442695, %v2151_v4 }
 0x1ca   : > { %v1991_v52 = vpop.f32.mrf.mxu3  ;;  %v1954_v54 = vpop.f32.mrf.mxu0 }
 0x1cb   : > { %v1992_v53 = vadd.f32 %v1991_v52, %v1978_v51 }
 0x1cc   : > { %v1967_v55 = vpop.f32.mrf.mxu1 }
 0x1cd   : > { %v2152_v12 = vadd.f32 %v1992_v53, %v1166_v11 }
 0x1cf   : > { %v3616_v18 = vmul.f32 -1.442695, %v2152_v12 }
 0x1d0   : > { %v1980_v56 = vpop.f32.mrf.mxu2 }
 0x1d2   : > { %v1993_v57 = vpop.f32.mrf.mxu3 }
 0x1e2   : > { %v2004_v58 = vpop.f32.mrf.mxu0 }
 0x1e4   : > { %v2017_v59 = vpop.f32.mrf.mxu1 }
 0x1e5   : > { %v2018_v0 = vadd.f32 %v2017_v59, %v2004_v58 }
 0x1e7   : > { %v2153_v3 = vadd.f32 %v2018_v0, %v1167_v1  ;;  %v1170_v0 = vld [vmem:[%s5855_s23 + $0x28] sm:$0xff] }
 0x1e8   : > { %v2030_v60 = vpop.f32.mrf.mxu2 }
 0x1e9   : > { %v3617_v6 = vmul.f32 -1.442695, %v2153_v3 }
 0x1ea   : > { %v2043_v61 = vpop.f32.mrf.mxu3  ;;  %v2006_v62 = vpop.f32.mrf.mxu0 }
 0x1eb   : > { %v2044_v5 = vadd.f32 %v2043_v61, %v2030_v60  ;;  %4080 = vpow2.f32 %v3617_v6  ;;  %v1172_v61 = vld [vmem:[%s5855_s23 + $0x38] sm:$0xff]  ;;  %v3679_v6 = vld [vmem:[%s6175_s4 + $0x70] sm:$0xf] (%p1151_p0) }
 0x1ec   : > { %v2019_v63 = vpop.f32.mrf.mxu1  ;;  %4082 = vpow2.f32 %v3615_v9 }
 0x1ed   : > { %v2154_v26 = vadd.f32 %v2044_v5, %v1168_v7  ;;  %v4023_v7 = vld [vmem:[%s6175_s4 + $0x74] sm:$0xf0] (%p1151_p0) }
 0x1ef   : > { %v3618_v14 = vmul.f32 -1.442695, %v2154_v26 }
 0x1f0   : > { %v2032_v13 = vpop.f32.mrf.mxu2 }
 0x1f1   : > { %v4081_v24 = vpop.eup %4080  ;;  %4084 = vpow2.f32 %v3618_v14 }
 0x1f2   : > { %v2045_v16 = vpop.f32.mrf.mxu3  ;;  %v4083_v21 = vpop.eup %4082  ;;  %4086 = vpow2.f32 %v3616_v18  ;;  %v5861_v25 = vadd.f32 1.0, %v4081_v24 }
 0x1f3   : > { %v2165_v27 = vadd.f32 1.0, %v4083_v21 }
 0x1f4   : > { %4088 = vrcp.f32 %v5861_v25  ;;  %vm2210_vm1 = vweird.f32 %v5861_v25  ;;  %v2216_v58 = vand.u32 2147483648, %v5861_v25  ;;  %v2214_v16 = vand.u32 2147483647, %v5861_v25 }
 0x1f5   : > { %4090 = vrcp.f32 %v2165_v27  ;;  %vm2172_vm0 = vweird.f32 %v2165_v27  ;;  %v2178_v51 = vand.u32 2147483648, %v2165_v27  ;;  %v2176_v56 = vand.u32 2147483647, %v2165_v27 }
 0x1f6   : > { %vm2215_vm8 = vcmp.eq.f32.partialorder %v2214_v16, 8.507059e+37 }
 0x1f7   : > { %v4085_v45 = vpop.eup %4084  ;;  %vm5913_vm6 = vcmp.eq.f32.partialorder %v2176_v56, 8.507059e+37 }
 0x1f8   : > { %v4087_v30 = vpop.eup %4086  ;;  %v5864_v50 = vadd.f32 1.0, %v4085_v45  ;;  %v3737_v45 = vld [vmem:[%s6175_s4 + $0xe8] sm:$0xf0] (%p1151_p0) }
 0x1f9   : > { %v5866_v31 = vadd.f32 1.0, %v4087_v30 }
 0x1fa   : > { %v5868_v32 = vpop.eup %4088  ;;  %4092 = vrcp.f32 %v5864_v50  ;;  %vm2225_vm10 = vweird.f32 %v5864_v50  ;;  %v2231_v18 = vand.u32 2147483648, %v5864_v50 }
 0x1fb   : > { %v5870_v33 = vpop.eup %4090  ;;  %4094 = vrcp.f32 %v5866_v31  ;;  %v2206_v34 = vmul.f32 %v5868_v32, %v5861_v25  ;;  %vm2211_vm2 = vweird.f32 %v5868_v32  ;;  %vm2187_vm7 = vweird.f32 %v5866_v31 }
 0x1fc   : > { %v2168_v35 = vmul.f32 %v5870_v33, %v2165_v27  ;;  %vm2173_vm3 = vweird.f32 %v5870_v33  ;;  %vm5901_vm4 = vmor %vm2210_vm1, %vm2211_vm2  ;;  %v2193_v30 = vand.u32 2147483648, %v5866_v31 }
 0x1fd   : > { %v2207_v37 = vsub.f32 1.0, %v2206_v34  ;;  %vm5909_vm5 = vmor %vm2172_vm0, %vm2173_vm3  ;;  %v2191_v34 = vand.u32 2147483647, %v5866_v31 }
 0x1fe   : > { %v2169_v41 = vsub.f32 1.0, %v2168_v35  ;;  %v2232_v35 = vor.u32 1.1754944e-38, %v2231_v18  ;;  %v3735_v18 = vld [vmem:[%s6175_s4 + $0xe0] sm:$0xf] (%p1151_p0) }
 0x1ff   : > { %v2208_v49 = vmul.f32 %v5868_v32, %v2207_v37  ;;  %vm2192_vm15 = vcmp.eq.f32.partialorder %v2191_v34, 8.507059e+37  ;;  %v3727_v34 = vld [vmem:[%s6175_s4 + $0xd0] sm:$0xf] (%p1151_p0) }
 0x200   : > { %v5877_v36 = vpop.eup %4092  ;;  %v2170_v54 = vmul.f32 %v5870_v33, %v2169_v41 }
 0x201   : > { %v5880_v44 = vpop.eup %4094  ;;  %v2221_v47 = vmul.f32 %v5877_v36, %v5864_v50  ;;  %v2209_v13 = vadd.f32 %v5868_v32, %v2208_v49  ;;  %vm2226_vm11 = vweird.f32 %v5877_v36 }
 0x202   : > { %v2056_v8 = vpop.f32.mrf.mxu0  ;;  %v2183_v52 = vmul.f32 %v5880_v44, %v5866_v31  ;;  %v2171_v5 = vadd.f32 %v5870_v33, %v2170_v54  ;;  %vm2188_vm9 = vweird.f32 %v5880_v44  ;;  %vm5932_vm12 = vmor %vm2225_vm10, %vm2226_vm11 }
 0x203   : > { %v2222_v59 = vsub.f32 1.0, %v2221_v47  ;;  %v2213_v12 = vsel %vm5901_vm4, %v5868_v32, %v2209_v13  ;;  %vm2189_vm13 = vmor %vm2187_vm7, %vm2188_vm9 }
 0x204   : > { %v2069_v10 = vpop.f32.mrf.mxu1  ;;  %v2184_v3 = vsub.f32 1.0, %v2183_v52 }
 0x205   : > { %v2070_v42 = vadd.f32 %v2069_v10, %v2056_v8  ;;  %v2179_v8 = vor.u32 1.1754944e-38, %v2178_v51  ;;  %v2217_v10 = vor.u32 1.1754944e-38, %v2216_v58  ;;  %v2223_v11 = vmul.f32 %v5877_v36, %v2222_v59 }
 0x207   : > { %v2155_v53 = vadd.f32 %v2070_v42, %v1169_v46  ;;  %v2218_v25 = vsel %vm2215_vm8, %v2217_v10, %v2213_v12  ;;  %v2224_v27 = vadd.f32 %v5877_v36, %v2223_v11  ;;  %v4039_v10 = vld [vmem:[%s6175_s4 + $0xf4] sm:$0xf0] (%p1151_p0)  ;;  %v4038_v12 = vld [vmem:[%s6175_s4 + $0xf4] sm:$0xf] (%p1151_p0)  ;;  %vm2555_vm8 = vcmask (%p1151_p0), 7168  }
 0x208   : > { %v2082_v15 = vpop.f32.mrf.mxu2 }
 0x209   : > { %v2228_v37 = vsel %vm5932_vm12, %v5877_v36, %v2224_v27  ;;  %v3673_v27 = vld [vmem:[%s6175_s4 + $0x68] sm:$0xf0] (%p1151_p0) }
 0x20a   : > { %v2095_v17 = vpop.f32.mrf.mxu3  ;;  %v2058_v22 = vpop.f32.mrf.mxu0 }
 0x20b   : > { %v2096_v60 = vadd.f32 %v2095_v17, %v2082_v15  ;;  %v2175_v17 = vsel %vm5909_vm5, %v5870_v33, %v2171_v5  ;;  %v2185_v22 = vmul.f32 %v5880_v44, %v2184_v3 }
 0x20c   : > { %v2071_v23 = vpop.f32.mrf.mxu1  ;;  %v2180_v32 = vsel %vm5913_vm6, %v2179_v8, %v2175_v17  ;;  %v3743_v8 = vld [vmem:[%s6175_s4 + $0xf0] sm:$0xf] (%p1151_p0) }
 0x20d   : > { %v2156_v26 = vadd.f32 %v2096_v60, %v1170_v0  ;;  %v2186_v33 = vadd.f32 %v5880_v44, %v2185_v22  ;;  %v3744_v11 = vor.u32 (%p1151_p0), %v4039_v10, %v3743_v8  ;;  %v4012_v8 = vld [vmem:[%s6175_s4 + $0x24] sm:$0xf] (%p1151_p0) }
 0x20e   :  { %v4028_v10 = vld [vmem:[%s6175_s4 + $0xa4] sm:$0xf] (%p1151_p0) }
 0x20f   : > { %v2190_v42 = vsel %vm2189_vm13, %v5880_v44, %v2186_v33  ;;  %2498 = vmatpush.bf16.msra.mxu1 (%p1151_p0), %v3744_v11  ;;  %v3631_v11 = vld [vmem:[%s6175_s4 + $0x10] sm:$0xf] (%p1151_p0) }
 0x210   : > { %v2084_v28 = vpop.f32.mrf.mxu2 }
 0x211   : > { %v2229_v28 = vand.u32 2147483647, %v5864_v50 }
 0x212   : > { %v2097_v29 = vpop.f32.mrf.mxu3 }
 0x213   : > { %vm2230_vm14 = vcmp.eq.f32.partialorder %v2229_v28, 8.507059e+37  ;;  %v4036_v28 = vld [vmem:[%s6175_s4 + $0xe4] sm:$0xf] (%p1151_p0) }
 0x214   : > { %v2233_v47 = vsel %vm2230_vm14, %v2232_v35, %v2228_v37  ;;  %v3740_v33 = vor.u32 (%p1151_p0), %v4036_v28, %v3737_v45  ;;  %v4035_v35 = vld [vmem:[%s6175_s4 + $0xd4] sm:$0xf0] (%p1151_p0)  ;;  %v3665_v37 = vld [vmem:[%s6175_s4 + $0x58] sm:$0xf0] (%p1151_p0)  ;;  %v4009_v45 = vld [vmem:[%s6175_s4 + $0x4] sm:$0xf0] (%p1151_p0) }
 0x215   : > { %v2276_v31 = vmul.f32 %v4135_v19, %v2233_v47  ;;  %v3719_v47 = vld [vmem:[%s6175_s4 + $0xc0] sm:$0xf] (%p1151_p0) }
 0x222   : > { %v2108_v39 = vpop.f32.mrf.mxu0 }
 0x224   : > { %v2121_v40 = vpop.f32.mrf.mxu1 }
 0x225   : > { %v2122_v43 = vadd.f32 %v2121_v40, %v2108_v39  ;;  %v2275_v39 = vmul.f32 %v4139_v20, %v2218_v25  ;;  %v2194_v40 = vor.u32 1.1754944e-38, %v2193_v30  ;;  %v4020_v25 = vld [vmem:[%s6175_s4 + $0x64] sm:$0xf] (%p1151_p0)  ;;  %v3663_v30 = vld [vmem:[%s6175_s4 + $0x50] sm:$0xf] (%p1151_p0) }
 0x227   : > { %v2157_v48 = vadd.f32 %v2122_v43, %v1171_v38  ;;  %v2195_v49 = vsel %vm2192_vm15, %v2194_v40, %v2190_v42  ;;  %v3729_v40 = vld [vmem:[%s6175_s4 + $0xd8] sm:$0xf0] (%p1151_p0) }
 0x228   : > { %v2134_v57 = vpop.f32.mrf.mxu2 }
 0x229   : > { %v3619_v55 = vmul.f32 -1.442695, %v2157_v48 }
 0x22a   : > { %v2147_v62 = vpop.f32.mrf.mxu3  ;;  %v2110_v63 = vpop.f32.mrf.mxu0 }
 0x22b   : > { %4096 = vpow2.f32 %v3619_v55  ;;  %v2148_v1 = vadd.f32 %v2147_v62, %v2134_v57 }
 0x22c   : > { %v2123_v2 = vpop.f32.mrf.mxu1  ;;  %4098 = vtanh.f32 %v2155_v53 }
 0x22d   : > { %v2158_v9 = vadd.f32 %v2148_v1, %v1172_v61 }
 0x22f   : > { %v3620_v14 = vmul.f32 -1.442695, %v2158_v9  ;;  %v3680_v9 = vor.u32 (%p1151_p0), %v4023_v7, %v3679_v6  ;;  %v4029_v7 = vld [vmem:[%s6175_s4 + $0xa4] sm:$0xf0] (%p1151_p0) }
 0x230   : > { %v2136_v24 = vpop.f32.mrf.mxu2 }
 0x231   : > { %v4097_v15 = vpop.eup %4096  ;;  %4100 = vpow2.f32 %v3620_v14  ;;  %v3745_v14 = vld [vmem:[%s6175_s4 + $0xf8] sm:$0xf0] (%p1151_p0)  ;;  %2485 = vmatpush.bf16.msra.mxu0 (%p1151_p0), %v3680_v9  ;;  %v3641_v9 = vld [vmem:[%s6175_s4 + $0x28] sm:$0xf0] (%p1151_p0) }
 0x232   : > { %v2243_v23 = vadd.f32 1.0, %v4097_v15  ;;  %v4099_v21 = vpop.eup %4098  ;;  %4102 = vtanh.f32 %v2156_v26  ;;  %v2149_v29 = vpop.f32.mrf.mxu3  ;;  %v3671_v15 = vld [vmem:[%s6175_s4 + $0x60] sm:$0xf] (%p1151_p0)  ;;  %v3748_v17 = vor.u32 (%p1151_p0), %v4038_v12, %v3745_v14  ;;  %v3644_v12 = vor.u32 (%p1151_p0), %v4012_v8, %v3641_v9  ;;  %v4011_v14 = vld [vmem:[%s6175_s4 + $0x14] sm:$0xf0] (%p1151_p0) }
 0x233   : > { %v2277_v50 = vmul.f32 %v4099_v21, %v2180_v32  ;;  %v3676_v29 = vor.u32 (%p1151_p0), %v4020_v25, %v3673_v27  ;;  %v4019_v32 = vld [vmem:[%s6175_s4 + $0x54] sm:$0xf0] (%p1151_p0)  ;;  %v3632_v25 = vor.u32 (%p1151_p0), %v4011_v14, %v3631_v11 }
 0x234   : > { %4104 = vrcp.f32 %v2243_v23  ;;  %v2256_v36 = vand.u32 2147483648, %v2243_v23  ;;  %vm2250_vm0 = vweird.f32 %v2243_v23  ;;  %v2254_v54 = vand.u32 2147483647, %v2243_v23  ;;  %2524 = vmatpush.bf16.msra.mxu3 (%p1151_p0), %v3748_v17  ;;  %v4027_v17 = vld [vmem:[%s6175_s4 + $0x94] sm:$0xf0] (%p1151_p0) }
 0x235   : > { %v2279_v20 = vadd.f32 %v2277_v50, %v2275_v39   ;;  %v4018_v39 = vld [vmem:[%s6175_s4 + $0x54] sm:$0xf] (%p1151_p0)  ;;  %v3664_v50 = vor.u32 (%p1151_p0), %v4019_v32, %v3663_v30  ;;  %v3687_v30 = vld [vmem:[%s6175_s4 + $0x80] sm:$0xf] (%p1151_p0) }
 0x236   : > { %v2257_v56 = vor.u32 1.1754944e-38, %v2256_v36  ;;  %vm2255_vm3 = vcmp.eq.f32.partialorder %v2254_v54, 8.507059e+37  ;;  %v3668_v42 = vor.u32 (%p1151_p0), %v4018_v39, %v3665_v37  ;;  %v3721_v36 = vld [vmem:[%s6175_s4 + $0xc8] sm:$0xf0] (%p1151_p0)  ;;  %v4024_v39 = vld [vmem:[%s6175_s4 + $0x84] sm:$0xf] (%p1151_p0) }
 0x237   : > { %v4101_v38 = vpop.eup %4100 }
 0x238   : > { %v4103_v41 = vpop.eup %4102  ;;  %v2244_v43 = vadd.f32 1.0, %v4101_v38  ;;  %v4034_v38 = vld [vmem:[%s6175_s4 + $0xd4] sm:$0xf] (%p1151_p0)  ;;  %2525 = vmatpush.bf16.msra.mxu3 (%p1151_p0), %v3740_v33  ;;  %v4025_v33 = vld [vmem:[%s6175_s4 + $0x84] sm:$0xf0] (%p1151_p0) }
 0x239   : > { %v2278_v51 = vmul.f32 %v4103_v41, %v2195_v49  ;;  %v3728_v41 = vor.u32 (%p1151_p0), %v4035_v35, %v3727_v34  ;;  %v4033_v49 = vld [vmem:[%s6175_s4 + $0xc4] sm:$0xf0] (%p1151_p0)  ;;  %v4008_v34 = vld [vmem:[%s6175_s4 + $0x4] sm:$0xf] (%p1151_p0)  ;;  %v3625_v35 = vld [vmem:[%s6175_s4 + $0x8] sm:$0xf0] (%p1151_p0) }
 0x23a   : > { %v4105_v46 = vpop.eup %4104  ;;  %4106 = vrcp.f32 %v2244_v43  ;;  %v2271_v63 = vand.u32 2147483648, %v2244_v43  ;;  %v2269_v16 = vand.u32 2147483647, %v2244_v43  ;;  %vm2265_vm5 = vweird.f32 %v2244_v43 }
 0x23b   : > { %v2246_v48 = vmul.f32 %v4105_v46, %v2243_v23  ;;  %4108 = vtanh.f32 %v2279_v20  ;;  %vm2251_vm1 = vweird.f32 %v4105_v46  ;;  %v2280_v19 = vadd.f32 %v2278_v51, %v2276_v31   ;;  %v3681_v20 = vld [vmem:[%s6175_s4 + $0x78] sm:$0xf0] (%p1151_p0)  ;;  %v4037_v23 = vld [vmem:[%s6175_s4 + $0xe4] sm:$0xf0] (%p1151_p0)  ;;  %v4016_v31 = vld [vmem:[%s6175_s4 + $0x44] sm:$0xf] (%p1151_p0) }
 0x23c   : > { %vm2252_vm2 = vmor %vm2250_vm0, %vm2251_vm1  ;;  %v2272_v1 = vor.u32 1.1754944e-38, %v2271_v63  ;;  %vm2270_vm7 = vcmp.eq.f32.partialorder %v2269_v16, 8.507059e+37  ;;  %v3657_v51 = vld [vmem:[%s6175_s4 + $0x48] sm:$0xf0] (%p1151_p0)  ;;  %v3720_v54 = vor.u32 (%p1151_p0), %v4033_v49, %v3719_v47  ;;  %v4030_v63 = vld [vmem:[%s6175_s4 + $0xb4] sm:$0xf] (%p1151_p0) }
 0x23d   : > { %v2247_v52 = vsub.f32 1.0, %v2246_v48  ;;  %4110 = vtanh.f32 %v2280_v19  ;;  %v4022_v19 = vld [vmem:[%s6175_s4 + $0x74] sm:$0xf] (%p1151_p0)  ;;  %v3732_v48 = vor.u32 (%p1151_p0), %v4034_v38, %v3729_v40  ;;  %v3688_v38 = vor.u32 (%p1151_p0), %v4025_v33, %v3687_v30 }
 0x23e   :  { %v3684_v26 = vor.u32 (%p1151_p0), %v4022_v19, %v3681_v20  ;;  %v3705_v19 = vld [vmem:[%s6175_s4 + $0xa8] sm:$0xf0] (%p1151_p0)  ;;  %v3628_v40 = vor.u32 (%p1151_p0), %v4008_v34, %v3625_v35 }
 0x23f   : > { %v2248_v53 = vmul.f32 %v4105_v46, %v2247_v52  ;;  %v4032_v52 = vld [vmem:[%s6175_s4 + $0xc4] sm:$0xf] (%p1151_p0)  ;;  %2526 = vmatpush.bf16.msra.mxu3 (%p1151_p0), %v3732_v48 }
 0x240   : > { %v4107_v55 = vpop.eup %4106  ;;  %2511 = vmatpush.bf16.msra.mxu2 (%p1151_p0), %v3684_v26 }
 0x241   : > { %v2249_v44 = vadd.f32 %v4105_v46, %v2248_v53  ;;  %v2261_v57 = vmul.f32 %v4107_v55, %v2244_v43  ;;  %v4109_v59 = vpop.eup %4108  ;;  %vm2266_vm4 = vweird.f32 %v4107_v55  ;;  %v3655_v43 = vld [vmem:[%s6175_s4 + $0x40] sm:$0xf] (%p1151_p0) }
 0x242   : > { %vm2267_vm6 = vmor %vm2265_vm5, %vm2266_vm4 }
 0x243   : > { %v2253_v58 = vsel %vm2252_vm2, %v4105_v46, %v2249_v44  ;;  %v2262_v61 = vsub.f32 1.0, %v2261_v57  ;;  %v4111_v3 = vpop.eup %4110  ;;  %v4017_v46 = vld [vmem:[%s6175_s4 + $0x44] sm:$0xf0] (%p1151_p0)  ;;  %v3647_v44 = vld [vmem:[%s6175_s4 + $0x30] sm:$0xf] (%p1151_p0) }
 0x244   : > { %v2258_v60 = vsel %vm2255_vm3, %v2257_v56, %v2253_v58  ;;  %2512 = vmatpush.bf16.msra.mxu2 (%p1151_p0), %v3676_v29  ;;  %v3656_v53 = vor.u32 (%p1151_p0), %v4017_v46, %v3655_v43  ;;  %v4015_v56 = vld [vmem:[%s6175_s4 + $0x34] sm:$0xf0] (%p1151_p0)  ;;  %v3711_v57 = vld [vmem:[%s6175_s4 + $0xb0] sm:$0xf] (%p1151_p0)  ;;  %v3724_v58 = vor.u32 (%p1151_p0), %v4032_v52, %v3721_v36  ;;  %v3623_v29 = vld [vmem:[%s6175_s4] sm:$0xf] (%p1151_p0) }
 0x245   : > { %v5951_v22 = vmul.f32 %v4109_v59, %v2258_v60   ;;  %v2263_v13 = vmul.f32 %v4107_v55, %v2262_v61  ;;  %v4031_v59 = vld [vmem:[%s6175_s4 + $0xb4] sm:$0xf0] (%p1151_p0)  ;;  %v4014_v60 = vld [vmem:[%s6175_s4 + $0x34] sm:$0xf] (%p1151_p0)  ;;  %v3649_v61 = vld [vmem:[%s6175_s4 + $0x38] sm:$0xf0] (%p1151_p0)  ;;  %v3648_v16 = vor.u32 (%p1151_p0), %v4015_v56, %v3647_v44  ;;  %v3624_v37 = vor.u32 (%p1151_p0), %v4009_v45, %v3623_v29 }
 0x246   :  { %2527 = vmatpush.bf16.msra.mxu3 (%p1151_p0), %v3724_v58  ;;  %v2319_v46 = vld [vmem:[%s6176_s5] sm:$0x3] (%p1151_p0) }
 0x247   : > { %v6190_v62 = vmov %v5951_v22  ;;  %v2264_v0 = vadd.f32 %v4107_v55, %v2263_v13  ;;  %v3713_v13 = vld [vmem:[%s6175_s4 + $0xb8] sm:$0xf0] (%p1151_p0)  ;;  %v2321_v47 = vperm.slane (%p1151_p0), %v2319_v46, 0 }
 0x248   : > { %v6193_v22 = vmov %v6190_v62  ;;  %2513 = vmatpush.bf16.msra.mxu2 (%p1151_p0), %v3668_v42  ;;  %v3716_v6 = vor.u32 (%p1151_p0), %v4030_v63, %v3713_v13  ;;  %v2285_v42 = vpack.c.bf16 (%p1151_p0), %v6190_v62, %v6190_v62 }
 0x249   : > { %v2268_v2 = vsel %vm2267_vm6, %v4107_v55, %v2264_v0  ;;  %v4021_v22 = vld [vmem:[%s6175_s4 + $0x64] sm:$0xf0] (%p1151_p0)  ;;  %v3660_v55 = vor.u32 (%p1151_p0), %v4016_v31, %v3657_v51  ;;  %v3712_v0 = vor.u32 (%p1151_p0), %v4031_v59, %v3711_v57  ;;  %v2322_v51 = vperm.slane (%p1151_p0), %v2319_v46, 1 }
 0x24a   : > { %v2273_v4 = vsel %vm2270_vm7, %v2272_v1, %v2268_v2  ;;  %1153 = sbr.rel (!%p1151_p0) target bundleno = 290 (0x122), region = 60  ;;  %v3672_v24 = vor.u32 (%p1151_p0), %v4021_v22, %v3671_v15  ;;  %v3652_v1 = vor.u32 (%p1151_p0), %v4014_v60, %v3649_v61  ;;  %v3639_v2 = vld [vmem:[%s6175_s4 + $0x20] sm:$0xf] (%p1151_p0)  ;;  %v3695_v15 = vld [vmem:[%s6175_s4 + $0x90] sm:$0xf] (%p1151_p0)  ;;  %2528 = vmatpush.bf16.msra.mxu3 (%p1151_p0), %v3716_v6  ;;  %v3708_v22 = vor.u32 (%p1151_p0), %v4028_v10, %v3705_v19 }
 0x24b   : > { %v5953_v21 = vmul.f32 %v4111_v3, %v2273_v4   ;;  %v4013_v3 = vld [vmem:[%s6175_s4 + $0x24] sm:$0xf0] (%p1151_p0)  ;;  %v3703_v4 = vld [vmem:[%s6175_s4 + $0xa0] sm:$0xf] (%p1151_p0)  ;;  %v3696_v27 = vor.u32 (%p1151_p0), %v4027_v17, %v3695_v15 }
 0x24c   :  { %2486 = vmatpush.bf16.msra.mxu0 (%p1151_p0), %v3672_v24  ;;  %2514 = vmatpush.bf16.msra.mxu2 (%p1151_p0), %v3660_v55  ;;  %v3640_v20 = vor.u32 (%p1151_p0), %v4013_v3, %v3639_v2  ;;  %v3704_v26 = vor.u32 (%p1151_p0), %v4029_v7, %v3703_v4  ;;  %v4026_v24 = vld [vmem:[%s6175_s4 + $0x94] sm:$0xf] (%p1151_p0) }
 0x24d   : > { %v6191_v5 = vmov %v5953_v21 }
 0x24e   : > { %v6192_v21 = vmov %v6191_v5  ;;  %2529 = vmatpush.bf16.msra.mxu3 (%p1151_p0), %v3708_v22  ;;  %v2286_v43 = vpack.c.bf16 (%p1151_p0), %v6191_v5, %v6191_v5  ;;  %v2539_v5 = vld [vmem:[%s6177_s6] sm:$0x3] (%p1151_p0) }
 0x24f   :  { %v3736_v21 = vor.u32 %v4037_v23, %v3735_v18  ;;  %v4010_v18 = vld [vmem:[%s6175_s4 + $0x14] sm:$0xf]  ;;  %v3633_v23 = vld [vmem:[%s6175_s4 + $0x18] sm:$0xf0]  ;;  %v2541_v44 = vperm.slane %v2539_v5, 0  ;;  %v2542_v58 = vperm.slane %v2539_v5, 1 }
 0x250   :  { %2487 = vmatpush.bf16.msra.mxu0 %v3664_v50  ;;  %2515 = vmatpush.bf16.msra.mxu2 %v3652_v1  ;;  %v3636_v28 = vor.u32 %v4010_v18, %v3633_v23  ;;  %v3689_v50 = vld [vmem:[%s6175_s4 + $0x88] sm:$0xf0] }
 0x251   :  { %2499 = vmatpush.bf16.msra.mxu1 %v3736_v21  ;;  %v3697_v21 = vld [vmem:[%s6175_s4 + $0x98] sm:$0xf0] }
 0x252   :  { %v3700_v32 = vor.u32 %v4026_v24, %v3697_v21 }
 0x254   :  { %2488 = vmatpush.bf16.msra.mxu0 %v3656_v53  ;;  %2516 = vmatpush.bf16.msra.mxu2 %v3644_v12 }
 0x255   :  { %2500 = vmatpush.bf16.msra.mxu1 %v3728_v41  ;;  %2530 = vmatpush.bf16.msra.mxu3 %v3700_v32  ;;  %v3692_v41 = vor.u32 %v4024_v39, %v3689_v50 }
 0x258   :  { %2489 = vmatpush.bf16.msra.mxu0 %v3648_v16  ;;  %2517 = vmatpush.bf16.msra.mxu2 %v3636_v28 }
 0x259   :  { %2501 = vmatpush.bf16.msra.mxu1 %v3720_v54  ;;  %2531 = vmatpush.bf16.msra.mxu3 %v3692_v41 }
 0x25c   :  { %2490 = vmatpush.bf16.msra.mxu0 %v3640_v20  ;;  %2518 = vmatpush.bf16.msra.mxu2 %v3628_v40 }
 0x25d   :  { %2502 = vmatpush.bf16.msra.mxu1 %v3712_v0  ;;  %2532 = vmatmul.bf16.vlgmr.msra.gmra.mxu3 %v2286_v43  ;;  %v4112_v0 = vld [vmem:[#allocation3] ss:$0 sm:$0xff] }
 0x25f   :  { %2519 = vmatmul.bf16.vlgmr.msra.gmra.mxu2 %v2285_v42 }
 0x260   :  { %2491 = vmatpush.bf16.msra.mxu0 %v3632_v25 }
 0x261   :  { %2503 = vmatpush.bf16.msra.mxu1 %v3704_v26 }
 0x264   :  { %2492 = vmatpush.bf16.msra.mxu0 %v3624_v37 }
 0x265   :  { %2504 = vmatpush.bf16.msra.mxu1 %v3696_v27 }
 0x267   :  { %2493 = vmatmul.bf16.vlgmr.msra.gmra.mxu0 %v2285_v42 }
 0x269   :  { %2505 = vmatpush.bf16.msra.mxu1 %v3688_v38 }
 0x26c   :  { %2506 = vmatmul.bf16.vlgmr.msra.gmra.mxu1 %v2286_v43 }
 0x2e0   :  { %v2533_v54 = vpop.f32.mrf.mxu3 }
 0x2e2   :  { %v2520_v52 = vpop.f32.mrf.mxu2 }
 0x2e3   :  { %v2521_v53 = vadd.f32 %v2520_v52, %v2322_v51 }
 0x2e4   :  { %v2494_v48 = vpop.f32.mrf.mxu0 }
 0x2e5   :  { %v2495_v49 = vadd.f32 %v2494_v48, %v2321_v47  ;;  %v2534_v57 = vadd.f32 %v2533_v54, %v2521_v53 }
 0x2e7   :  { %v2538_v59 = vmax.f32 %v2534_v57, 0.0 }
 0x2e8   :  { %v2535_v13 = vpop.f32.mrf.mxu3 }
 0x2e9   :  { %v2507_v31 = vpop.f32.mrf.mxu1  ;;  %v2546_v61 = vmul.f32 %v2542_v58, %v2538_v59 }
 0x2ea   :  { %v2508_v62 = vadd.f32 %v2507_v31, %v2495_v49  ;;  %v2522_v63 = vpop.f32.mrf.mxu2 }
 0x2ec   :  { %v2537_v36 = vmax.f32 %v2508_v62, 0.0  ;;  %v2496_v55 = vpop.f32.mrf.mxu0 }
 0x2ee   :  { %v2545_v60 = vmul.f32 %v2541_v44, %v2537_v36 }
 0x2f0   :  { %v2547_v16 = vadd.f32 %v2546_v61, %v2545_v60 }
 0x2f1   :  { %v2509_v56 = vpop.f32.mrf.mxu1 }
 0x2f2   :  { %2548 = vadd.xlane.f32.xlu0 %v2547_v16 }
 0x365   :  { %v2549_v1 = vpop.xlane.xlu0 %2548 }
 0x366   :  { %v2554_v2 = vadd.f32 %v4112_v0, %v2549_v1 }
 0x368   :  { %2556 = vst.msk [vmem:[%s6179_s8] sm:$0xff] %vm2555_vm8, %v2554_v2 }

</bundles_post_ra>
